<compile_context>
chip_gen: v5e
topology: v5e:2x2
jax: 0.10.0
libtpu: 0.0.40
codegen_flags: <defaults>
</compile_context>

<pallas_src>
import functools
import math
import numpy as np
import jax
import jax.numpy as jnp
from jax.experimental import pallas as pl
from jax.experimental.pallas import tpu as pltpu

MXU_DTYPE = jnp.bfloat16   # matmul operand dtype; accumulation is always f32


# ------------------------------ fused kernel ------------------------------- #

def _make_cnn_kernel(T):
    L1 = (T - 1) * 32 + 28     # rows holding valid conv1 / pool1-column data
    L2 = (T - 1) * 16 + 10     # rows holding valid conv2 / pool2-column data

    def dot(a, b):
        return jnp.dot(a.astype(MXU_DTYPE), b, preferred_element_type=jnp.float32)

    def kernel(x0_ref, u1_ref, b1_ref, pc1_ref, v2_ref, b2_ref, pc2_ref,
               g_ref, fb1_ref, w2_ref, fb2_ref, w3_ref, fb3_ref,
               out_ref, cm1_ref, cm2_ref):
        # ---- conv1 (1->6, 3x3, pad=1): one concatenated-K matmul -------------
        x0 = x0_ref[...]                                            # (T*32, 32) f32
        xcat = jnp.concatenate([x0[kh:kh + L1, :] for kh in range(3)], axis=1)
        y1 = dot(xcat, u1_ref[...]) + b1_ref[...]                   # (L1, 168) f32

        # ---- pool1: columns via 0/1-select matmuls, rows via stride-2 reads --
        cm1_ref[0:L1, :] = jnp.maximum(dot(y1, pc1_ref[0]), dot(y1, pc1_ref[1]))
        p1 = jnp.maximum(cm1_ref[pl.ds(0, T * 16, stride=2), :],
                         cm1_ref[pl.ds(1, T * 16, stride=2), :])    # (T*16, 84)

        # ---- conv2 (6->16, 5x5, valid): one concatenated-K matmul ------------
        pcat = jnp.concatenate([p1[kh:kh + L2, :] for kh in range(5)], axis=1)
        y2 = dot(pcat, v2_ref[...]) + b2_ref[...]                   # (L2, 160) f32

        # ---- pool2 columns ---------------------------------------------------
        cm2_ref[0:L2, :] = jnp.maximum(dot(y2, pc2_ref[0]), dot(y2, pc2_ref[1]))

        # ---- pool2 rows + torch (C,H,W) flatten gathered into (T, 400) -------
        rows = [jnp.maximum(cm2_ref[pl.ds(2 * u, T, stride=16), :],
                            cm2_ref[pl.ds(2 * u + 1, T, stride=16), :])
                for u in range(5)]
        p2cat = jnp.concatenate(rows, axis=1)                       # (T, 400)

        # ---- fc1 -> fc2 -> fc3 (all lane-padded to 128-wide, full-lane stores)
        h1 = dot(p2cat, g_ref[...]) + fb1_ref[...]                  # (T, 128)
        h2 = dot(h1, w2_ref[...]) + fb2_ref[...]                    # (T, 128)
        out_ref[...] = dot(h2, w3_ref[...]) + fb3_ref[...]          # (T, 128)

    return kernel


# ---------------- host-side (numpy) weight folding, done ONCE --------------- #

def prepare_constants(params):
    """Fold conv/fc weights + structural 0/1 stencils into the matmul slabs the
    kernel consumes.  Pure host work, batch-size independent, computed once per
    parameter set (outside jit) and uploaded in the MXU operand dtype."""
    f32 = np.float32
    w1 = np.asarray(params["w1"], f32)    # (6,1,3,3)
    b1 = np.asarray(params["b1"], f32)
    w2 = np.asarray(params["w2"], f32)    # (16,6,5,5)
    b2 = np.asarray(params["b2"], f32)
    fw1 = np.asarray(params["fw1"], f32)  # (120,400)
    fb1 = np.asarray(params["fb1"], f32)
    fw2 = np.asarray(params["fw2"], f32)  # (84,120)
    fb2 = np.asarray(params["fb2"], f32)
    fw3 = np.asarray(params["fw3"], f32)  # (10,84)
    fb3 = np.asarray(params["fb3"], f32)

    # conv1: K = 3*32 (kh blocks of the 32-col padded input), N = 6*28.
    U1 = np.zeros((3 * 32, 6 * 28), f32)
    for kh in range(3):
        for kw in range(3):
            for co in range(6):
                for j in range(28):
                    U1[32 * kh + j + kw, co * 28 + j] += w1[co, 0, kh, kw]
    b1row = np.repeat(b1, 28).reshape(1, 6 * 28)

    # pool1 / pool2 column-select (exact 0/1 matrices, batch independent).
    PC1 = np.zeros((2, 6 * 28, 6 * 14), f32)
    for dj in range(2):
        for c in range(6):
            for v in range(14):
                PC1[dj, c * 28 + 2 * v + dj, c * 14 + v] = 1.0
    PC2 = np.zeros((2, 16 * 10, 16 * 5), f32)
    for dj in range(2):
        for c in range(16):
            for v in range(5):
                PC2[dj, c * 10 + 2 * v + dj, c * 5 + v] = 1.0

    # conv2: K = 5*84 (kh blocks of the pooled 6*14 columns), N = 16*10.
    V2 = np.zeros((5 * 84, 16 * 10), f32)
    for kh in range(5):
        for kw in range(5):
            for ci in range(6):
                for co in range(16):
                    for j in range(10):
                        V2[84 * kh + ci * 14 + j + kw, co * 10 + j] += w2[co, ci, kh, kw]
    b2row = np.repeat(b2, 10).reshape(1, 16 * 10)

    # fc1 with torch (C,H,W) flatten order folded in; kernel feeds rows u-major
    # with columns co*5+v.  Output lane-padded 120 -> 128.
    G = np.zeros((5 * 80, 128), f32)
    for u in range(5):
        for co in range(16):
            for v in range(5):
                G[80 * u + co * 5 + v, :120] = fw1[:, co * 25 + u * 5 + v]
    fb1p = np.zeros((1, 128), f32); fb1p[0, :120] = fb1
    W2p = np.zeros((128, 128), f32); W2p[:120, :84] = fw2.T
    fb2p = np.zeros((1, 128), f32); fb2p[0, :84] = fb2
    W3p = np.zeros((128, 128), f32); W3p[:84, :10] = fw3.T
    fb3p = np.zeros((1, 128), f32); fb3p[0, :10] = fb3

    lo = MXU_DTYPE
    return dict(
        U1=jnp.asarray(U1, lo), b1row=jnp.asarray(b1row, jnp.float32),
        PC1=jnp.asarray(PC1, lo),
        V2=jnp.asarray(V2, lo), b2row=jnp.asarray(b2row, jnp.float32),
        PC2=jnp.asarray(PC2, lo),
        G=jnp.asarray(G, lo), fb1=jnp.asarray(fb1p, jnp.float32),
        W2=jnp.asarray(W2p, lo), fb2=jnp.asarray(fb2p, jnp.float32),
        W3=jnp.asarray(W3p, lo), fb3=jnp.asarray(fb3p, jnp.float32),
    )


# --------------------------------- wrapper ---------------------------------- #

@functools.partial(jax.jit, static_argnames=("b_tile",))
def cnn_forward(x_nchw, consts, b_tile=8):
    B = x_nchw.shape[0]
    T = b_tile
    n_tiles = (B + T - 1) // T
    Bp = n_tiles * T

    # Per-image 32x32 slab: rows/cols 0..29 hold the zero-padded 30x30 image,
    # rows/cols 30..31 are zero; batch folded into rows with stride 32.
    x = x_nchw[:, 0].astype(jnp.float32)
    x = jnp.pad(x, ((0, Bp - B), (1, 3), (1, 3)))
    x0 = x.reshape(Bp * 32, 32)

    kernel = _make_cnn_kernel(T)

    wnames = ["U1", "b1row", "PC1", "V2", "b2row", "PC2",
              "G", "fb1", "W2", "fb2", "W3", "fb3"]
    wargs = [consts[k] for k in wnames]

    def resident(a):   # full-array block, same block every grid step -> stays in VMEM
        return pl.BlockSpec(a.shape, lambda i, _nd=a.ndim: (0,) * _nd)

    macs = 28 * 28 * 6 * 9 + 10 * 10 * 16 * 6 * 25 + 400 * 120 + 120 * 84 + 84 * 10
    cost = pl.CostEstimate(
        flops=2 * macs * Bp, transcendentals=0,
        bytes_accessed=int(x0.size * x0.dtype.itemsize
                           + sum(a.size * a.dtype.itemsize for a in wargs)
                           + Bp * 128 * 4))

    out = pl.pallas_call(
        kernel,
        out_shape=jax.ShapeDtypeStruct((Bp, 128), jnp.float32),
        grid_spec=pltpu.PrefetchScalarGridSpec(
            num_scalar_prefetch=0,
            grid=(n_tiles,),
            in_specs=[pl.BlockSpec((T * 32, 32), lambda i: (i, 0))]
                     + [resident(a) for a in wargs],
            out_specs=pl.BlockSpec((T, 128), lambda i: (i, 0)),
            scratch_shapes=[pltpu.VMEM((T * 32, 6 * 14), jnp.float32),
                            pltpu.VMEM((T * 16, 16 * 5), jnp.float32)]),
        compiler_params=pltpu.CompilerParams(dimension_semantics=("parallel",)),
        cost_estimate=cost,
    )(x0, *wargs)

    return out[:B, :10]


# ------------------------- reference (pure JAX/XLA) ------------------------- #

def reference_forward(x, p):
    dn = ("NCHW", "OIHW", "NCHW")
    y = jax.lax.conv_general_dilated(
        x, p["w1"], (1, 1), ((1, 1), (1, 1)), dimension_numbers=dn
    ) + p["b1"][None, :, None, None]
    y = jax.lax.reduce_window(y, -jnp.inf, jax.lax.max, (1, 1, 2, 2), (1, 1, 2, 2), "VALID")
    y = jax.lax.conv_general_dilated(
        y, p["w2"], (1, 1), ((0, 0), (0, 0)), dimension_numbers=dn
    ) + p["b2"][None, :, None, None]
    y = jax.lax.reduce_window(y, -jnp.inf, jax.lax.max, (1, 1, 2, 2), (1, 1, 2, 2), "VALID")
    y = y.reshape(y.shape[0], -1)
    y = y @ p["fw1"].T + p["fb1"]
    y = y @ p["fw2"].T + p["fb2"]
    y = y @ p["fw3"].T + p["fb3"]
    return y


# ----------------------------- parameter init ------------------------------ #

def init_params(key):
    def uni(k, shape, fan_in):
        bound = 1.0 / math.sqrt(fan_in)
        return jax.random.uniform(k, shape, jnp.float32, -bound, bound)

    ks = jax.random.split(key, 10)
    return {
        "w1": uni(ks[0], (6, 1, 3, 3), 1 * 3 * 3),
        "b1": uni(ks[1], (6,), 1 * 3 * 3),
        "w2": uni(ks[2], (16, 6, 5, 5), 6 * 5 * 5),
        "b2": uni(ks[3], (16,), 6 * 5 * 5),
        "fw1": uni(ks[4], (120, 400), 400),
        "fb1": uni(ks[5], (120,), 400),
        "fw2": uni(ks[6], (84, 120), 120),
        "fb2": uni(ks[7], (84,), 120),
        "fw3": uni(ks[8], (10, 84), 84),
        "fb3": uni(ks[9], (10,), 84),
    }


if __name__ == "__main__":
    key = jax.random.PRNGKey(0)
    pkey, xkey = jax.random.split(key)
    params = init_params(pkey)
    consts = prepare_constants(params)        # host-side, once per param set

    # Linear(400) implies the canonical MNIST input: (B, 1, 28, 28), NCHW like PyTorch.
    for B in (16, 3):                          # multi-tile grid, and a ragged batch
        xk, xkey = jax.random.split(xkey)
        x = jax.random.normal(xk, (B, 1, 28, 28), dtype=jnp.float32)

        out = cnn_forward(x, consts, b_tile=8)
        out = jax.block_until_ready(out)
        assert out.shape == (B, 10) and out.dtype == jnp.float32

        ref = reference_forward(x, params)
        if not np.allclose(np.asarray(out), np.asarray(ref), atol=5e-2, rtol=5e-2):
            raise AssertionError(f"Pallas CNN output mismatch at B={B}")

    print("KERNEL_OK")
</pallas_src>

<mosaic_0001>
module attributes {stable_mosaic.version = 11 : i64} {
  func.func @kernel(%arg0: i32, %arg1: memref<256x32xf32, #tpu.memory_space<vmem>>, %arg2: memref<96x168xbf16, #tpu.memory_space<vmem>>, %arg3: memref<1x168xf32, #tpu.memory_space<vmem>>, %arg4: memref<2x168x84xbf16, #tpu.memory_space<vmem>>, %arg5: memref<420x160xbf16, #tpu.memory_space<vmem>>, %arg6: memref<1x160xf32, #tpu.memory_space<vmem>>, %arg7: memref<2x160x80xbf16, #tpu.memory_space<vmem>>, %arg8: memref<400x128xbf16, #tpu.memory_space<vmem>>, %arg9: memref<1x128xf32, #tpu.memory_space<vmem>>, %arg10: memref<128x128xbf16, #tpu.memory_space<vmem>>, %arg11: memref<1x128xf32, #tpu.memory_space<vmem>>, %arg12: memref<128x128xbf16, #tpu.memory_space<vmem>>, %arg13: memref<1x128xf32, #tpu.memory_space<vmem>>, %arg14: memref<8x128xf32, #tpu.memory_space<vmem>>, %arg15: memref<256x84xf32, #tpu.memory_space<vmem>>, %arg16: memref<128x80xf32, #tpu.memory_space<vmem>>) attributes {dimension_semantics = [#tpu.dimension_semantics<parallel>], iteration_bounds = array<i64: 2>, scalar_prefetch = 0 : i64, scratch_operands = 2 : i64, tpu.core_type = #tpu.core_type<tc>, window_params = [{transform_indices = @transform_0, window_bounds = array<i64: 256, 32>}, {pipeline_mode = #tpu.pipeline_mode<synchronous>, transform_indices = @transform_1, window_bounds = array<i64: 96, 168>}, {pipeline_mode = #tpu.pipeline_mode<synchronous>, transform_indices = @transform_2, window_bounds = array<i64: 1, 168>}, {pipeline_mode = #tpu.pipeline_mode<synchronous>, transform_indices = @transform_3, window_bounds = array<i64: 2, 168, 84>}, {pipeline_mode = #tpu.pipeline_mode<synchronous>, transform_indices = @transform_4, window_bounds = array<i64: 420, 160>}, {pipeline_mode = #tpu.pipeline_mode<synchronous>, transform_indices = @transform_5, window_bounds = array<i64: 1, 160>}, {pipeline_mode = #tpu.pipeline_mode<synchronous>, transform_indices = @transform_6, window_bounds = array<i64: 2, 160, 80>}, {pipeline_mode = #tpu.pipeline_mode<synchronous>, transform_indices = @transform_7, window_bounds = array<i64: 400, 128>}, {pipeline_mode = #tpu.pipeline_mode<synchronous>, transform_indices = @transform_8, window_bounds = array<i64: 1, 128>}, {pipeline_mode = #tpu.pipeline_mode<synchronous>, transform_indices = @transform_9, window_bounds = array<i64: 128, 128>}, {pipeline_mode = #tpu.pipeline_mode<synchronous>, transform_indices = @transform_10, window_bounds = array<i64: 1, 128>}, {pipeline_mode = #tpu.pipeline_mode<synchronous>, transform_indices = @transform_11, window_bounds = array<i64: 128, 128>}, {pipeline_mode = #tpu.pipeline_mode<synchronous>, transform_indices = @transform_12, window_bounds = array<i64: 1, 128>}, {transform_indices = @transform_13, window_bounds = array<i64: 8, 128>}]} {
    %c0 = arith.constant 0 : index
    %c0_0 = arith.constant 0 : index
    %0 = vector.load %arg1[%c0, %c0_0] : memref<256x32xf32, #tpu.memory_space<vmem>>, vector<256x32xf32>
    %1 = vector.extract_strided_slice %0 {offsets = [0, 0], sizes = [252, 32], strides = [1, 1]} : vector<256x32xf32> to vector<252x32xf32>
    %2 = vector.extract_strided_slice %0 {offsets = [1, 0], sizes = [252, 32], strides = [1, 1]} : vector<256x32xf32> to vector<252x32xf32>
    %3 = vector.extract_strided_slice %0 {offsets = [2, 0], sizes = [252, 32], strides = [1, 1]} : vector<256x32xf32> to vector<252x32xf32>
    %4 = tpu.concatenate %1, %2, %3 in 1 : vector<252x32xf32>, vector<252x32xf32>, vector<252x32xf32> -> vector<252x96xf32>
    %c0_1 = arith.constant 0 : index
    %c0_2 = arith.constant 0 : index
    %5 = vector.load %arg2[%c0_1, %c0_2] : memref<96x168xbf16, #tpu.memory_space<vmem>>, vector<96x168xbf16>
    %6 = arith.truncf %4 : vector<252x96xf32> to vector<252x96xbf16>
    %cst = arith.constant dense<0.000000e+00> : vector<252x168xf32>
    %7 = tpu.matmul %6, %5, %cst {dimension_numbers = #tpu.dot_dimension_numbers<[1], [0], [0], [1], [0, 0, 1, 1], [], []>} : vector<252x96xbf16>, vector<96x168xbf16>, vector<252x168xf32> -> vector<252x168xf32>
    %c0_3 = arith.constant 0 : index
    %c0_4 = arith.constant 0 : index
    %8 = vector.load %arg3[%c0_3, %c0_4] : memref<1x168xf32, #tpu.memory_space<vmem>>, vector<1x168xf32>
    %9 = vector.broadcast %8 : vector<1x168xf32> to vector<252x168xf32>
    %10 = arith.addf %7, %9 : vector<252x168xf32>
    %c0_5 = arith.constant 0 : index
    %c0_6 = arith.constant 0 : index
    %c0_7 = arith.constant 0 : index
    %11 = vector.load %arg4[%c0_5, %c0_6, %c0_7] : memref<2x168x84xbf16, #tpu.memory_space<vmem>>, vector<1x168x84xbf16>
    %12 = vector.shape_cast %11 : vector<1x168x84xbf16> to vector<168x84xbf16>
    %13 = arith.truncf %10 : vector<252x168xf32> to vector<252x168xbf16>
    %cst_8 = arith.constant dense<0.000000e+00> : vector<252x84xf32>
    %14 = tpu.matmul %13, %12, %cst_8 {dimension_numbers = #tpu.dot_dimension_numbers<[1], [0], [0], [1], [0, 0, 1, 1], [], []>} : vector<252x168xbf16>, vector<168x84xbf16>, vector<252x84xf32> -> vector<252x84xf32>
    %c1 = arith.constant 1 : index
    %c0_9 = arith.constant 0 : index
    %c0_10 = arith.constant 0 : index
    %15 = vector.load %arg4[%c1, %c0_9, %c0_10] : memref<2x168x84xbf16, #tpu.memory_space<vmem>>, vector<1x168x84xbf16>
    %16 = vector.shape_cast %15 : vector<1x168x84xbf16> to vector<168x84xbf16>
    %17 = arith.truncf %10 : vector<252x168xf32> to vector<252x168xbf16>
    %cst_11 = arith.constant dense<0.000000e+00> : vector<252x84xf32>
    %18 = tpu.matmul %17, %16, %cst_11 {dimension_numbers = #tpu.dot_dimension_numbers<[1], [0], [0], [1], [0, 0, 1, 1], [], []>} : vector<252x168xbf16>, vector<168x84xbf16>, vector<252x84xf32> -> vector<252x84xf32>
    %19 = arith.maximumf %14, %18 : vector<252x84xf32>
    %c0_12 = arith.constant 0 : index
    %c0_13 = arith.constant 0 : index
    %20 = vector.load %arg15[%c0_12, %c0_13] : memref<256x84xf32, #tpu.memory_space<vmem>>, vector<252x84xf32>
    tpu.vector_store %arg15[%c0_12, %c0_13], %19 {strides = array<i32>} : memref<256x84xf32, #tpu.memory_space<vmem>>, vector<252x84xf32>,
    %c0_14 = arith.constant 0 : index
    %c0_15 = arith.constant 0 : index
    %21 = tpu.strided_load %arg15[%c0_14, %c0_15] {strides = array<i32: 2, 1>} : memref<256x84xf32, #tpu.memory_space<vmem>>, vector<128x84xf32>
    %c1_16 = arith.constant 1 : index
    %c0_17 = arith.constant 0 : index
    %22 = tpu.strided_load %arg15[%c1_16, %c0_17] {strides = array<i32: 2, 1>} : memref<256x84xf32, #tpu.memory_space<vmem>>, vector<128x84xf32>
    %23 = arith.maximumf %21, %22 : vector<128x84xf32>
    %24 = vector.extract_strided_slice %23 {offsets = [0, 0], sizes = [122, 84], strides = [1, 1]} : vector<128x84xf32> to vector<122x84xf32>
    %25 = vector.extract_strided_slice %23 {offsets = [1, 0], sizes = [122, 84], strides = [1, 1]} : vector<128x84xf32> to vector<122x84xf32>
    %26 = vector.extract_strided_slice %23 {offsets = [2, 0], sizes = [122, 84], strides = [1, 1]} : vector<128x84xf32> to vector<122x84xf32>
    %27 = vector.extract_strided_slice %23 {offsets = [3, 0], sizes = [122, 84], strides = [1, 1]} : vector<128x84xf32> to vector<122x84xf32>
    %28 = vector.extract_strided_slice %23 {offsets = [4, 0], sizes = [122, 84], strides = [1, 1]} : vector<128x84xf32> to vector<122x84xf32>
    %29 = tpu.concatenate %24, %25, %26, %27, %28 in 1 : vector<122x84xf32>, vector<122x84xf32>, vector<122x84xf32>, vector<122x84xf32>, vector<122x84xf32> -> vector<122x420xf32>
    %c0_18 = arith.constant 0 : index
    %c0_19 = arith.constant 0 : index
    %30 = vector.load %arg5[%c0_18, %c0_19] : memref<420x160xbf16, #tpu.memory_space<vmem>>, vector<420x160xbf16>
    %31 = arith.truncf %29 : vector<122x420xf32> to vector<122x420xbf16>
    %cst_20 = arith.constant dense<0.000000e+00> : vector<122x160xf32>
    %32 = tpu.matmul %31, %30, %cst_20 {dimension_numbers = #tpu.dot_dimension_numbers<[1], [0], [0], [1], [0, 0, 1, 1], [], []>} : vector<122x420xbf16>, vector<420x160xbf16>, vector<122x160xf32> -> vector<122x160xf32>
    %c0_21 = arith.constant 0 : index
    %c0_22 = arith.constant 0 : index
    %33 = vector.load %arg6[%c0_21, %c0_22] : memref<1x160xf32, #tpu.memory_space<vmem>>, vector<1x160xf32>
    %34 = vector.broadcast %33 : vector<1x160xf32> to vector<122x160xf32>
    %35 = arith.addf %32, %34 : vector<122x160xf32>
    %c0_23 = arith.constant 0 : index
    %c0_24 = arith.constant 0 : index
    %c0_25 = arith.constant 0 : index
    %36 = vector.load %arg7[%c0_23, %c0_24, %c0_25] : memref<2x160x80xbf16, #tpu.memory_space<vmem>>, vector<1x160x80xbf16>
    %37 = vector.shape_cast %36 : vector<1x160x80xbf16> to vector<160x80xbf16>
    %38 = arith.truncf %35 : vector<122x160xf32> to vector<122x160xbf16>
    %cst_26 = arith.constant dense<0.000000e+00> : vector<122x80xf32>
    %39 = tpu.matmul %38, %37, %cst_26 {dimension_numbers = #tpu.dot_dimension_numbers<[1], [0], [0], [1], [0, 0, 1, 1], [], []>} : vector<122x160xbf16>, vector<160x80xbf16>, vector<122x80xf32> -> vector<122x80xf32>
    %c1_27 = arith.constant 1 : index
    %c0_28 = arith.constant 0 : index
    %c0_29 = arith.constant 0 : index
    %40 = vector.load %arg7[%c1_27, %c0_28, %c0_29] : memref<2x160x80xbf16, #tpu.memory_space<vmem>>, vector<1x160x80xbf16>
    %41 = vector.shape_cast %40 : vector<1x160x80xbf16> to vector<160x80xbf16>
    %42 = arith.truncf %35 : vector<122x160xf32> to vector<122x160xbf16>
    %cst_30 = arith.constant dense<0.000000e+00> : vector<122x80xf32>
    %43 = tpu.matmul %42, %41, %cst_30 {dimension_numbers = #tpu.dot_dimension_numbers<[1], [0], [0], [1], [0, 0, 1, 1], [], []>} : vector<122x160xbf16>, vector<160x80xbf16>, vector<122x80xf32> -> vector<122x80xf32>
    %44 = arith.maximumf %39, %43 : vector<122x80xf32>
    %c0_31 = arith.constant 0 : index
    %c0_32 = arith.constant 0 : index
    %45 = vector.load %arg16[%c0_31, %c0_32] : memref<128x80xf32, #tpu.memory_space<vmem>>, vector<122x80xf32>
    tpu.vector_store %arg16[%c0_31, %c0_32], %44 {strides = array<i32>} : memref<128x80xf32, #tpu.memory_space<vmem>>, vector<122x80xf32>,
    %c0_33 = arith.constant 0 : index
    %c0_34 = arith.constant 0 : index
    %46 = tpu.strided_load %arg16[%c0_33, %c0_34] {strides = array<i32: 16, 1>} : memref<128x80xf32, #tpu.memory_space<vmem>>, vector<8x80xf32>
    %c1_35 = arith.constant 1 : index
    %c0_36 = arith.constant 0 : index
    %47 = tpu.strided_load %arg16[%c1_35, %c0_36] {strides = array<i32: 16, 1>} : memref<128x80xf32, #tpu.memory_space<vmem>>, vector<8x80xf32>
    %48 = arith.maximumf %46, %47 : vector<8x80xf32>
    %c2 = arith.constant 2 : index
    %c0_37 = arith.constant 0 : index
    %49 = tpu.strided_load %arg16[%c2, %c0_37] {strides = array<i32: 16, 1>} : memref<128x80xf32, #tpu.memory_space<vmem>>, vector<8x80xf32>
    %c3 = arith.constant 3 : index
    %c0_38 = arith.constant 0 : index
    %50 = tpu.strided_load %arg16[%c3, %c0_38] {strides = array<i32: 16, 1>} : memref<128x80xf32, #tpu.memory_space<vmem>>, vector<8x80xf32>
    %51 = arith.maximumf %49, %50 : vector<8x80xf32>
    %c4 = arith.constant 4 : index
    %c0_39 = arith.constant 0 : index
    %52 = tpu.strided_load %arg16[%c4, %c0_39] {strides = array<i32: 16, 1>} : memref<128x80xf32, #tpu.memory_space<vmem>>, vector<8x80xf32>
    %c5 = arith.constant 5 : index
    %c0_40 = arith.constant 0 : index
    %53 = tpu.strided_load %arg16[%c5, %c0_40] {strides = array<i32: 16, 1>} : memref<128x80xf32, #tpu.memory_space<vmem>>, vector<8x80xf32>
    %54 = arith.maximumf %52, %53 : vector<8x80xf32>
    %c6 = arith.constant 6 : index
    %c0_41 = arith.constant 0 : index
    %55 = tpu.strided_load %arg16[%c6, %c0_41] {strides = array<i32: 16, 1>} : memref<128x80xf32, #tpu.memory_space<vmem>>, vector<8x80xf32>
    %c7 = arith.constant 7 : index
    %c0_42 = arith.constant 0 : index
    %56 = tpu.strided_load %arg16[%c7, %c0_42] {strides = array<i32: 16, 1>} : memref<128x80xf32, #tpu.memory_space<vmem>>, vector<8x80xf32>
    %57 = arith.maximumf %55, %56 : vector<8x80xf32>
    %c8 = arith.constant 8 : index
    %c0_43 = arith.constant 0 : index
    %58 = tpu.strided_load %arg16[%c8, %c0_43] {strides = array<i32: 16, 1>} : memref<128x80xf32, #tpu.memory_space<vmem>>, vector<8x80xf32>
    %c9 = arith.constant 9 : index
    %c0_44 = arith.constant 0 : index
    %59 = tpu.strided_load %arg16[%c9, %c0_44] {strides = array<i32: 16, 1>} : memref<128x80xf32, #tpu.memory_space<vmem>>, vector<8x80xf32>
    %60 = arith.maximumf %58, %59 : vector<8x80xf32>
    %61 = tpu.concatenate %48, %51, %54, %57, %60 in 1 : vector<8x80xf32>, vector<8x80xf32>, vector<8x80xf32>, vector<8x80xf32>, vector<8x80xf32> -> vector<8x400xf32>
    %c0_45 = arith.constant 0 : index
    %c0_46 = arith.constant 0 : index
    %62 = vector.load %arg8[%c0_45, %c0_46] : memref<400x128xbf16, #tpu.memory_space<vmem>>, vector<400x128xbf16>
    %63 = arith.truncf %61 : vector<8x400xf32> to vector<8x400xbf16>
    %cst_47 = arith.constant dense<0.000000e+00> : vector<8x128xf32>
    %64 = tpu.matmul %63, %62, %cst_47 {dimension_numbers = #tpu.dot_dimension_numbers<[1], [0], [0], [1], [0, 0, 1, 1], [], []>} : vector<8x400xbf16>, vector<400x128xbf16>, vector<8x128xf32> -> vector<8x128xf32>
    %c0_48 = arith.constant 0 : index
    %c0_49 = arith.constant 0 : index
    %65 = vector.load %arg9[%c0_48, %c0_49] : memref<1x128xf32, #tpu.memory_space<vmem>>, vector<1x128xf32>
    %66 = vector.broadcast %65 : vector<1x128xf32> to vector<8x128xf32>
    %67 = arith.addf %64, %66 : vector<8x128xf32>
    %c0_50 = arith.constant 0 : index
    %c0_51 = arith.constant 0 : index
    %68 = vector.load %arg10[%c0_50, %c0_51] : memref<128x128xbf16, #tpu.memory_space<vmem>>, vector<128x128xbf16>
    %69 = arith.truncf %67 : vector<8x128xf32> to vector<8x128xbf16>
    %cst_52 = arith.constant dense<0.000000e+00> : vector<8x128xf32>
    %70 = tpu.matmul %69, %68, %cst_52 {dimension_numbers = #tpu.dot_dimension_numbers<[1], [0], [0], [1], [0, 0, 1, 1], [], []>} : vector<8x128xbf16>, vector<128x128xbf16>, vector<8x128xf32> -> vector<8x128xf32>
    %c0_53 = arith.constant 0 : index
    %c0_54 = arith.constant 0 : index
    %71 = vector.load %arg11[%c0_53, %c0_54] : memref<1x128xf32, #tpu.memory_space<vmem>>, vector<1x128xf32>
    %72 = vector.broadcast %71 : vector<1x128xf32> to vector<8x128xf32>
    %73 = arith.addf %70, %72 : vector<8x128xf32>
    %c0_55 = arith.constant 0 : index
    %c0_56 = arith.constant 0 : index
    %74 = vector.load %arg12[%c0_55, %c0_56] : memref<128x128xbf16, #tpu.memory_space<vmem>>, vector<128x128xbf16>
    %75 = arith.truncf %73 : vector<8x128xf32> to vector<8x128xbf16>
    %cst_57 = arith.constant dense<0.000000e+00> : vector<8x128xf32>
    %76 = tpu.matmul %75, %74, %cst_57 {dimension_numbers = #tpu.dot_dimension_numbers<[1], [0], [0], [1], [0, 0, 1, 1], [], []>} : vector<8x128xbf16>, vector<128x128xbf16>, vector<8x128xf32> -> vector<8x128xf32>
    %c0_58 = arith.constant 0 : index
    %c0_59 = arith.constant 0 : index
    %77 = vector.load %arg13[%c0_58, %c0_59] : memref<1x128xf32, #tpu.memory_space<vmem>>, vector<1x128xf32>
    %78 = vector.broadcast %77 : vector<1x128xf32> to vector<8x128xf32>
    %79 = arith.addf %76, %78 : vector<8x128xf32>
    %c0_60 = arith.constant 0 : index
    %c0_61 = arith.constant 0 : index
    %80 = vector.load %arg14[%c0_60, %c0_61] : memref<8x128xf32, #tpu.memory_space<vmem>>, vector<8x128xf32>
    tpu.vector_store %arg14[%c0_60, %c0_61], %79 {strides = array<i32>} : memref<8x128xf32, #tpu.memory_space<vmem>>, vector<8x128xf32>,
    return
  }
  func.func @transform_0(%arg0: i32) -> (i32, i32) {
    %c0_i32 = arith.constant 0 : i32
    %c0_i32_0 = arith.constant 0 : i32
    return %arg0, %c0_i32 : i32, i32
  }
  func.func @transform_1(%arg0: i32) -> (i32, i32) {
    %c0_i32 = arith.constant 0 : i32
    %c0_i32_0 = arith.constant 0 : i32
    %c0_i32_1 = arith.constant 0 : i32
    return %c0_i32, %c0_i32_0 : i32, i32
  }
  func.func @transform_2(%arg0: i32) -> (i32, i32) {
    %c0_i32 = arith.constant 0 : i32
    %c0_i32_0 = arith.constant 0 : i32
    %c0_i32_1 = arith.constant 0 : i32
    return %c0_i32, %c0_i32_0 : i32, i32
  }
  func.func @transform_3(%arg0: i32) -> (i32, i32, i32) {
    %c0_i32 = arith.constant 0 : i32
    %c0_i32_0 = arith.constant 0 : i32
    %c0_i32_1 = arith.constant 0 : i32
    %c0_i32_2 = arith.constant 0 : i32
    return %c0_i32, %c0_i32_0, %c0_i32_1 : i32, i32, i32
  }
  func.func @transform_4(%arg0: i32) -> (i32, i32) {
    %c0_i32 = arith.constant 0 : i32
    %c0_i32_0 = arith.constant 0 : i32
    %c0_i32_1 = arith.constant 0 : i32
    return %c0_i32, %c0_i32_0 : i32, i32
  }
  func.func @transform_5(%arg0: i32) -> (i32, i32) {
    %c0_i32 = arith.constant 0 : i32
    %c0_i32_0 = arith.constant 0 : i32
    %c0_i32_1 = arith.constant 0 : i32
    return %c0_i32, %c0_i32_0 : i32, i32
  }
  func.func @transform_6(%arg0: i32) -> (i32, i32, i32) {
    %c0_i32 = arith.constant 0 : i32
    %c0_i32_0 = arith.constant 0 : i32
    %c0_i32_1 = arith.constant 0 : i32
    %c0_i32_2 = arith.constant 0 : i32
    return %c0_i32, %c0_i32_0, %c0_i32_1 : i32, i32, i32
  }
  func.func @transform_7(%arg0: i32) -> (i32, i32) {
    %c0_i32 = arith.constant 0 : i32
    %c0_i32_0 = arith.constant 0 : i32
    %c0_i32_1 = arith.constant 0 : i32
    return %c0_i32, %c0_i32_0 : i32, i32
  }
  func.func @transform_8(%arg0: i32) -> (i32, i32) {
    %c0_i32 = arith.constant 0 : i32
    %c0_i32_0 = arith.constant 0 : i32
    %c0_i32_1 = arith.constant 0 : i32
    return %c0_i32, %c0_i32_0 : i32, i32
  }
  func.func @transform_9(%arg0: i32) -> (i32, i32) {
    %c0_i32 = arith.constant 0 : i32
    %c0_i32_0 = arith.constant 0 : i32
    %c0_i32_1 = arith.constant 0 : i32
    return %c0_i32, %c0_i32_0 : i32, i32
  }
  func.func @transform_10(%arg0: i32) -> (i32, i32) {
    %c0_i32 = arith.constant 0 : i32
    %c0_i32_0 = arith.constant 0 : i32
    %c0_i32_1 = arith.constant 0 : i32
    return %c0_i32, %c0_i32_0 : i32, i32
  }
  func.func @transform_11(%arg0: i32) -> (i32, i32) {
    %c0_i32 = arith.constant 0 : i32
    %c0_i32_0 = arith.constant 0 : i32
    %c0_i32_1 = arith.constant 0 : i32
    return %c0_i32, %c0_i32_0 : i32, i32
  }
  func.func @transform_12(%arg0: i32) -> (i32, i32) {
    %c0_i32 = arith.constant 0 : i32
    %c0_i32_0 = arith.constant 0 : i32
    %c0_i32_1 = arith.constant 0 : i32
    return %c0_i32, %c0_i32_0 : i32, i32
  }
  func.func @transform_13(%arg0: i32) -> (i32, i32) {
    %c0_i32 = arith.constant 0 : i32
    %c0_i32_0 = arith.constant 0 : i32
    return %arg0, %c0_i32 : i32, i32
  }
}

</mosaic_0001>

<bundles_post_ra>
// kernel: cnn_forward.1
= control target key start
LH: loop header
LB: loop body
LE: loop exit
PB: predicated region body
PF: predicated region fallthrough
CT: control target
= control target key end

     0   :  { %s7882_s0 = inlined_call_operand.vmem [shape: f32[512,32], index: 0, kind: input, shape index: {}]   ;;  %s7883_s1 = inlined_call_operand.vmem [shape: bf16[96,168], index: 1, kind: input, shape index: {}]   ;;  %s7884_s2 = inlined_call_operand.vmem [shape: f32[1,168], index: 2, kind: input, shape index: {}]   ;;  %s7885_s3 = inlined_call_operand.vmem [shape: bf16[2,168,84], index: 3, kind: input, shape index: {}]   ;;  %s7886_s4 = inlined_call_operand.vmem [shape: bf16[420,160], index: 4, kind: input, shape index: {}]   ;;  %s7887_s5 = inlined_call_operand.vmem [shape: f32[1,160], index: 5, kind: input, shape index: {}]   ;;  %s7888_s6 = inlined_call_operand.vmem [shape: bf16[2,160,80], index: 6, kind: input, shape index: {}]   ;;  %s7889_s7 = inlined_call_operand.vmem [shape: bf16[400,128], index: 7, kind: input, shape index: {}]   ;;  %s7890_s8 = inlined_call_operand.vmem [shape: f32[1,128], index: 8, kind: input, shape index: {}]   ;;  %s7891_s9 = inlined_call_operand.vmem [shape: bf16[128,128], index: 9, kind: input, shape index: {}]   ;;  %s7892_s10 = inlined_call_operand.vmem [shape: f32[1,128], index: 10, kind: input, shape index: {}]   ;;  %s7893_s11 = inlined_call_operand.vmem [shape: bf16[128,128], index: 11, kind: input, shape index: {}]   ;;  %s7894_s12 = inlined_call_operand.vmem [shape: f32[1,128], index: 12, kind: input, shape index: {}]   ;;  %s7895_s13 = inlined_call_operand.hbm [shape: f32[16,128], index: 13, kind: output, shape index: {}]  }
   0x1   :  { %7907 = sst [smem:[#allocation9_spill]] %s7882_s0 }
   0x2   :  { %7908 = sst [smem:[#allocation10_spill]] %s7883_s1 }
   0x3   :  { %7909 = sst [smem:[#allocation11_spill]] %s7884_s2 }
   0x4   :  { %18 = vsyncpa [#allocation5], 0 }
   0x5   :  { %20 = vsyncpa [#allocation5 + $0x1], 0  ;;  %s5573_s25 = smov 0   ;;  %s5575_s26 = smov 0  }
   0x6   :  { %s5577_s27 = smov 0   ;;  %s5579_s28 = smov 0  }
   0x7 LB: > { %7910 = sst [smem:[#allocation7_spill]] %s5490_s27  ;;  %s5594_s29 = sadd.s32 4294967295, %s5494_s28   ;;  %s5494_s28 = sphi %s5579_s28, %s7926_s28   ;;  %s5490_s27 = sphi %s5577_s27, %s7923_s27   ;;  %s5486_s26 = sphi %s5575_s26, %s7925_s26   ;;  %s5482_s25 = sphi %s5573_s25, %s7924_s25  }
   0x8   : > { %s4189_s30 = sadd.s32 4294967294, %s5494_s28   ;;  %s5598_s14 = sadd.s32 1, %s5494_s28  }
   0x9   : > { %s311_s15 = sadd.s32 1, %s5490_s27  ;;  %s308_s16 = ssub.s32 %s5494_s28, %s5598_s14 }
   0xa   : > { %p321_p0 = scmp.ne.s32.totalorder %s5490_s27, %s5486_s26  ;;  %p309_p1 = scmp.eq.s32.totalorder %s308_s16, 0 }
   0xb   : > { %p322_p2 = scmp.eq.s32.totalorder %s5594_s29, 1  ;;  %p327_p3 = scmp.ne.s32.totalorder %s5486_s26, %s5482_s25 }
   0xc   : > { %p328_p4 = scmp.eq.s32.totalorder %s4189_s30, 1  ;;  %p4192_p7 = scmp.ge.s32.totalorder %s5494_s28, 1 }
   0xd   : > { %s5609_s17 = scalar_select %p309_p1, %s5490_s27, %s311_s15  }
   0xe   : > { %p5611_p5 = por %p322_p2, %p321_p0  ;;  %p5615_p6 = por %p328_p4, %p327_p3 }
   0xf   : > { %7911 = sst [smem:[#allocation8_spill]] %s5609_s17  ;;  %p391_p8 = scmp.lt.s32.totalorder %s5494_s28, 3 }
  0x11   : > { %p392_p9 = pnand %p4192_p7, %p391_p8 }
  0x12   : > { %s4194_s20 = sshll.u32 (!%p392_p9), %s5594_s29, 5  ;;  %s7914_s0 = sld [smem:[#allocation9_spill]] (!%p392_p9) }
  0x13   : > { %395 = sbr.rel (%p392_p9) target bundleno = 2167 (0x877), region = 72  ;;  %p436_p10 = scmp.lt.s32.totalorder (!%p392_p9), %s4194_s20, 63 }
  0x14   : > { %s7896_s30 = smov (!%p392_p9), 32   ;;  %s7915_s1 = sld [smem:[#allocation10_spill]] (!%p392_p9) }
  0x15   : > { %s7918_s2 = sld [smem:[#allocation11_spill]] (!%p392_p9)  ;;  %s7903_s16 = smov (!%p392_p9), 124  }
  0x16   : > { %s7901_s27 = smov (!%p392_p9), 40   ;;  %s432_s17 = sand.u32 (!%p392_p9), 1, %s5486_s26  }
  0x18   : > { %s7928_s20 = smov (!%p436_p10, %s4194_s20), 63  ;;  %vm506_vm0 = vcmask 1046528   ;;  %vm666_vm1 = vcmask 1045504   ;;  %vm826_vm2 = vcmask 261120   ;;  %vm859_vm3 = vcmask 523264  }
  0x19   : > { %s4195_s21 = sshll.u32 %s7928_s20, 3  ;;  %s7898_s20 = smov 64   ;;  %vm986_vm4 = vcmask 785408   ;;  %vm1378_vm5 = vcmask 1043456   ;;  %vm1329_vm6 = vcmask 326656   ;;  %vm1858_vm7 = vcmask 687104  }
  0x1a   : > { %s5625_s24 = scalar_lea.vmem %s7914_s0, %s4195_s21  ;;  %v4238_v44 = vld [vmem:[%s7915_s1 + $0x50] sm:$0xf]  ;;  %v4929_v45 = vld [vmem:[%s7915_s1 + $0x54] sm:$0xf0]  ;;  %v4928_v46 = vld [vmem:[%s7915_s1 + $0x54] sm:$0xf] }
  0x1b   : > { %v5628_v0 = vld [vmem:[%s5625_s24] sm:$0xff]  ;;  %v5631_v1 = vld [vmem:[%s5625_s24 + $0x8] sm:$0xff]  ;;  %v5634_v2 = vld [vmem:[%s5625_s24 + $0x10] sm:$0xff]  ;;  %v4239_v58 = vor.u32 %v4929_v45, %v4238_v44  ;;  %vm2145_vm8 = vcmask 1044480   ;;  %s7905_s21 = smov 84   ;;  %vm2336_vm9 = vcmask 1014784  }
  0x1c   : > { %v507_v3 = vrot.slane %v5628_v0, 1  ;;  %v508_v4 = vrot.slane %v5631_v1, 1  ;;  %v510_v5 = vrot.slane %v5634_v2, 1  ;;  %v5640_v6 = vld [vmem:[%s5625_s24 + $0x18] sm:$0xff]  ;;  %v5643_v7 = vld [vmem:[%s5625_s24 + $0x20] sm:$0xff]  ;;  %v667_v8 = vrot.slane %v5628_v0, 2 }
  0x1d   : > { %v512_v9 = vrot.slane %v5640_v6, 1  ;;  %v514_v10 = vrot.slane %v5643_v7, 1  ;;  %v668_v13 = vrot.slane %v5631_v1, 2  ;;  %v670_v14 = vrot.slane %v5634_v2, 2  ;;  %v5653_v15 = vld [vmem:[%s5625_s24 + $0x28] sm:$0xff]  ;;  %v5656_v16 = vld [vmem:[%s5625_s24 + $0x30] sm:$0xff]  ;;  %1037 = vmatpush.bf16.msra.mxu0 %v4239_v58 }
  0x1e   : > { %v509_v11 = vsel %vm506_vm0, %v507_v3, %v508_v4  ;;  %v511_v12 = vsel %vm506_vm0, %v508_v4, %v510_v5  ;;  %v672_v20 = vrot.slane %v5640_v6, 2  ;;  %v674_v21 = vrot.slane %v5643_v7, 2  ;;  %v5671_v29 = vld [vmem:[%s5625_s24 + $0x38] sm:$0xff]  ;;  %v5674_v30 = vld [vmem:[%s5625_s24 + $0x40] sm:$0xff]  ;;  %v5703_v51 = vld [vmem:[%s5625_s24 + $0x48] sm:$0xff] }
  0x1f   : > { %v5109_v17 = vpack.i.bf16 %v511_v12, %v509_v11  ;;  %v513_v18 = vsel %vm506_vm0, %v510_v5, %v512_v9  ;;  %v515_v19 = vsel %vm506_vm0, %v512_v9, %v514_v10  ;;  %v516_v23 = vrot.slane %v5653_v15, 1  ;;  %v4240_v47 = vld [vmem:[%s7915_s1 + $0x58] sm:$0xf0]  ;;  %v5707_v52 = vld [vmem:[%s5625_s24 + $0x50] sm:$0xff]  ;;  %v4230_v54 = vld [vmem:[%s7915_s1 + $0x40] sm:$0xf] }
  0x20   : > { %v5119_v22 = vpack.i.bf16 %v515_v19, %v513_v18  ;;  %v518_v24 = vrot.slane %v5656_v16, 1  ;;  %v669_v25 = vsel %vm666_vm1, %v667_v8, %v668_v13  ;;  %v671_v26 = vsel %vm666_vm1, %v668_v13, %v670_v14  ;;  %v4927_v55 = vld [vmem:[%s7915_s1 + $0x44] sm:$0xf0]  ;;  %v4926_v60 = vld [vmem:[%s7915_s1 + $0x44] sm:$0xf]  ;;  %v5725_v63 = vld [vmem:[%s5625_s24 + $0x58] sm:$0xff] }
  0x21   : > { %5110 = vrot.lane.b32.xlu0 %v5109_v17, %s7896_s30  ;;  %v517_v27 = vsel %vm506_vm0, %v514_v10, %v516_v23  ;;  %v678_v31 = vrot.slane %v5656_v16, 2  ;;  %v676_v32 = vrot.slane %v5653_v15, 2  ;;  %v673_v33 = vsel %vm666_vm1, %v670_v14, %v672_v20  ;;  %v4232_v61 = vld [vmem:[%s7915_s1 + $0x48] sm:$0xf0]  ;;  %v5728_v3 = vld [vmem:[%s5625_s24 + $0x60] sm:$0xff] }
  0x22   : > { %5120 = vrot.lane.b32.xlu1 %v5119_v22, %s7896_s30  ;;  %v519_v28 = vsel %vm506_vm0, %v516_v23, %v518_v24  ;;  %v675_v34 = vsel %vm666_vm1, %v672_v20, %v674_v21  ;;  %v5114_v36 = vpack.i.bf16 %v671_v26, %v669_v25  ;;  %v520_v37 = vrot.slane %v5671_v29, 1  ;;  %v4222_v14 = vld [vmem:[%s7915_s1 + $0x30] sm:$0xf]  ;;  %v4925_v17 = vld [vmem:[%s7915_s1 + $0x34] sm:$0xf0]  ;;  %v5755_v26 = vld [vmem:[%s5625_s24 + $0x68] sm:$0xff] }
  0x23   : > { %v5129_v35 = vpack.i.bf16 %v519_v28, %v517_v27  ;;  %v522_v38 = vrot.slane %v5674_v30, 1  ;;  %v5124_v39 = vpack.i.bf16 %v675_v34, %v673_v33  ;;  %v677_v40 = vsel %vm666_vm1, %v674_v21, %v676_v32  ;;  %v4924_v20 = vld [vmem:[%s7915_s1 + $0x34] sm:$0xf]  ;;  %v4224_v21 = vld [vmem:[%s7915_s1 + $0x38] sm:$0xf0]  ;;  %v5796_v58 = vld [vmem:[%s5625_s24 + $0x80] sm:$0xff] }
  0x24   : > { %v679_v41 = vsel %vm666_vm1, %v676_v32, %v678_v31  ;;  %v680_v42 = vrot.slane %v5671_v29, 2  ;;  %v682_v43 = vrot.slane %v5674_v30, 2  ;;  %v521_v48 = vsel %vm506_vm0, %v518_v24, %v520_v37  ;;  %v5758_v27 = vld [vmem:[%s5625_s24 + $0x70] sm:$0xff] }
  0x25   : > { %5130 = vrot.lane.b32.xlu2 %v5129_v35, %s7896_s30  ;;  %v523_v49 = vsel %vm506_vm0, %v520_v37, %v522_v38  ;;  %v5134_v50 = vpack.i.bf16 %v679_v41, %v677_v40  ;;  %v524_v53 = vrot.slane %v5703_v51, 1  ;;  %v4243_v59 = vor.u32 %v4928_v46, %v4240_v47  ;;  %s7917_s30 = smov 64  }
  0x26   : > { %v681_v56 = vsel %vm666_vm1, %v678_v31, %v680_v42  ;;  %v683_v57 = vsel %vm666_vm1, %v680_v42, %v682_v43  ;;  %v5139_v62 = vpack.i.bf16 %v523_v49, %v521_v48  ;;  %v526_v4 = vrot.slane %v5707_v52, 1 }
  0x27   : > { %v684_v5 = vrot.slane %v5703_v51, 2  ;;  %v686_v8 = vrot.slane %v5707_v52, 2  ;;  %v4231_v9 = vor.u32 %v4927_v55, %v4230_v54  ;;  %v5144_v10 = vpack.i.bf16 %v683_v57, %v681_v56  ;;  %1126 = vmatpush.bf16.msra.mxu1 %v4243_v59  ;;  %v4922_v54 = vld [vmem:[%s7915_s1 + $0x24] sm:$0xf]  ;;  %v4216_v56 = vld [vmem:[%s7915_s1 + $0x28] sm:$0xf0] }
  0x28   : > { %v525_v11 = vsel %vm506_vm0, %v522_v38, %v524_v53  ;;  %v527_v12 = vsel %vm506_vm0, %v524_v53, %v526_v4  ;;  %v4235_v13 = vor.u32 %v4926_v60, %v4232_v61  ;;  %v528_v18 = vrot.slane %v5725_v63, 1  ;;  %v4923_v53 = vld [vmem:[%s7915_s1 + $0x24] sm:$0xf0]  ;;  %v5793_v57 = vld [vmem:[%s5625_s24 + $0x78] sm:$0xff] }
  0x29   : > { %5115 = vrot.lane.b32.xlu0 %v5114_v36, %s7898_s20  ;;  %v530_v19 = vrot.slane %v5728_v3, 1  ;;  %v685_v22 = vsel %vm666_vm1, %v682_v43, %v684_v5  ;;  %v687_v23 = vsel %vm666_vm1, %v684_v5, %v686_v8  ;;  %v5149_v24 = vpack.i.bf16 %v527_v12, %v525_v11  ;;  %1038 = vmatpush.bf16.msra.mxu0 %v4231_v9  ;;  %v4920_v5 = vld [vmem:[%s7915_s1 + $0x14] sm:$0xf]  ;;  %v4208_v11 = vld [vmem:[%s7915_s1 + $0x18] sm:$0xf0] }
  0x2a   : > { %5125 = vrot.lane.b32.xlu1 %v5124_v39, %s7898_s20  ;;  %v4223_v25 = vor.u32 %v4925_v17, %v4222_v14  ;;  %v688_v28 = vrot.slane %v5725_v63, 2  ;;  %v4227_v31 = vor.u32 %v4924_v20, %v4224_v21  ;;  %v529_v32 = vsel %vm506_vm0, %v526_v4, %v528_v18  ;;  %v4921_v4 = vld [vmem:[%s7915_s1 + $0x14] sm:$0xf0]  ;;  %v4198_v14 = vld [vmem:[%s7915_s1] sm:$0xf] }
  0x2b   : > { %1127 = vmatpush.bf16.msra.mxu1 %v4235_v13  ;;  %v531_v33 = vsel %vm506_vm0, %v528_v18, %v530_v19  ;;  %v5154_v34 = vpack.i.bf16 %v687_v23, %v685_v22  ;;  %v690_v35 = vrot.slane %v5728_v3, 2  ;;  %v532_v36 = vrot.slane %v5755_v26, 1  ;;  %v4919_v17 = vld [vmem:[%s7915_s1 + $0x4] sm:$0xf0]  ;;  %v4918_v18 = vld [vmem:[%s7915_s1 + $0x4] sm:$0xf] }
  0x2c   : > { %v534_v37 = vrot.slane %v5758_v27, 1  ;;  %v5159_v38 = vpack.i.bf16 %v531_v33, %v529_v32  ;;  %v689_v39 = vsel %vm666_vm1, %v686_v8, %v688_v28  ;;  %v692_v41 = vrot.slane %v5755_v26, 2  ;;  %v4200_v20 = vld [vmem:[%s7915_s1 + $0x8] sm:$0xf0]  ;;  %v5831_v23 = vld [vmem:[%s5625_s24 + $0x90] sm:$0xff] }
  0x2d   : > { %5135 = vrot.lane.b32.xlu2 %v5134_v50, %s7898_s20  ;;  %s7916_s20 = smov 32   ;;  %1039 = vmatpush.bf16.msra.mxu0 %v4223_v25  ;;  %v691_v40 = vsel %vm666_vm1, %v688_v28, %v690_v35  ;;  %v694_v42 = vrot.slane %v5758_v27, 2  ;;  %v533_v43 = vsel %vm506_vm0, %v530_v19, %v532_v36  ;;  %v4214_v50 = vld [vmem:[%s7915_s1 + $0x20] sm:$0xf]  ;;  %v4219_v59 = vor.u32 %v4922_v54, %v4216_v56  ;;  %v5828_v22 = vld [vmem:[%s5625_s24 + $0x88] sm:$0xff] }
  0x2e   : > { %v535_v44 = vsel %vm506_vm0, %v532_v36, %v534_v37  ;;  %v5164_v45 = vpack.i.bf16 %v691_v40, %v689_v39  ;;  %v693_v46 = vsel %vm666_vm1, %v690_v35, %v692_v41  ;;  %v4215_v55 = vor.u32 %v4923_v53, %v4214_v50  ;;  %v5844_v39 = vld [vmem:[%s5625_s24 + $0x98] sm:$0xff]  ;;  %v5847_v40 = vld [vmem:[%s5625_s24 + $0xa0] sm:$0xff] }
  0x2f   : > { %1128 = vmatpush.bf16.msra.mxu1 %v4227_v31  ;;  %v695_v47 = vsel %vm666_vm1, %v692_v41, %v694_v42  ;;  %v5169_v48 = vpack.i.bf16 %v535_v44, %v533_v43  ;;  %v696_v60 = vrot.slane %v5793_v57, 2  ;;  %v698_v61 = vrot.slane %v5796_v58, 2 }
  0x30   : > { %v5174_v49 = vpack.i.bf16 %v695_v47, %v693_v46  ;;  %v4211_v13 = vor.u32 %v4920_v5, %v4208_v11  ;;  %v4199_v19 = vor.u32 %v4919_v17, %v4198_v14  ;;  %v4203_v21 = vor.u32 %v4918_v18, %v4200_v20  ;;  %v5873_v14 = vld [vmem:[%s5625_s24 + $0xa8] sm:$0xff]  ;;  %v5876_v17 = vld [vmem:[%s5625_s24 + $0xb0] sm:$0xff] }
  0x31   : > { %5140 = vrot.lane.b32.xlu0 %v5139_v62, %s7916_s20  ;;  %1040 = vmatpush.bf16.msra.mxu0 %v4215_v55  ;;  %v4206_v62 = vld [vmem:[%s7915_s1 + $0x10] sm:$0xf]  ;;  %v697_v8 = vsel %vm666_vm1, %v694_v42, %v696_v60  ;;  %v699_v9 = vsel %vm666_vm1, %v696_v60, %v698_v61  ;;  %v536_v25 = vrot.slane %v5793_v57, 1  ;;  %v540_v28 = vrot.slane %v5828_v22, 1  ;;  %s5452_s1 = scalar_lea.hbm %s7895_s13, 16 }
  0x32   : > { %5145 = vrot.lane.b32.xlu1 %v5144_v10, %s7917_s30  ;;  %v4207_v10 = vor.u32 %v4921_v4, %v4206_v62  ;;  %v5184_v12 = vpack.i.bf16 %v699_v9, %v697_v8  ;;  %v542_v31 = vrot.slane %v5831_v23, 1  ;;  %v702_v41 = vrot.slane %v5831_v23, 2 }
  0x33   : > { %1129 = vmatpush.bf16.msra.mxu1 %v4219_v59  ;;  %v537_v32 = vsel %vm506_vm0, %v534_v37, %v536_v25  ;;  %v700_v37 = vrot.slane %v5828_v22, 2  ;;  %v544_v42 = vrot.slane %v5844_v39, 1  ;;  %v546_v43 = vrot.slane %v5847_v40, 1 }
  0x34   : > { %v543_v35 = vsel %vm506_vm0, %v540_v28, %v542_v31  ;;  %v706_v46 = vrot.slane %v5847_v40, 2  ;;  %v708_v18 = vrot.slane %v5873_v14, 2  ;;  %vm1890_vm10 = vcmask 683008  }
  0x35   : > { %5150 = vrot.lane.b32.xlu2 %v5149_v24, %s7916_s20  ;;  %1041 = vmatpush.bf16.msra.mxu0 %v4207_v10  ;;  %v538_v24 = vrot.slane %v5796_v58, 1  ;;  %v701_v47 = vsel %vm666_vm1, %v698_v61, %v700_v37  ;;  %v547_v50 = vsel %vm506_vm0, %v544_v42, %v546_v43  ;;  %vm2751_vm11 = vcmask 1041408  }
  0x36   : > { %vm2353_vm12 = vcmask 654336   ;;  %vm2726_vm13 = vcmask 293888   ;;  %vm3578_vm14 = vcmask 648192   ;;  %vm3682_vm15 = vcmask 916480  }
  0x37   : > { %1130 = vmatpush.bf16.msra.mxu1 %v4211_v13  ;;  %v539_v33 = vsel %vm506_vm0, %v536_v25, %v538_v24 }
  0x39   : > { %5155 = vrot.lane.b32.xlu0 %v5154_v34, %s7917_s30  ;;  %1042 = vmatpush.bf16.msra.mxu0 %v4199_v19  ;;  %v541_v34 = vsel %vm506_vm0, %v538_v24, %v540_v28 }
  0x3a   : > { %5160 = vrot.lane.b32.xlu1 %v5159_v38, %s7916_s20  ;;  %v5189_v36 = vpack.i.bf16 %v543_v35, %v541_v34  ;;  %v5179_v38 = vpack.i.bf16 %v539_v33, %v537_v32 }
  0x3b   : > { %1131 = vmatpush.bf16.msra.mxu1 %v4203_v21 }
  0x3d   : > { %5165 = vrot.lane.b32.xlu2 %v5164_v45, %s7917_s30  ;;  %v704_v45 = vrot.slane %v5844_v39, 2 }
  0x3f   : > { %v705_v54 = vsel %vm666_vm1, %v702_v41, %v704_v45  ;;  %v707_v55 = vsel %vm666_vm1, %v704_v45, %v706_v46 }
  0x40   : > { %v5204_v59 = vpack.i.bf16 %v707_v55, %v705_v54 }
  0x41   : > { %5170 = vrot.lane.b32.xlu0 %v5169_v48, %s7916_s20  ;;  %v703_v48 = vsel %vm666_vm1, %v700_v37, %v702_v41  ;;  %v5894_v41 = vld [vmem:[%s5625_s24 + $0xb8] sm:$0xff]  ;;  %v5897_v37 = vld [vmem:[%s5625_s24 + $0xc0] sm:$0xff] }
  0x42   : > { %5175 = vrot.lane.b32.xlu1 %v5174_v49, %s7917_s30  ;;  %v545_v49 = vsel %vm506_vm0, %v542_v31, %v544_v42  ;;  %v5194_v56 = vpack.i.bf16 %v703_v48, %v701_v47  ;;  %v550_v42 = vrot.slane %v5876_v17, 1 }
  0x43   : > { %v5199_v53 = vpack.i.bf16 %v547_v50, %v545_v49 }
  0x45   : > { %5180 = vrot.lane.b32.xlu2 %v5179_v38, %s7916_s20 }
  0x49   : > { %5185 = vrot.lane.b32.xlu0 %v5184_v12, %s7917_s30 }
  0x4a   : > { %5190 = vrot.lane.b32.xlu1 %v5189_v36, %s7916_s20 }
  0x4d   : > { %5195 = vrot.lane.b32.xlu2 %v5194_v56, %s7917_s30 }
  0x51   : > { %5200 = vrot.lane.b32.xlu0 %v5199_v53, %s7916_s20 }
  0x52   : > { %5205 = vrot.lane.b32.xlu1 %v5204_v59, %s7917_s30 }
  0x7f   : > { %v5131_v34 = vpop.permute.xlu2 %5130 }
  0x80   : > { %v5133_v49 = vunpack.i.h.bf16 %v5131_v34  ;;  %v5132_v50 = vunpack.i.l.bf16 %v5131_v34 }
  0x87   : > { %v5136_v53 = vpop.permute.xlu2 %5135 }
  0x88   : > { %v5138_v56 = vunpack.i.h.bf16 %v5136_v53  ;;  %v5137_v59 = vunpack.i.l.bf16 %v5136_v53 }
  0x93   : > { %v5111_v44 = vpop.permute.xlu0 %5110 }
  0x94   : > { %v5113_v60 = vunpack.i.h.bf16 %v5111_v44  ;;  %v5112_v62 = vunpack.i.l.bf16 %v5111_v44  ;;  %v5121_v4 = vpop.permute.xlu1 %5120  ;;  %v554_v44 = vrot.slane %v5897_v37, 1 }
  0x95   : > { %v5123_v20 = vunpack.i.h.bf16 %v5121_v4  ;;  %v5122_v21 = vunpack.i.l.bf16 %v5121_v4 }
  0x96   : > { %v828_v9 = vsel %vm826_vm2, %v5631_v1, %v5113_v60  ;;  %v827_v10 = vsel %vm826_vm2, %v5628_v0, %v5112_v62  ;;  %v710_v1 = vrot.slane %v5876_v17, 2  ;;  %v709_v0 = vsel %vm666_vm1, %v706_v46, %v708_v18 }
  0x97   : > { %v830_v32 = vsel %vm826_vm2, %v5640_v6, %v5123_v20  ;;  %v829_v33 = vsel %vm826_vm2, %v5634_v2, %v5122_v21  ;;  %v548_v6 = vrot.slane %v5873_v14, 1  ;;  %v552_v2 = vrot.slane %v5894_v41, 1 }
  0x98   : > { %v711_v19 = vsel %vm666_vm1, %v708_v18, %v710_v1  ;;  %v831_v60 = vsel %vm826_vm2, %v5643_v7, %v5132_v50 }
  0x99   : > { %v5214_v25 = vpack.i.bf16 %v711_v19, %v709_v0  ;;  %v549_v45 = vsel %vm506_vm0, %v546_v43, %v548_v6  ;;  %v551_v46 = vsel %vm506_vm0, %v548_v6, %v550_v42  ;;  %v553_v47 = vsel %vm506_vm0, %v550_v42, %v552_v2 }
  0x9a   : > { %v555_v48 = vsel %vm506_vm0, %v552_v2, %v554_v44  ;;  %v5209_v55 = vpack.i.bf16 %v551_v46, %v549_v45  ;;  %v832_v43 = vsel %vm826_vm2, %v5653_v15, %v5133_v49  ;;  %v864_v62 = vsel %vm859_vm3, %v831_v60, %v5137_v59 }
  0x9b   : > { %v5116_v61 = vpop.permute.xlu0 %5115  ;;  %5215 = vrot.lane.b32.xlu0 %v5214_v25, %s7917_s30  ;;  %v5219_v54 = vpack.i.bf16 %v555_v48, %v553_v47  ;;  %v712_v15 = vrot.slane %v5894_v41, 2 }
  0x9c   : > { %v5118_v5 = vunpack.i.h.bf16 %v5116_v61  ;;  %v5117_v8 = vunpack.i.l.bf16 %v5116_v61  ;;  %v5126_v24 = vpop.permute.xlu1 %5125  ;;  %5210 = vrot.lane.b32.xlu2 %v5209_v55, %s7916_s20  ;;  %v865_v61 = vsel %vm859_vm3, %v832_v43, %v5138_v56 }
  0x9d   : > { %v5128_v28 = vunpack.i.h.bf16 %v5126_v24  ;;  %v5127_v31 = vunpack.i.l.bf16 %v5126_v24  ;;  %5220 = vrot.lane.b32.xlu1 %v5219_v54, %s7916_s20  ;;  %v906_v4 = vpack.c.bf16 %v865_v61, %v864_v62  ;;  %v713_v34 = vsel %vm666_vm1, %v710_v1, %v712_v15 }
  0x9e   : > { %v860_v11 = vsel %vm859_vm3, %v827_v10, %v5117_v8  ;;  %v861_v12 = vsel %vm859_vm3, %v828_v9, %v5118_v5  ;;  %v5918_v8 = vld [vmem:[%s5625_s24 + $0xc8] sm:$0xff]  ;;  %v5921_v9 = vld [vmem:[%s5625_s24 + $0xd0] sm:$0xff]  ;;  %v714_v10 = vrot.slane %v5897_v37, 2 }
  0x9f   : > { %v904_v13 = vpack.c.bf16 %v861_v12, %v860_v11  ;;  %v862_v35 = vsel %vm859_vm3, %v829_v33, %v5127_v31  ;;  %v863_v36 = vsel %vm859_vm3, %v830_v32, %v5128_v28  ;;  %v556_v7 = vrot.slane %v5918_v8, 1 }
  0xa0   : > { %v905_v38 = vpack.c.bf16 %v863_v36, %v862_v35  ;;  %v558_v11 = vrot.slane %v5921_v9, 1  ;;  %v716_v12 = vrot.slane %v5918_v8, 2  ;;  %v715_v35 = vsel %vm666_vm1, %v712_v15, %v714_v10 }
  0xa1   : > { %4244 = vmatmul.msk.bf16.vlgmr.msra.gmra.mxu0 %vm986_vm4, %v904_v13  ;;  %4260 = vmatmul.msk.bf16.vlgmr.msra.gmra.mxu1 %vm986_vm4, %v904_v13  ;;  %v718_v13 = vrot.slane %v5921_v9, 2  ;;  %v557_v20 = vsel %vm506_vm0, %v554_v44, %v556_v7  ;;  %v5224_v42 = vpack.i.bf16 %v715_v35, %v713_v34  ;;  %v5151_v44 = vpop.permute.xlu2 %5150 }
  0xa2   : > { %v559_v21 = vsel %vm506_vm0, %v556_v7, %v558_v11  ;;  %v717_v24 = vsel %vm666_vm1, %v714_v10, %v716_v12  ;;  %v5153_v47 = vunpack.i.h.bf16 %v5151_v44  ;;  %v5152_v48 = vunpack.i.l.bf16 %v5151_v44  ;;  %v5973_v10 = vld [vmem:[%s5625_s24 + $0xf0] sm:$0xff] }
  0xa3   : > { %v5141_v5 = vpop.permute.xlu0 %5140  ;;  %v719_v25 = vsel %vm666_vm1, %v716_v12, %v718_v13  ;;  %v5229_v28 = vpack.i.bf16 %v559_v21, %v557_v20  ;;  %v566_v12 = vrot.slane %v5973_v10, 1 }
  0xa4   : > { %v5143_v18 = vunpack.i.h.bf16 %v5141_v5  ;;  %v5142_v0 = vunpack.i.l.bf16 %v5141_v5  ;;  %v5146_v19 = vpop.permute.xlu1 %5145  ;;  %v5234_v31 = vpack.i.bf16 %v719_v25, %v717_v24  ;;  %5225 = vrot.lane.b32.xlu2 %v5224_v42, %s7917_s30  ;;  %v836_v59 = vsel %vm826_vm2, %v5703_v51, %v5153_v47  ;;  %v5970_v5 = vld [vmem:[%s5625_s24 + $0xe8] sm:$0xff] }
  0xa5   : > { %v5148_v32 = vunpack.i.h.bf16 %v5146_v19  ;;  %v5147_v33 = vunpack.i.l.bf16 %v5146_v19  ;;  %5230 = vrot.lane.b32.xlu0 %v5229_v28, %s7916_s20  ;;  %v835_v43 = vsel %vm826_vm2, %v5674_v30, %v5152_v48  ;;  %v4937_v30 = vld [vmem:[%s7885_s3 + $0x38] sm:$0xff]  ;;  %v564_v7 = vrot.slane %v5970_v5, 1  ;;  %v4936_v19 = vld [vmem:[%s7885_s3 + $0x30] sm:$0xff]  ;;  %v4934_v48 = vld [vmem:[%s7885_s3 + $0x20] sm:$0xff] }
  0xa6   : > { %v834_v36 = vsel %vm826_vm2, %v5671_v29, %v5143_v18  ;;  %5235 = vrot.lane.b32.xlu1 %v5234_v31, %s7917_s30  ;;  %v5949_v29 = vld [vmem:[%s5625_s24 + $0xd8] sm:$0xff]  ;;  %1382 = vmatpush.bf16.msra.mxu2 %v4937_v30 }
  0xa7   : > { %v867_v2 = vsel %vm859_vm3, %v834_v36, %v5148_v32  ;;  %v720_v45 = vrot.slane %v5949_v29, 2  ;;  %v560_v15 = vrot.slane %v5949_v29, 1  ;;  %v567_v25 = vsel %vm506_vm0, %v564_v7, %v566_v12 }
  0xa9   : > { %v721_v50 = vsel %vm666_vm1, %v718_v13, %v720_v45  ;;  %v561_v20 = vsel %vm506_vm0, %v558_v11, %v560_v15 }
  0xaa   : > { %1383 = vmatpush.bf16.msra.mxu2 %v4936_v19  ;;  %v4931_v19 = vld [vmem:[%s7885_s3 + $0x8] sm:$0xff] }
  0xab   : > { %v5156_v49 = vpop.permute.xlu0 %5155 }
  0xac   : > { %v5158_v55 = vunpack.i.h.bf16 %v5156_v49  ;;  %v5157_v56 = vunpack.i.l.bf16 %v5156_v49 }
  0xae   : > { %v868_v60 = vsel %vm859_vm3, %v835_v43, %v5157_v56  ;;  %v869_v62 = vsel %vm859_vm3, %v836_v59, %v5158_v55 }
  0xaf   : > { %v908_v61 = vpack.c.bf16 %v869_v62, %v868_v60  ;;  %v4933_v60 = vld [vmem:[%s7885_s3 + $0x18] sm:$0xff] }
  0xb1   : > { %4245 = vmatmul.msk.bf16.gmra.mxu0 %vm986_vm4, %v905_v38  ;;  %4261 = vmatmul.msk.bf16.gmra.mxu1 %vm986_vm4, %v905_v38  ;;  %v833_v38 = vsel %vm826_vm2, %v5656_v16, %v5142_v0  ;;  %v5952_v16 = vld [vmem:[%s5625_s24 + $0xe0] sm:$0xff]  ;;  %v5166_v0 = vpop.permute.xlu2 %5165 }
  0xb2   : > { %v866_v6 = vsel %vm859_vm3, %v833_v38, %v5147_v33  ;;  %v722_v46 = vrot.slane %v5952_v16, 2  ;;  %v562_v51 = vrot.slane %v5952_v16, 1  ;;  %v5168_v32 = vunpack.i.h.bf16 %v5166_v0 }
  0xb3   : > { %v907_v1 = vpack.c.bf16 %v867_v2, %v866_v6  ;;  %v5167_v33 = vunpack.i.l.bf16 %v5166_v0  ;;  %v5171_v42 = vpop.permute.xlu0 %5170  ;;  %v726_v6 = vrot.slane %v5973_v10, 2 }
  0xb4   : > { %v723_v53 = vsel %vm666_vm1, %v720_v45, %v722_v46  ;;  %v563_v21 = vsel %vm506_vm0, %v560_v15, %v562_v51  ;;  %v565_v24 = vsel %vm506_vm0, %v562_v51, %v564_v7  ;;  %v5173_v44 = vunpack.i.h.bf16 %v5171_v42  ;;  %v4932_v15 = vld [vmem:[%s7885_s3 + $0x10] sm:$0xff] }
  0xb5   : > { %v5244_v54 = vpack.i.bf16 %v723_v53, %v721_v50  ;;  %v5249_v28 = vpack.i.bf16 %v567_v25, %v565_v24  ;;  %v5239_v31 = vpack.i.bf16 %v563_v21, %v561_v20  ;;  %v5172_v45 = vunpack.i.l.bf16 %v5171_v42 }
  0xb6   : > { %v840_v59 = vsel %vm826_vm2, %v5755_v26, %v5173_v44  ;;  %v1233_v26 = vld [vmem:[%s7885_s3 + $0x50] sm:$0xf] }
  0xb7   : > { %5245 = vrot.lane.b32.xlu0 %v5244_v54, %s7917_s30  ;;  %5250 = vrot.lane.b32.xlu1 %v5249_v28, %s7916_s20  ;;  %v839_v43 = vsel %vm826_vm2, %v5728_v3, %v5172_v45  ;;  %v724_v3 = vrot.slane %v5970_v5, 2 }
  0xb8   : > { %5240 = vrot.lane.b32.xlu2 %v5239_v31, %s7916_s20  ;;  %v4930_v31 = vld [vmem:[%s7885_s3] sm:$0xff] }
  0xb9   : > { %v725_v7 = vsel %vm666_vm1, %v722_v46, %v724_v3  ;;  %v5181_v0 = vpop.permute.xlu2 %5180  ;;  %v4939_v46 = vld [vmem:[%s7885_s3 + $0x48] sm:$0xff] }
  0xba   : > { %v5183_v20 = vunpack.i.h.bf16 %v5181_v0  ;;  %v5182_v21 = vunpack.i.l.bf16 %v5181_v0 }
  0xbb   : > { %v5186_v24 = vpop.permute.xlu0 %5185 }
  0xbc   : > { %v5188_v25 = vunpack.i.h.bf16 %v5186_v24  ;;  %v5187_v28 = vunpack.i.l.bf16 %v5186_v24 }
  0xc1   : > { %4246 = vmatmul.msk.bf16.gmra.mxu0 %vm986_vm4, %v906_v4  ;;  %4262 = vmatmul.msk.bf16.gmra.mxu1 %vm986_vm4, %v906_v4  ;;  %v5161_v4 = vpop.permute.xlu1 %5160 }
  0xc2   : > { %v5163_v13 = vunpack.i.h.bf16 %v5161_v4  ;;  %v5162_v18 = vunpack.i.l.bf16 %v5161_v4  ;;  %v1307_v4 = vunpack.c.l.b16 %v1233_v26 }
  0xc4   : > { %v838_v34 = vsel %vm826_vm2, %v5725_v63, %v5163_v13  ;;  %v837_v35 = vsel %vm826_vm2, %v5707_v52, %v5162_v18  ;;  %v4935_v63 = vld [vmem:[%s7885_s3 + $0x28] sm:$0xff]  ;;  %v6003_v52 = vld [vmem:[%s5625_s24 + $0xf8] sm:$0xff]  ;;  %v1318_v30 = vpack.c.b16 %v1307_v4, %v1307_v4  ;;  %s7921_s24 = smov 84  }
  0xc5   : > { %v870_v11 = vsel %vm859_vm3, %v837_v35, %v5167_v33  ;;  %v871_v36 = vsel %vm859_vm3, %v838_v34, %v5168_v32  ;;  %v568_v2 = vrot.slane %v6003_v52, 1  ;;  %1384 = vmatpush.bf16.msra.mxu2 %v4935_v63  ;;  %v4938_v32 = vld [vmem:[%s7885_s3 + $0x40] sm:$0xff]  ;;  %v842_v33 = vsel %vm826_vm2, %v5793_v57, %v5183_v20  ;;  %v4947_v35 = vld [vmem:[%s7885_s3 + $0x8c] sm:$0xff] }
  0xc6   : > { %v909_v38 = vpack.c.bf16 %v871_v36, %v870_v11  ;;  %v1380_v13 = vsel %vm1378_vm5, %v1318_v30, 0  ;;  %v841_v34 = vsel %vm826_vm2, %v5758_v27, %v5182_v21  ;;  %v875_v36 = vsel %vm859_vm3, %v842_v33, %v5188_v25  ;;  %v4352_v27 = vld [vmem:[%s7885_s3 + $0xa4] sm:$0xf] }
  0xc7   : > { %v569_v49 = vsel %vm506_vm0, %v566_v12, %v568_v2  ;;  %v727_v12 = vsel %vm666_vm1, %v724_v3, %v726_v6  ;;  %1476 = vmatpush.bf16.msra.mxu3 %v1380_v13  ;;  %v874_v11 = vsel %vm859_vm3, %v841_v34, %v5187_v28  ;;  %v1623_v57 = vunpack.c.l.b16 %v4352_v27 }
  0xc8   : > { %v5259_v53 = vpack.i.bf16 %v568_v2, %v569_v49  ;;  %v5254_v18 = vpack.i.bf16 %v727_v12, %v725_v7  ;;  %v5196_v2 = vpop.permute.xlu2 %5195 }
  0xc9   : > { %v5176_v47 = vpop.permute.xlu1 %5175  ;;  %1385 = vmatpush.bf16.msra.mxu2 %v4934_v48  ;;  %v5198_v44 = vunpack.i.h.bf16 %v5196_v2  ;;  %v5197_v45 = vunpack.i.l.bf16 %v5196_v2 }
  0xca   : > { %v5178_v55 = vunpack.i.h.bf16 %v5176_v47  ;;  %v5177_v56 = vunpack.i.l.bf16 %v5176_v47  ;;  %5260 = vrot.lane.b32.xlu0 %v5259_v53, %s7916_s20  ;;  %5255 = vrot.lane.b32.xlu2 %v5254_v18, %s7917_s30 }
  0xcb   : > { %1477 = vmatpush.bf16.msra.mxu3 %v4939_v46 }
  0xcc   : > { %v872_v62 = vsel %vm859_vm3, %v839_v43, %v5177_v56  ;;  %v920_v43 = vld [vmem:[%s7918_s2] sm:$0x3] }
  0xcd   : > { %1386 = vmatpush.bf16.msra.mxu2 %v4933_v60 }
  0xcf   : > { %1478 = vmatpush.bf16.msra.mxu3 %v4938_v32 }
  0xd1   : > { %4247 = vmatmul.msk.bf16.gmra.mxu0 %vm986_vm4, %v907_v1  ;;  %4263 = vmatmul.msk.bf16.gmra.mxu1 %vm986_vm4, %v907_v1  ;;  %v728_v1 = vrot.slane %v6003_v52, 2  ;;  %v5191_v42 = vpop.permute.xlu1 %5190 }
  0xd2   : > { %1387 = vmatpush.bf16.msra.mxu2 %v4932_v15  ;;  %v5193_v63 = vunpack.i.h.bf16 %v5191_v42 }
  0xd3   : > { %v729_v50 = vsel %vm666_vm1, %v726_v6, %v728_v1  ;;  %1648 = vmatpush.bf16.msrb.mxu3 %v4947_v35  ;;  %v5192_v6 = vunpack.i.l.bf16 %v5191_v42 }
  0xd4   : > { %v5264_v54 = vpack.i.bf16 %v728_v1, %v729_v50  ;;  %v1634_v1 = vpack.c.b16 %v1623_v57, %v1623_v57  ;;  %v844_v48 = vsel %vm826_vm2, %v5828_v22, %v5193_v63 }
  0xd5   : > { %v843_v49 = vsel %vm826_vm2, %v5796_v58, %v5192_v6  ;;  %v877_v53 = vsel %vm859_vm3, %v844_v48, %v5198_v44  ;;  %v6077_v58 = vperm.slane %v920_v43, 0 }
  0xd6   : > { %5265 = vrot.lane.b32.xlu1 %v5264_v54, %s7917_s30  ;;  %1388 = vmatpush.bf16.msra.mxu2 %v4931_v19  ;;  %v1646_v47 = vsel %vm1378_vm5, %v1634_v1, 0  ;;  %v876_v50 = vsel %vm859_vm3, %v843_v49, %v5197_v45 }
  0xd7   : > { %1742 = vmatpush.bf16.msrb.mxu0 %v1646_v47  ;;  %v912_v54 = vpack.c.bf16 %v877_v53, %v876_v50 }
  0xda   : > { %1389 = vmatpush.bf16.msra.mxu2 %v4930_v31 }
  0xe1   : > { %4248 = vmatmul.msk.bf16.gmra.mxu0 %vm986_vm4, %v908_v61  ;;  %4264 = vmatmul.msk.bf16.gmra.mxu1 %vm986_vm4, %v908_v61  ;;  %v873_v61 = vsel %vm859_vm3, %v840_v59, %v5178_v55  ;;  %v5201_v59 = vpop.permute.xlu0 %5200 }
  0xe2   : > { %v910_v51 = vpack.c.bf16 %v873_v61, %v872_v62  ;;  %v5203_v22 = vunpack.i.h.bf16 %v5201_v59  ;;  %v5202_v60 = vunpack.i.l.bf16 %v5201_v59  ;;  %v6079_v62 = vperm.slane %v920_v43, 1  ;;  %v5206_v61 = vpop.permute.xlu1 %5205 }
  0xe3   : > { %v5208_v30 = vunpack.i.h.bf16 %v5206_v61  ;;  %v5207_v15 = vunpack.i.l.bf16 %v5206_v61 }
  0xe4   : > { %v846_v3 = vsel %vm826_vm2, %v5844_v39, %v5203_v22  ;;  %v4946_v39 = vld [vmem:[%s7885_s3 + $0x84] sm:$0xff] }
  0xe5   : > { %v879_v46 = vsel %vm859_vm3, %v846_v3, %v5208_v30  ;;  %1649 = vmatpush.bf16.msrb.mxu3 %v4946_v39 }
  0xf1   : > { %4249 = vmatmul.msk.bf16.gmra.mxu0 %vm986_vm4, %v909_v38  ;;  %4265 = vmatmul.msk.bf16.gmra.mxu1 %vm986_vm4, %v909_v38  ;;  %v911_v38 = vpack.c.bf16 %v875_v36, %v874_v11 }
  0xf6   : > { %v5211_v25 = vpop.permute.xlu2 %5210 }
  0xf7   : > { %v5213_v28 = vunpack.i.h.bf16 %v5211_v25  ;;  %v5212_v31 = vunpack.i.l.bf16 %v5211_v25 }
  0xf9   : > { %v848_v35 = vsel %vm826_vm2, %v5873_v14, %v5213_v28  ;;  %v847_v11 = vsel %vm826_vm2, %v5847_v40, %v5212_v31 }
  0xfe   : > { %v5226_v50 = vpop.permute.xlu2 %5225 }
  0xff   : > { %v5228_v59 = vunpack.i.h.bf16 %v5226_v50  ;;  %v5227_v43 = vunpack.i.l.bf16 %v5226_v50 }
 0x101   : > { %4250 = vmatmul.msk.bf16.gmra.mxu0 %vm986_vm4, %v910_v51  ;;  %4266 = vmatmul.msk.bf16.gmra.mxu1 %vm986_vm4, %v910_v51  ;;  %v845_v51 = vsel %vm826_vm2, %v5831_v23, %v5202_v60 }
 0x102   : > { %v878_v23 = vsel %vm859_vm3, %v845_v51, %v5207_v15 }
 0x103   : > { %v913_v20 = vpack.c.bf16 %v879_v46, %v878_v23 }
 0x10d   : > { %v5216_v32 = vpop.permute.xlu0 %5215 }
 0x10e   : > { %v5218_v36 = vunpack.i.h.bf16 %v5216_v32 }
 0x10f   : > { %v5221_v47 = vpop.permute.xlu1 %5220 }
 0x110   : > { %v881_v14 = vsel %vm859_vm3, %v848_v35, %v5218_v36  ;;  %v5223_v48 = vunpack.i.h.bf16 %v5221_v47  ;;  %v5222_v49 = vunpack.i.l.bf16 %v5221_v47 }
 0x111   : > { %4251 = vmatmul.msk.bf16.gmra.mxu0 %vm986_vm4, %v911_v38  ;;  %4267 = vmatmul.msk.bf16.gmra.mxu1 %vm986_vm4, %v911_v38  ;;  %v5217_v38 = vunpack.i.l.bf16 %v5216_v32 }
 0x113   : > { %v880_v1 = vsel %vm859_vm3, %v847_v11, %v5217_v38 }
 0x114   : > { %v914_v40 = vpack.c.bf16 %v881_v14, %v880_v1 }
 0x118   : > { %v5236_v39 = vpop.permute.xlu1 %5235 }
 0x119   : > { %v5237_v25 = vunpack.i.l.bf16 %v5236_v39 }
 0x11e   : > { %v1044_v55 = vpop.f32.mrf.mxu0  ;;  %v1133_v56 = vpop.f32.mrf.mxu1 }
 0x11f   : > { %v1045_v7 = vadd.f32 %v1044_v55, %v6077_v58  ;;  %v1134_v12 = vadd.f32 %v1133_v56, %v6079_v62  ;;  %v850_v55 = vsel %vm826_vm2, %v5894_v41, %v5223_v48  ;;  %v849_v56 = vsel %vm826_vm2, %v5876_v17, %v5222_v49  ;;  %v4945_v41 = vld [vmem:[%s7885_s3 + $0x7c] sm:$0xff] }
 0x120   : > { %v882_v17 = vsel %vm859_vm3, %v849_v56, %v5227_v43  ;;  %v883_v51 = vsel %vm859_vm3, %v850_v55, %v5228_v59  ;;  %1650 = vmatpush.bf16.msrb.mxu3 %v4945_v41 }
 0x121   : > { %4252 = vmatmul.msk.bf16.gmra.mxu0 %vm986_vm4, %v912_v54  ;;  %4268 = vmatmul.msk.bf16.gmra.mxu1 %vm986_vm4, %v912_v54  ;;  %v915_v30 = vpack.c.bf16 %v883_v51, %v882_v17 }
 0x126   : > { %v1046_v26 = vpop.f32.mrf.mxu0  ;;  %v1135_v4 = vpop.f32.mrf.mxu1 }
 0x127   : > { %v1047_v13 = vadd.f32 %v1046_v26, %v6077_v58  ;;  %v1136_v18 = vadd.f32 %v1135_v4, %v6079_v62 }
 0x129   : > { %v6089_v0 = vpack.c.bf16 %v1136_v18, %v1134_v12  ;;  %v6091_v19 = vpack.c.bf16 %v1047_v13, %v1045_v7  ;;  %v5231_v12 = vpop.permute.xlu0 %5230 }
 0x12a   : > { %v5233_v13 = vunpack.i.h.bf16 %v5231_v12  ;;  %v5232_v18 = vunpack.i.l.bf16 %v5231_v12 }
 0x12b   : > { %1390 = vmatmul.bf16.vlgmr.msra.gmra.mxu2 %v6091_v19  ;;  %4316 = vmatmul.msk.bf16.vlgmr.msra.gmra.mxu3 %vm1329_vm6, %v6089_v0 }
 0x12e   : > { %v1049_v21 = vpop.f32.mrf.mxu0  ;;  %v1138_v24 = vpop.f32.mrf.mxu1 }
 0x12f   : > { %v1050_v42 = vadd.f32 %v1049_v21, %v6077_v58  ;;  %v1139_v27 = vadd.f32 %v1138_v24, %v6079_v62  ;;  %v851_v21 = vsel %vm826_vm2, %v5897_v37, %v5232_v18  ;;  %v5238_v24 = vunpack.i.h.bf16 %v5236_v39 }
 0x130   : > { %v884_v11 = vsel %vm859_vm3, %v851_v21, %v5237_v25 }
 0x131   : > { %4253 = vmatmul.msk.bf16.gmra.mxu0 %vm986_vm4, %v913_v20  ;;  %4269 = vmatmul.msk.bf16.gmra.mxu1 %vm986_vm4, %v913_v20  ;;  %v852_v20 = vsel %vm826_vm2, %v5918_v8, %v5233_v13 }
 0x132   : > { %v885_v8 = vsel %vm859_vm3, %v852_v20, %v5238_v24 }
 0x133   : > { %v916_v37 = vpack.c.bf16 %v885_v8, %v884_v11 }
 0x136   : > { %v1051_v33 = vpop.f32.mrf.mxu0  ;;  %v1140_v34 = vpop.f32.mrf.mxu1 }
 0x137   : > { %v1052_v57 = vadd.f32 %v1051_v33, %v6077_v58  ;;  %v1141_v63 = vadd.f32 %v1140_v34, %v6079_v62 }
 0x139   : > { %v6111_v6 = vpack.c.bf16 %v1141_v63, %v1139_v27  ;;  %v6113_v2 = vpack.c.bf16 %v1052_v57, %v1050_v42  ;;  %v5241_v42 = vpop.permute.xlu2 %5240  ;;  %v5246_v63 = vpop.permute.xlu0 %5245 }
 0x13a   : > { %v5243_v27 = vunpack.i.h.bf16 %v5241_v42  ;;  %v5242_v57 = vunpack.i.l.bf16 %v5241_v42  ;;  %v5247_v47 = vunpack.i.l.bf16 %v5246_v63 }
 0x13b   : > { %1395 = vmatmul.bf16.gmra.mxu2 %v6113_v2  ;;  %4317 = vmatmul.msk.bf16.gmra.mxu3 %vm1329_vm6, %v6111_v6 }
 0x13e   : > { %v1054_v44 = vpop.f32.mrf.mxu0  ;;  %v1143_v45 = vpop.f32.mrf.mxu1 }
 0x13f   : > { %v1055_v22 = vadd.f32 %v1054_v44, %v6077_v58  ;;  %v1144_v60 = vadd.f32 %v1143_v45, %v6079_v62  ;;  %v853_v44 = vsel %vm826_vm2, %v5921_v9, %v5242_v57  ;;  %v5248_v45 = vunpack.i.h.bf16 %v5246_v63  ;;  %v4944_v9 = vld [vmem:[%s7885_s3 + $0x74] sm:$0xff] }
 0x140   : > { %v886_v59 = vsel %vm859_vm3, %v853_v44, %v5247_v47  ;;  %1651 = vmatpush.bf16.msrb.mxu3 %v4944_v9 }
 0x141   : > { %4254 = vmatmul.msk.bf16.gmra.mxu0 %vm986_vm4, %v914_v40  ;;  %4270 = vmatmul.msk.bf16.gmra.mxu1 %vm986_vm4, %v914_v40  ;;  %v854_v40 = vsel %vm826_vm2, %v5949_v29, %v5243_v27  ;;  %v4949_v29 = vld [vmem:[%s7885_s3 + $0x9c] sm:$0xff]  ;;  %v5256_v17 = vpop.permute.xlu2 %5255 }
 0x142   : > { %v887_v56 = vsel %vm859_vm3, %v854_v40, %v5248_v45  ;;  %1743 = vmatpush.bf16.msrb.mxu0 %v4949_v29  ;;  %v5258_v12 = vunpack.i.h.bf16 %v5256_v17  ;;  %v5257_v13 = vunpack.i.l.bf16 %v5256_v17 }
 0x143   : > { %v917_v43 = vpack.c.bf16 %v887_v56, %v886_v59 }
 0x146   : > { %v1056_v53 = vpop.f32.mrf.mxu0  ;;  %v1145_v54 = vpop.f32.mrf.mxu1 }
 0x147   : > { %v1057_v61 = vadd.f32 %v1056_v53, %v6077_v58  ;;  %v1146_v26 = vadd.f32 %v1145_v54, %v6079_v62 }
 0x149   : > { %v6130_v4 = vpack.c.bf16 %v1146_v26, %v1144_v60  ;;  %v6132_v3 = vpack.c.bf16 %v1057_v61, %v1055_v22  ;;  %v5251_v61 = vpop.permute.xlu1 %5250 }
 0x14a   : > { %v5253_v26 = vunpack.i.h.bf16 %v5251_v61  ;;  %v5252_v41 = vunpack.i.l.bf16 %v5251_v61 }
 0x14b   : > { %1400 = vmatmul.bf16.gmra.mxu2 %v6132_v3  ;;  %4318 = vmatmul.msk.bf16.gmra.mxu3 %vm1329_vm6, %v6130_v4 }
 0x14e   : > { %v1059_v15 = vpop.f32.mrf.mxu0  ;;  %v1148_v7 = vpop.f32.mrf.mxu1 }
 0x14f   : > { %v1060_v28 = vadd.f32 %v1059_v15, %v6077_v58  ;;  %v1149_v31 = vadd.f32 %v1148_v7, %v6079_v62  ;;  %v856_v15 = vsel %vm826_vm2, %v5970_v5, %v5253_v26  ;;  %v855_v7 = vsel %vm826_vm2, %v5952_v16, %v5252_v41  ;;  %v4948_v16 = vld [vmem:[%s7885_s3 + $0x94] sm:$0xff] }
 0x150   : > { %v888_v24 = vsel %vm859_vm3, %v855_v7, %v5257_v13  ;;  %v889_v5 = vsel %vm859_vm3, %v856_v15, %v5258_v12  ;;  %1744 = vmatpush.bf16.msrb.mxu0 %v4948_v16 }
 0x151   : > { %4255 = vmatmul.msk.bf16.gmra.mxu0 %vm986_vm4, %v915_v30  ;;  %4271 = vmatmul.msk.bf16.gmra.mxu1 %vm986_vm4, %v915_v30  ;;  %v918_v25 = vpack.c.bf16 %v889_v5, %v888_v24  ;;  %v5266_v8 = vpop.permute.xlu1 %5265 }
 0x152   : > { %v5268_v27 = vunpack.i.h.bf16 %v5266_v8  ;;  %v5267_v57 = vunpack.i.l.bf16 %v5266_v8 }
 0x156   : > { %v1061_v23 = vpop.f32.mrf.mxu0  ;;  %v1150_v46 = vpop.f32.mrf.mxu1 }
 0x157   : > { %v1062_v32 = vadd.f32 %v1061_v23, %v6077_v58  ;;  %v1151_v33 = vadd.f32 %v1150_v46, %v6079_v62 }
 0x159   : > { %v6152_v34 = vpack.c.bf16 %v1151_v33, %v1149_v31  ;;  %v6154_v35 = vpack.c.bf16 %v1062_v32, %v1060_v28  ;;  %v5261_v32 = vpop.permute.xlu0 %5260 }
 0x15a   : > { %v5263_v33 = vunpack.i.h.bf16 %v5261_v32  ;;  %v5262_v11 = vunpack.i.l.bf16 %v5261_v32 }
 0x15b   : > { %1405 = vmatmul.bf16.gmra.mxu2 %v6154_v35  ;;  %4319 = vmatmul.msk.bf16.gmra.mxu3 %vm1329_vm6, %v6152_v34 }
 0x15c   : > { %v857_v42 = vsel %vm826_vm2, %v5973_v10, %v5262_v11  ;;  %v4943_v10 = vld [vmem:[%s7885_s3 + $0x6c] sm:$0xff] }
 0x15d   : > { %v890_v47 = vsel %vm859_vm3, %v857_v42, %v5267_v57  ;;  %1652 = vmatpush.bf16.msrb.mxu3 %v4943_v10 }
 0x15e   : > { %v1064_v36 = vpop.f32.mrf.mxu0  ;;  %v1153_v38 = vpop.f32.mrf.mxu1 }
 0x15f   : > { %v1065_v48 = vadd.f32 %v1064_v36, %v6077_v58  ;;  %v1154_v49 = vadd.f32 %v1153_v38, %v6079_v62  ;;  %v858_v38 = vsel %vm826_vm2, %v6003_v52, %v5263_v33 }
 0x160   : > { %v891_v52 = vsel %vm859_vm3, %v858_v38, %v5268_v27 }
 0x161   : > { %4256 = vmatmul.msk.bf16.gmra.mxu0 %vm986_vm4, %v916_v37  ;;  %4272 = vmatmul.msk.bf16.gmra.mxu1 %vm986_vm4, %v916_v37 }
 0x166   : > { %v1066_v1 = vpop.f32.mrf.mxu0  ;;  %v1155_v14 = vpop.f32.mrf.mxu1 }
 0x167   : > { %v1067_v50 = vadd.f32 %v1066_v1, %v6077_v58  ;;  %v1156_v53 = vadd.f32 %v1155_v14, %v6079_v62 }
 0x169   : > { %v6171_v54 = vpack.c.bf16 %v1156_v53, %v1154_v49  ;;  %v6173_v55 = vpack.c.bf16 %v1067_v50, %v1065_v48  ;;  %v919_v48 = vpack.c.bf16 %v891_v52, %v890_v47 }
 0x16b   : > { %1410 = vmatmul.bf16.gmra.mxu2 %v6173_v55  ;;  %4320 = vmatmul.msk.bf16.gmra.mxu3 %vm1329_vm6, %v6171_v54 }
 0x16e   : > { %v1069_v22 = vpop.f32.mrf.mxu0  ;;  %v1158_v60 = vpop.f32.mrf.mxu1 }
 0x16f   : > { %v1070_v18 = vadd.f32 %v1069_v22, %v6077_v58  ;;  %v1159_v39 = vadd.f32 %v1158_v60, %v6079_v62 }
 0x171   : > { %4257 = vmatmul.msk.bf16.gmra.mxu0 %vm986_vm4, %v917_v43  ;;  %4273 = vmatmul.msk.bf16.gmra.mxu1 %vm986_vm4, %v917_v43 }
 0x176   : > { %v1071_v51 = vpop.f32.mrf.mxu0  ;;  %v1160_v30 = vpop.f32.mrf.mxu1 }
 0x177   : > { %v1072_v23 = vadd.f32 %v1071_v51, %v6077_v58  ;;  %v1161_v46 = vadd.f32 %v1160_v30, %v6079_v62 }
 0x179   : > { %v6196_v20 = vpack.c.bf16 %v1161_v46, %v1159_v39  ;;  %v6198_v21 = vpack.c.bf16 %v1072_v23, %v1070_v18 }
 0x17b   : > { %1415 = vmatmul.bf16.gmra.mxu2 %v6198_v21  ;;  %4321 = vmatmul.msk.bf16.gmra.mxu3 %vm1329_vm6, %v6196_v20 }
 0x17e   : > { %v1074_v28 = vpop.f32.mrf.mxu0  ;;  %v1163_v31 = vpop.f32.mrf.mxu1 }
 0x17f   : > { %v1075_v63 = vadd.f32 %v1074_v28, %v6077_v58  ;;  %v1164_v1 = vadd.f32 %v1163_v31, %v6079_v62 }
 0x181   : > { %4258 = vmatmul.msk.bf16.gmra.mxu0 %vm986_vm4, %v918_v25  ;;  %4274 = vmatmul.msk.bf16.gmra.mxu1 %vm986_vm4, %v918_v25 }
 0x186   : > { %v1076_v37 = vpop.f32.mrf.mxu0  ;;  %v1165_v36 = vpop.f32.mrf.mxu1 }
 0x187   : > { %v1077_v14 = vadd.f32 %v1076_v37, %v6077_v58  ;;  %v1166_v40 = vadd.f32 %v1165_v36, %v6079_v62 }
 0x189   : > { %v6218_v44 = vpack.c.bf16 %v1166_v40, %v1164_v1  ;;  %v6220_v45 = vpack.c.bf16 %v1077_v14, %v1075_v63 }
 0x18b   : > { %1420 = vmatmul.bf16.gmra.mxu2 %v6220_v45  ;;  %4322 = vmatmul.msk.bf16.gmra.mxu3 %vm1329_vm6, %v6218_v44 }
 0x18e   : > { %v1079_v49 = vpop.f32.mrf.mxu0  ;;  %v1168_v50 = vpop.f32.mrf.mxu1 }
 0x18f   : > { %v1080_v9 = vadd.f32 %v1079_v49, %v6077_v58  ;;  %v1169_v56 = vadd.f32 %v1168_v50, %v6079_v62 }
 0x191   : > { %4259 = vmatmul.msk.bf16.gmra.mxu0 %vm986_vm4, %v919_v48  ;;  %4275 = vmatmul.msk.bf16.gmra.mxu1 %vm986_vm4, %v919_v48 }
 0x196   : > { %v1081_v53 = vpop.f32.mrf.mxu0  ;;  %v1170_v29 = vpop.f32.mrf.mxu1 }
 0x197   : > { %v1082_v59 = vadd.f32 %v1081_v53, %v6077_v58  ;;  %v1171_v43 = vadd.f32 %v1170_v29, %v6079_v62 }
 0x199   : > { %v6236_v22 = vpack.c.bf16 %v1171_v43, %v1169_v56  ;;  %v6238_v60 = vpack.c.bf16 %v1082_v59, %v1080_v9 }
 0x19b   : > { %1425 = vmatmul.bf16.gmra.mxu2 %v6238_v60  ;;  %4323 = vmatmul.msk.bf16.gmra.mxu3 %vm1329_vm6, %v6236_v22 }
 0x19e   : > { %v1084_v61 = vpop.f32.mrf.mxu0  ;;  %v1173_v26 = vpop.f32.mrf.mxu1 }
 0x19f   : > { %v1085_v51 = vadd.f32 %v1084_v61, %v6077_v58  ;;  %v1174_v30 = vadd.f32 %v1173_v26, %v6079_v62 }
 0x1a1   : > { %4393 = vmatmul.msk.bf16.vlgmr.msrb.gmra.mxu0 %vm1329_vm6, %v6089_v0  ;;  %v4942_v0 = vld [vmem:[%s7885_s3 + $0x64] sm:$0xff] }
 0x1a2   : > { %1653 = vmatpush.bf16.msrb.mxu3 %v4942_v0 }
 0x1a6   : > { %v1086_v41 = vpop.f32.mrf.mxu0  ;;  %v1175_v17 = vpop.f32.mrf.mxu1 }
 0x1a7   : > { %v1087_v15 = vadd.f32 %v1086_v41, %v6077_v58  ;;  %v1176_v7 = vadd.f32 %v1175_v17, %v6079_v62 }
 0x1a9   : > { %v6249_v12 = vpack.c.bf16 %v1176_v7, %v1174_v30  ;;  %v6251_v13 = vpack.c.bf16 %v1087_v15, %v1085_v51 }
 0x1ab   : > { %1430 = vmatmul.bf16.gmra.mxu2 %v6251_v13  ;;  %4324 = vmatmul.msk.bf16.gmra.mxu3 %vm1329_vm6, %v6249_v12 }
 0x1ae   : > { %v1089_v18 = vpop.f32.mrf.mxu0  ;;  %v1178_v39 = vpop.f32.mrf.mxu1 }
 0x1af   : > { %v1391_v23 = vpop.f32.mrf.mxu2  ;;  %v1480_v46 = vpop.f32.mrf.mxu3  ;;  %v1090_v25 = vadd.f32 %v1089_v18, %v6077_v58  ;;  %v1179_v28 = vadd.f32 %v1178_v39, %v6079_v62 }
 0x1b0   : > { %v6259_v24 = vadd.f32 %v1480_v46, %v1391_v23 }
 0x1b1   : > { %4394 = vmatmul.msk.bf16.gmra.mxu0 %vm1329_vm6, %v6111_v6 }
 0x1b6   : > { %v1091_v5 = vpop.f32.mrf.mxu0  ;;  %v1180_v16 = vpop.f32.mrf.mxu1 }
 0x1b7   : > { %v1092_v31 = vadd.f32 %v1091_v5, %v6077_v58  ;;  %v1181_v32 = vadd.f32 %v1180_v16, %v6079_v62  ;;  %v1393_v33 = vpop.f32.mrf.mxu2  ;;  %v1482_v11 = vpop.f32.mrf.mxu3 }
 0x1b8   : > { %v6267_v8 = vadd.f32 %v1482_v11, %v1393_v33 }
 0x1b9   : > { %v6269_v37 = vpack.c.bf16 %v1181_v32, %v1179_v28  ;;  %v6271_v36 = vpack.c.bf16 %v1092_v31, %v1090_v25 }
 0x1bb   : > { %1435 = vmatmul.bf16.gmra.mxu2 %v6271_v36  ;;  %4325 = vmatmul.msk.bf16.gmra.mxu3 %vm1329_vm6, %v6269_v37 }
 0x1be   : > { %v1094_v6 = vpop.f32.mrf.mxu0  ;;  %v1183_v38 = vpop.f32.mrf.mxu1 }
 0x1bf   : > { %v1396_v42 = vpop.f32.mrf.mxu2  ;;  %v1485_v27 = vpop.f32.mrf.mxu3  ;;  %v1095_v14 = vadd.f32 %v1094_v6, %v6077_v58  ;;  %v1184_v40 = vadd.f32 %v1183_v38, %v6079_v62 }
 0x1c0   : > { %v6276_v57 = vadd.f32 %v1485_v27, %v1396_v42 }
 0x1c1   : > { %4395 = vmatmul.msk.bf16.gmra.mxu0 %vm1329_vm6, %v6130_v4  ;;  %v4941_v4 = vld [vmem:[%s7885_s3 + $0x5c] sm:$0xff] }
 0x1c2   : > { %1654 = vmatpush.bf16.msrb.mxu3 %v4941_v4 }
 0x1c6   : > { %v1096_v63 = vpop.f32.mrf.mxu0  ;;  %v1185_v1 = vpop.f32.mrf.mxu1 }
 0x1c7   : > { %v1097_v47 = vadd.f32 %v1096_v63, %v6077_v58  ;;  %v1186_v52 = vadd.f32 %v1185_v1, %v6079_v62  ;;  %v1398_v10 = vpop.f32.mrf.mxu2  ;;  %v1487_v48 = vpop.f32.mrf.mxu3 }
 0x1c8   : > { %v6284_v49 = vadd.f32 %v1487_v48, %v1398_v10 }
 0x1c9   : > { %v6286_v50 = vpack.c.bf16 %v1186_v52, %v1184_v40  ;;  %v6288_v53 = vpack.c.bf16 %v1097_v47, %v1095_v14 }
 0x1cb   : > { %1440 = vmatmul.bf16.gmra.mxu2 %v6288_v53  ;;  %4326 = vmatmul.msk.bf16.gmra.mxu3 %vm1329_vm6, %v6286_v50 }
 0x1ce   : > { %v1099_v29 = vpop.f32.mrf.mxu0  ;;  %v1188_v9 = vpop.f32.mrf.mxu1 }
 0x1cf   : > { %v1401_v56 = vpop.f32.mrf.mxu2  ;;  %v1490_v59 = vpop.f32.mrf.mxu3  ;;  %v1100_v41 = vadd.f32 %v1099_v29, %v6077_v58  ;;  %v1189_v17 = vadd.f32 %v1188_v9, %v6079_v62 }
 0x1d0   : > { %v6296_v43 = vadd.f32 %v1490_v59, %v1401_v56 }
 0x1d1   : > { %4396 = vmatmul.msk.bf16.gmra.mxu0 %vm1329_vm6, %v6152_v34 }
 0x1d6   : > { %v1101_v61 = vpop.f32.mrf.mxu0  ;;  %v1190_v26 = vpop.f32.mrf.mxu1 }
 0x1d7   : > { %v1102_v51 = vadd.f32 %v1101_v61, %v6077_v58  ;;  %v1191_v30 = vadd.f32 %v1190_v26, %v6079_v62  ;;  %v1403_v15 = vpop.f32.mrf.mxu2  ;;  %v1492_v7 = vpop.f32.mrf.mxu3 }
 0x1d8   : > { %v6304_v0 = vadd.f32 %v1492_v7, %v1403_v15 }
 0x1d9   : > { %v6306_v18 = vpack.c.bf16 %v1191_v30, %v1189_v17  ;;  %v6308_v39 = vpack.c.bf16 %v1102_v51, %v1100_v41 }
 0x1db   : > { %1445 = vmatmul.bf16.gmra.mxu2 %v6308_v39  ;;  %4327 = vmatmul.msk.bf16.gmra.mxu3 %vm1329_vm6, %v6306_v18 }
 0x1de   : > { %v1104_v34 = vpop.f32.mrf.mxu0  ;;  %v1193_v23 = vpop.f32.mrf.mxu1 }
 0x1df   : > { %v1406_v46 = vpop.f32.mrf.mxu2  ;;  %v1495_v5 = vpop.f32.mrf.mxu3  ;;  %v1105_v31 = vadd.f32 %v1104_v34, %v6077_v58  ;;  %v1194_v32 = vadd.f32 %v1193_v23, %v6079_v62 }
 0x1e0   : > { %v6313_v16 = vadd.f32 %v1495_v5, %v1406_v46 }
 0x1e1   : > { %4397 = vmatmul.msk.bf16.gmra.mxu0 %vm1329_vm6, %v6171_v54  ;;  %v4940_v54 = vld [vmem:[%s7885_s3 + $0x54] sm:$0xff] }
 0x1e2   : > { %1655 = vmatpush.bf16.msrb.mxu3 %v4940_v54 }
 0x1e6   : > { %v1106_v25 = vpop.f32.mrf.mxu0  ;;  %v1195_v28 = vpop.f32.mrf.mxu1 }
 0x1e7   : > { %v1107_v33 = vadd.f32 %v1106_v25, %v6077_v58  ;;  %v1196_v11 = vadd.f32 %v1195_v28, %v6079_v62  ;;  %v1408_v6 = vpop.f32.mrf.mxu2  ;;  %v1497_v38 = vpop.f32.mrf.mxu3 }
 0x1e8   : > { %v6321_v42 = vadd.f32 %v1497_v38, %v1408_v6 }
 0x1e9   : > { %v6323_v27 = vpack.c.bf16 %v1107_v33, %v1105_v31  ;;  %v6325_v63 = vpack.c.bf16 %v1196_v11, %v1194_v32 }
 0x1eb   : > { %1450 = vmatmul.bf16.gmra.mxu2 %v6323_v27  ;;  %4328 = vmatmul.msk.bf16.gmra.mxu3 %vm1329_vm6, %v6325_v63 }
 0x1ee   : > { %v1109_v1 = vpop.f32.mrf.mxu0  ;;  %v1198_v14 = vpop.f32.mrf.mxu1 }
 0x1ef   : > { %v6333_v40 = vpop.f32.mrf.mxu3  ;;  %v1110_v10 = vadd.f32 %v1109_v1, %v6077_v58  ;;  %v1199_v48 = vadd.f32 %v1198_v14, %v6079_v62 }
 0x1f1   : > { %4398 = vmatmul.msk.bf16.gmra.mxu0 %vm1329_vm6, %v6196_v20 }
 0x1f6   : > { %v1111_v47 = vpop.f32.mrf.mxu0  ;;  %v1200_v52 = vpop.f32.mrf.mxu1 }
 0x1f7   : > { %v1112_v4 = vadd.f32 %v1111_v47, %v6077_v58  ;;  %v1201_v29 = vadd.f32 %v1200_v52, %v6079_v62  ;;  %v6341_v9 = vpop.f32.mrf.mxu3 }
 0x1f9   : > { %v6343_v56 = vpack.c.bf16 %v1112_v4, %v1110_v10  ;;  %v1261_v59 = vpack.c.bf16 %v1201_v29, %v1199_v48 }
 0x1fb   : > { %1455 = vmatmul.bf16.gmra.mxu2 %v6343_v56  ;;  %4329 = vmatmul.msk.bf16.gmra.mxu3 %vm1329_vm6, %v1261_v59 }
 0x1fe   : > { %v1114_v20 = vpop.f32.mrf.mxu0  ;;  %v1203_v61 = vpop.f32.mrf.mxu1 }
 0x1ff   : > { %v6347_v26 = vpop.f32.mrf.mxu3  ;;  %v1115_v51 = vadd.f32 %v1114_v20, %v6077_v58  ;;  %v1204_v30 = vadd.f32 %v1203_v61, %v6079_v62 }
 0x201   : > { %4399 = vmatmul.msk.bf16.gmra.mxu0 %vm1329_vm6, %v6218_v44 }
 0x206   : > { %v1116_v41 = vpop.f32.mrf.mxu0  ;;  %v1205_v17 = vpop.f32.mrf.mxu1 }
 0x207   : > { %v1117_v15 = vadd.f32 %v1116_v41, %v6077_v58  ;;  %v1206_v7 = vadd.f32 %v1205_v17, %v6079_v62  ;;  %v6355_v34 = vpop.f32.mrf.mxu3  ;;  %v4531_v17 = vld [vmem:[%s7886_s4 + $0xf0] sm:$0xf] }
 0x209   : > { %v6357_v23 = vpack.c.bf16 %v1117_v15, %v1115_v51  ;;  %v1263_v46 = vpack.c.bf16 %v1206_v7, %v1204_v30  ;;  %v4965_v15 = vld [vmem:[%s7886_s4 + $0x74] sm:$0xf0] }
 0x20b   : > { %1460 = vmatmul.bf16.gmra.mxu2 %v6357_v23  ;;  %4330 = vmatmul.msk.bf16.gmra.mxu3 %vm1329_vm6, %v1263_v46 }
 0x20e   : > { %v1119_v44 = vpop.f32.mrf.mxu0  ;;  %v1208_v5 = vpop.f32.mrf.mxu1 }
 0x20f   : > { %v6361_v25 = vpop.f32.mrf.mxu3  ;;  %v1120_v32 = vadd.f32 %v1119_v44, %v6077_v58  ;;  %v1209_v33 = vadd.f32 %v1208_v5, %v6079_v62 }
 0x211   : > { %4400 = vmatmul.msk.bf16.gmra.mxu0 %vm1329_vm6, %v6236_v22 }
 0x216   : > { %v1121_v28 = vpop.f32.mrf.mxu0  ;;  %v1210_v31 = vpop.f32.mrf.mxu1 }
 0x217   : > { %v1122_v11 = vadd.f32 %v1121_v28, %v6077_v58  ;;  %v1211_v6 = vadd.f32 %v1210_v31, %v6079_v62  ;;  %v6369_v38 = vpop.f32.mrf.mxu3 }
 0x219   : > { %v6371_v54 = vpack.c.bf16 %v1122_v11, %v1120_v32  ;;  %v1265_v1 = vpack.c.bf16 %v1211_v6, %v1209_v33  ;;  %v6453_v32 = vpop.f32.mrf.mxu2 }
 0x21b   : > { %1465 = vmatmul.bf16.gmra.mxu2 %v6371_v54  ;;  %4331 = vmatmul.msk.bf16.gmra.mxu3 %vm1329_vm6, %v1265_v1 }
 0x21f   : > { %v6375_v22 = vpop.f32.mrf.mxu3 }
 0x221   : > { %4401 = vmatmul.msk.bf16.gmra.mxu0 %vm1329_vm6, %v6249_v12  ;;  %v1746_v12 = vpop.f32.mrf.mxu0 }
 0x227   : > { %v6379_v14 = vpop.f32.mrf.mxu3 }
 0x22b   : > { %1656 = vmatmul.bf16.vlgmr.msrb.gmra.mxu3 %v6091_v19 }
 0x22f   : > { %v6382_v58 = vpop.f32.mrf.mxu3 }
 0x231   : > { %4402 = vmatmul.msk.bf16.gmra.mxu0 %vm1329_vm6, %v6269_v37  ;;  %v1748_v37 = vpop.f32.mrf.mxu0 }
 0x237   : > { %v6386_v62 = vpop.f32.mrf.mxu3 }
 0x23b   : > { %1661 = vmatmul.bf16.gmra.mxu3 %v6113_v2  ;;  %v1751_v2 = vpop.f32.mrf.mxu0 }
 0x23f   : > { %v6389_v47 = vpop.f32.mrf.mxu3 }
 0x241   : > { %4403 = vmatmul.msk.bf16.gmra.mxu0 %vm1329_vm6, %v6286_v50 }
 0x243   : > { %v1753_v4 = vpop.f32.mrf.mxu0 }
 0x247   : > { %v6393_v52 = vpop.f32.mrf.mxu3 }
 0x24b   : > { %1666 = vmatmul.bf16.gmra.mxu3 %v6132_v3 }
 0x24f   : > { %v6396_v19 = vpop.f32.mrf.mxu3 }
 0x251   : > { %4404 = vmatmul.msk.bf16.gmra.mxu0 %vm1329_vm6, %v6306_v18  ;;  %v1756_v18 = vpop.f32.mrf.mxu0 }
 0x257   : > { %v6400_v10 = vpop.f32.mrf.mxu3 }
 0x25b   : > { %1671 = vmatmul.bf16.gmra.mxu3 %v6154_v35  ;;  %v1758_v35 = vpop.f32.mrf.mxu0 }
 0x25f   : > { %v6403_v48 = vpop.f32.mrf.mxu3 }
 0x261   : > { %4405 = vmatmul.msk.bf16.gmra.mxu0 %vm1329_vm6, %v6325_v63 }
 0x263   : > { %v6419_v63 = vpop.f32.mrf.mxu0 }
 0x267   : > { %v6407_v50 = vpop.f32.mrf.mxu3 }
 0x26b   : > { %1676 = vmatmul.bf16.gmra.mxu3 %v6173_v55  ;;  %v6426_v41 = vpop.f32.mrf.mxu0 }
 0x26f   : > { %v6410_v3 = vpop.f32.mrf.mxu3 }
 0x271   : > { %4406 = vmatmul.msk.bf16.gmra.mxu0 %vm1329_vm6, %v1261_v59 }
 0x273   : > { %v6456_v11 = vpop.f32.mrf.mxu0 }
 0x277   : > { %v6413_v29 = vpop.f32.mrf.mxu3 }
 0x27b   : > { %1681 = vmatmul.bf16.gmra.mxu3 %v6198_v21 }
 0x27f   : > { %v6416_v20 = vpop.f32.mrf.mxu3 }
 0x281   : > { %4407 = vmatmul.msk.bf16.gmra.mxu0 %vm1329_vm6, %v1263_v46 }
 0x287   : > { %v6421_v61 = vpop.f32.mrf.mxu3 }
 0x28b   : > { %1686 = vmatmul.bf16.gmra.mxu3 %v6220_v45  ;;  %v4981_v45 = vld [vmem:[%s7886_s4 + $0xf4] sm:$0xf0] }
 0x28c   : > { %v4532_v51 = vor.u32 %v4981_v45, %v4531_v17  ;;  %v6468_v45 = vpop.f32.mrf.mxu0 }
 0x28e   : > { %2807 = vmatpush.bf16.msrb.mxu2 %v4532_v51  ;;  %v4963_v51 = vld [vmem:[%s7886_s4 + $0x64] sm:$0xf0] }
 0x28f   : > { %v6424_v55 = vpop.f32.mrf.mxu3 }
 0x291   : > { %4408 = vmatmul.msk.bf16.gmra.mxu0 %vm1329_vm6, %v1265_v1 }
 0x297   : > { %v6429_v59 = vpop.f32.mrf.mxu3 }
 0x29b   : > { %1691 = vmatmul.bf16.gmra.mxu3 %v6238_v60  ;;  %v4467_v60 = vld [vmem:[%s7886_s4 + $0x70] sm:$0xf] }
 0x29c   : > { %v4468_v7 = vor.u32 %v4965_v15, %v4467_v60 }
 0x29e   : > { %2758 = vmatpush.bf16.msrb.mxu1 %v4468_v7 }
 0x29f   : > { %v6432_v21 = vpop.f32.mrf.mxu3 }
 0x2a7   : > { %v6440_v30 = vpop.f32.mrf.mxu3 }
 0x2ab   : > { %1696 = vmatmul.bf16.gmra.mxu3 %v6251_v13 }
 0x2af   : > { %v1657_v46 = vpop.f32.mrf.mxu3 }
 0x2b0   : > { %v1747_v44 = vadd.f32 %v1746_v12, %v1657_v46  ;;  %v6466_v12 = vpop.f32.mrf.mxu2  ;;  %v6482_v46 = vpop.f32.mrf.mxu0 }
 0x2b2   : > { %v1826_v5 = vmax.f32 %v6259_v24, %v1747_v44  ;;  %v4523_v24 = vld [vmem:[%s7886_s4 + $0xe0] sm:$0xf] }
 0x2b4   : > { %1859 = vst.msk [vmem:[#allocation2] sm:$0xff] %vm1858_vm7, %v1826_v5 }
 0x2b7   : > { %v1659_v28 = vpop.f32.mrf.mxu3 }
 0x2b8   : > { %v1749_v31 = vadd.f32 %v1748_v37, %v1659_v28 }
 0x2ba   : > { %v1827_v13 = vmax.f32 %v6267_v8, %v1749_v31  ;;  %v4979_v8 = vld [vmem:[%s7886_s4 + $0xe4] sm:$0xf0] }
 0x2bb   : > { %1701 = vmatmul.bf16.gmra.mxu3 %v6271_v36  ;;  %v4524_v36 = vor.u32 %v4979_v8, %v4523_v24 }
 0x2bc   : > { %1860 = vst.msk [vmem:[#allocation2 + $0x8] sm:$0xff] %vm1858_vm7, %v1827_v13 }
 0x2bd   : > { %2808 = vmatpush.bf16.msrb.mxu2 %v4524_v36 }
 0x2bf   : > { %v1662_v33 = vpop.f32.mrf.mxu3 }
 0x2c0   : > { %v1752_v6 = vadd.f32 %v1751_v2, %v1662_v33  ;;  %v4459_v2 = vld [vmem:[%s7886_s4 + $0x60] sm:$0xf]  ;;  %v6490_v33 = vpop.f32.mrf.mxu0 }
 0x2c1   : > { %v4460_v60 = vor.u32 %v4963_v51, %v4459_v2 }
 0x2c2   : > { %v1828_v1 = vmax.f32 %v6276_v57, %v1752_v6 }
 0x2c3   : > { %2759 = vmatpush.bf16.msrb.mxu1 %v4460_v60 }
 0x2c4   : > { %1861 = vst.msk [vmem:[#allocation2 + $0x10] sm:$0xff] %vm1858_vm7, %v1828_v1 }
 0x2c7   : > { %v1664_v37 = vpop.f32.mrf.mxu3 }
 0x2c8   : > { %v1754_v17 = vadd.f32 %v1753_v4, %v1664_v37  ;;  %v6479_v4 = vpop.f32.mrf.mxu2 }
 0x2ca   : > { %v1829_v57 = vmax.f32 %v6284_v49, %v1754_v17 }
 0x2cb   : > { %1706 = vmatmul.bf16.gmra.mxu3 %v6288_v53 }
 0x2cc   : > { %1862 = vst.msk [vmem:[#allocation2 + $0x18] sm:$0xff] %vm1858_vm7, %v1829_v57 }
 0x2cf   : > { %v1667_v15 = vpop.f32.mrf.mxu3 }
 0x2d0   : > { %v1757_v7 = vadd.f32 %v1756_v18, %v1667_v15  ;;  %v6485_v5 = vpop.f32.mrf.mxu2  ;;  %v1892_v18 = vld [vmem:[#allocation2] ss:$2 sm:$0xff] }
 0x2d2   : > { %v1830_v49 = vmax.f32 %v6296_v43, %v1757_v7  ;;  %v1924_v43 = vld [vmem:[#allocation2 + $0x1] ss:$2 sm:$0xff] }
 0x2d3   : > { %v1894_v31 = vld [vmem:[#allocation2 + $0x10] ss:$2 sm:$0xff]  ;;  %v1926_v13 = vld [vmem:[#allocation2 + $0x11] ss:$2 sm:$0xff] }
 0x2d4   : > { %1863 = vst.msk [vmem:[#allocation2 + $0x20] sm:$0xff] %vm1858_vm7, %v1830_v49  ;;  %v6492_v6 = vmax.f32 %v1894_v31, %v1926_v13 }
 0x2d6   : > { %v2067_v37 = vrot.slane %v6492_v6, 2  ;;  %v1988_v17 = vrot.slane %v6492_v6, 1 }
 0x2d7   : > { %v1669_v53 = vpop.f32.mrf.mxu3 }
 0x2d8   : > { %v1759_v44 = vadd.f32 %v1758_v35, %v1669_v53  ;;  %v6495_v35 = vmax.f32 %v1892_v18, %v1924_v43  ;;  %v6501_v57 = vpop.f32.mrf.mxu2  ;;  %v6521_v43 = vpop.f32.mrf.mxu0 }
 0x2da   : > { %v1831_v28 = vmax.f32 %v6304_v0, %v1759_v44  ;;  %v2147_v0 = vrot.slane %v6492_v6, 3  ;;  %v2146_v51 = vrot.slane %v6495_v35, 3  ;;  %v2066_v60 = vrot.slane %v6495_v35, 2 }
 0x2db   : > { %1711 = vmatmul.bf16.gmra.mxu3 %v6308_v39  ;;  %v1987_v15 = vrot.slane %v6495_v35, 1 }
 0x2dc   : > { %1864 = vst.msk [vmem:[#allocation2 + $0x28] sm:$0xff] %vm1858_vm7, %v1831_v28  ;;  %v2148_v31 = vsel %vm2145_vm8, %v2146_v51, %v2147_v0  ;;  %v2068_v13 = vsel %vm666_vm1, %v2066_v60, %v2067_v37  ;;  %v1501_v60 = vadd.f32 %v6333_v40, %v6453_v32 }
 0x2dd   : > { %v1989_v18 = vsel %vm506_vm0, %v1987_v15, %v1988_v17 }
 0x2df   : > { %v1672_v1 = vpop.f32.mrf.mxu3 }
 0x2e0   : > { %v1762_v24 = vadd.f32 %v6419_v63, %v1672_v1  ;;  %v4515_v63 = vld [vmem:[%s7886_s4 + $0xd0] sm:$0xf] }
 0x2e2   : > { %v1832_v8 = vmax.f32 %v6313_v16, %v1762_v24  ;;  %v4977_v16 = vld [vmem:[%s7886_s4 + $0xd4] sm:$0xf0] }
 0x2e3   : > { %v1896_v39 = vld [vmem:[#allocation2 + $0x20] ss:$2 sm:$0xff]  ;;  %v1928_v36 = vld [vmem:[#allocation2 + $0x21] ss:$2 sm:$0xff]  ;;  %v4516_v7 = vor.u32 %v4977_v16, %v4515_v63 }
 0x2e4   : > { %1865 = vst.msk [vmem:[#allocation2 + $0x30] sm:$0xff] %vm1858_vm7, %v1832_v8  ;;  %v6504_v2 = vmax.f32 %v1896_v39, %v1928_v36 }
 0x2e5   : > { %2809 = vmatpush.bf16.msrb.mxu2 %v4516_v7  ;;  %v6550_v7 = vpop.f32.mrf.mxu0 }
 0x2e6   : > { %v2149_v49 = vrot.slane %v6504_v2, 3  ;;  %v2069_v53 = vrot.slane %v6504_v2, 2  ;;  %v1990_v44 = vrot.slane %v6504_v2, 1 }
 0x2e7   : > { %v1674_v28 = vpop.f32.mrf.mxu3 }
 0x2e8   : > { %v1764_v1 = vadd.f32 %v6426_v41, %v1674_v28  ;;  %v2150_v24 = vsel %vm2145_vm8, %v2147_v0, %v2149_v49  ;;  %v2070_v8 = vsel %vm666_vm1, %v2067_v37, %v2069_v53  ;;  %v1991_v39 = vsel %vm506_vm0, %v1988_v17, %v1990_v44  ;;  %v4451_v41 = vld [vmem:[%s7886_s4 + $0x50] sm:$0xf]  ;;  %v6545_v37 = vpop.f32.mrf.mxu2 }
 0x2e9   : > { %v5279_v36 = vpack.i.bf16 %v2150_v24, %v2148_v31  ;;  %v5274_v63 = vpack.i.bf16 %v2070_v8, %v2068_v13  ;;  %v5269_v16 = vpack.i.bf16 %v1991_v39, %v1989_v18  ;;  %v1503_v31 = vadd.f32 %v6341_v9, %v6466_v12 }
 0x2ea   : > { %v1833_v51 = vmax.f32 %v6321_v42, %v1764_v1  ;;  %v4961_v42 = vld [vmem:[%s7886_s4 + $0x54] sm:$0xf0] }
 0x2eb   : > { %5280 = vrot.lane.b32.xlu1 %v5279_v36, %s7903_s16  ;;  %5275 = vrot.lane.b32.xlu0 %v5274_v63, %s7901_s27  ;;  %v4452_v0 = vor.u32 %v4961_v42, %v4451_v41 }
 0x2ec   : > { %1866 = vst.msk [vmem:[#allocation2 + $0x38] sm:$0xff] %vm1858_vm7, %v1833_v51  ;;  %5270 = vrot.lane.b32.xlu2 %v5269_v16, %s7905_s21  ;;  %1716 = vmatmul.bf16.gmra.mxu3 %v6323_v27 }
 0x2ed   : > { %2760 = vmatpush.bf16.msrb.mxu1 %v4452_v0  ;;  %v6558_v39 = vpop.f32.mrf.mxu0 }
 0x2ef   : > { %v1677_v17 = vpop.f32.mrf.mxu3 }
 0x2f0   : > { %v1767_v15 = vadd.f32 %v6456_v11, %v1677_v17  ;;  %v6555_v13 = vpop.f32.mrf.mxu2  ;;  %v1506_v11 = vadd.f32 %v6347_v26, %v6479_v4  ;;  %v4507_v26 = vld [vmem:[%s7886_s4 + $0xc0] sm:$0xf]  ;;  %v4975_v4 = vld [vmem:[%s7886_s4 + $0xc4] sm:$0xf0] }
 0x2f2   : > { %v1834_v27 = vmax.f32 %v1501_v60, %v1767_v15  ;;  %v1508_v15 = vadd.f32 %v6355_v34, %v6485_v5 }
 0x2f3   : > { %v1898_v24 = vld [vmem:[#allocation2 + $0x30] ss:$2 sm:$0xff]  ;;  %v1930_v8 = vld [vmem:[#allocation2 + $0x31] ss:$2 sm:$0xff] }
 0x2f4   : > { %1867 = vst.msk [vmem:[#allocation2 + $0x40] sm:$0xff] %vm1858_vm7, %v1834_v27  ;;  %v6562_v40 = vmax.f32 %v1898_v24, %v1930_v8 }
 0x2f5   : > { %v6581_v42 = vpop.f32.mrf.mxu0 }
 0x2f6   : > { %v2151_v36 = vrot.slane %v6562_v40, 3  ;;  %v2071_v51 = vrot.slane %v6562_v40, 2  ;;  %v1992_v41 = vrot.slane %v6562_v40, 1 }
 0x2f7   : > { %v1679_v28 = vpop.f32.mrf.mxu3 }
 0x2f8   : > { %v1769_v18 = vadd.f32 %v6468_v45, %v1679_v28  ;;  %v6567_v12 = vpop.f32.mrf.mxu2  ;;  %v2152_v28 = vsel %vm2145_vm8, %v2149_v49, %v2151_v36 }
 0x2fa   : > { %v1835_v1 = vmax.f32 %v1503_v31, %v1769_v18  ;;  %v2072_v31 = vsel %vm666_vm1, %v2069_v53, %v2071_v51  ;;  %v1993_v18 = vsel %vm506_vm0, %v1990_v44, %v1992_v41  ;;  %v4469_v44 = vld [vmem:[%s7886_s4 + $0x78] sm:$0xf0] }
 0x2fc   : > { %1868 = vst.msk [vmem:[#allocation2 + $0x48] sm:$0xff] %vm1858_vm7, %v1835_v1  ;;  %1721 = vmatmul.bf16.gmra.mxu3 %v6343_v56 }
 0x2ff   : > { %v1682_v32 = vpop.f32.mrf.mxu3 }
 0x300   : > { %v1772_v9 = vadd.f32 %v6482_v46, %v1682_v32  ;;  %v4508_v46 = vor.u32 %v4975_v4, %v4507_v26  ;;  %v1511_v26 = vadd.f32 %v6361_v25, %v6501_v57  ;;  %v6634_v4 = vpop.f32.mrf.mxu0  ;;  %v4958_v25 = vld [vmem:[%s7886_s4 + $0x44] sm:$0xf] }
 0x302   : > { %v1836_v45 = vmax.f32 %v1506_v11, %v1772_v9  ;;  %2810 = vmatpush.bf16.msrb.mxu2 %v4508_v46  ;;  %v6615_v9 = vpop.f32.mrf.mxu2 }
 0x303   : > { %v1900_v63 = vld [vmem:[#allocation2 + $0x40] ss:$2 sm:$0xff]  ;;  %v1932_v16 = vld [vmem:[#allocation2 + $0x41] ss:$2 sm:$0xff] }
 0x304   : > { %1869 = vst.msk [vmem:[#allocation2 + $0x50] sm:$0xff] %vm1858_vm7, %v1836_v45  ;;  %v6573_v56 = vmax.f32 %v1900_v63, %v1932_v16  ;;  %v4443_v45 = vld [vmem:[%s7886_s4 + $0x40] sm:$0xf]  ;;  %v4962_v16 = vld [vmem:[%s7886_s4 + $0x64] sm:$0xf] }
 0x306   : > { %v2153_v0 = vrot.slane %v6573_v56, 3  ;;  %v2073_v17 = vrot.slane %v6573_v56, 2  ;;  %v1994_v60 = vrot.slane %v6573_v56, 1 }
 0x307   : > { %v1684_v27 = vpop.f32.mrf.mxu3 }
 0x308   : > { %v1774_v1 = vadd.f32 %v6490_v33, %v1684_v27  ;;  %v2154_v34 = vsel %vm2145_vm8, %v2151_v36, %v2153_v0  ;;  %v2074_v5 = vsel %vm666_vm1, %v2071_v51, %v2073_v17  ;;  %v1995_v49 = vsel %vm506_vm0, %v1992_v41, %v1994_v60  ;;  %v4964_v33 = vld [vmem:[%s7886_s4 + $0x74] sm:$0xf]  ;;  %v4959_v36 = vld [vmem:[%s7886_s4 + $0x44] sm:$0xf0]  ;;  %v4461_v51 = vld [vmem:[%s7886_s4 + $0x68] sm:$0xf0] }
 0x309   : > { %v5294_v53 = vpack.i.bf16 %v2154_v34, %v2152_v28  ;;  %v5289_v24 = vpack.i.bf16 %v2074_v5, %v2072_v31  ;;  %v5284_v8 = vpack.i.bf16 %v1995_v49, %v1993_v18  ;;  %v4472_v11 = vor.u32 %v4964_v33, %v4469_v44  ;;  %v4960_v27 = vld [vmem:[%s7886_s4 + $0x54] sm:$0xf]  ;;  %v4453_v28 = vld [vmem:[%s7886_s4 + $0x58] sm:$0xf0]  ;;  %v4957_v33 = vld [vmem:[%s7886_s4 + $0x34] sm:$0xf0] }
 0x30a   : > { %v1837_v32 = vmax.f32 %v1508_v15, %v1774_v1  ;;  %v4444_v63 = vor.u32 %v4959_v36, %v4443_v45  ;;  %v4456_v31 = vor.u32 %v4960_v27, %v4453_v28  ;;  %v6644_v18 = vpop.f32.mrf.mxu2  ;;  %v1513_v1 = vadd.f32 %v6369_v38, %v6545_v37  ;;  %v4956_v38 = vld [vmem:[%s7886_s4 + $0x34] sm:$0xf]  ;;  %v4427_v45 = vld [vmem:[%s7886_s4 + $0x20] sm:$0xf]  ;;  %v4955_v36 = vld [vmem:[%s7886_s4 + $0x24] sm:$0xf0] }
 0x30b   : > { %5295 = vrot.lane.b32.xlu1 %v5294_v53, %s7903_s16  ;;  %5290 = vrot.lane.b32.xlu0 %v5289_v24, %s7901_s27  ;;  %v6655_v24 = vpop.f32.mrf.mxu0  ;;  %s7919_s16 = smov 124   ;;  %s7920_s27 = smov 40  }
 0x30c   : > { %1870 = vst.msk [vmem:[#allocation2 + $0x58] sm:$0xff] %vm1858_vm7, %v1837_v32  ;;  %5285 = vrot.lane.b32.xlu2 %v5284_v8, %s7905_s21  ;;  %1726 = vmatmul.bf16.gmra.mxu3 %v6357_v23  ;;  %v4464_v23 = vor.u32 %v4962_v16, %v4461_v51  ;;  %v4435_v32 = vld [vmem:[%s7886_s4 + $0x30] sm:$0xf]  ;;  %v4428_v51 = vor.u32 %v4955_v36, %v4427_v45 }
 0x30d   : > { %2954 = vmatpush.bf16.msra.mxu3 %v4472_v11  ;;  %2761 = vmatpush.bf16.msrb.mxu1 %v4444_v63  ;;  %v4436_v37 = vor.u32 %v4957_v33, %v4435_v32  ;;  %v4954_v63 = vld [vmem:[%s7886_s4 + $0x24] sm:$0xf]  ;;  %v1518_v32 = vadd.f32 %v6379_v14, %v6567_v12  ;;  %v4411_v14 = vld [vmem:[%s7886_s4] sm:$0xf] }
 0x30f   : > { %v1687_v41 = vpop.f32.mrf.mxu3 }
 0x310   : > { %v1777_v46 = vadd.f32 %v6521_v43, %v1687_v41  ;;  %v4445_v43 = vld [vmem:[%s7886_s4 + $0x48] sm:$0xf0]  ;;  %v1516_v41 = vadd.f32 %v6375_v22, %v6555_v13  ;;  %v4953_v22 = vld [vmem:[%s7886_s4 + $0x14] sm:$0xf0]  ;;  %v4952_v13 = vld [vmem:[%s7886_s4 + $0x14] sm:$0xf] }
 0x311   : > { %2955 = vmatpush.bf16.msra.mxu3 %v4464_v23  ;;  %v4448_v53 = vor.u32 %v4958_v25, %v4445_v43  ;;  %2762 = vmatpush.bf16.msrb.mxu1 %v4436_v37  ;;  %v4419_v25 = vld [vmem:[%s7886_s4 + $0x10] sm:$0xf]  ;;  %v4533_v37 = vld [vmem:[%s7886_s4 + $0xf8] sm:$0xf0] }
 0x312   : > { %v1838_v15 = vmax.f32 %v1511_v26, %v1777_v46  ;;  %v6687_v23 = vpop.f32.mrf.mxu2  ;;  %v4420_v43 = vor.u32 %v4953_v22, %v4419_v25 }
 0x313   : > { %v1902_v5 = vld [vmem:[#allocation2 + $0x50] ss:$2 sm:$0xff]  ;;  %v1934_v49 = vld [vmem:[#allocation2 + $0x51] ss:$2 sm:$0xff] }
 0x314   : > { %1871 = vst.msk [vmem:[#allocation2 + $0x60] sm:$0xff] %vm1858_vm7, %v1838_v15  ;;  %v6671_v11 = vmax.f32 %v1902_v5, %v1934_v49  ;;  %v4499_v49 = vld [vmem:[%s7886_s4 + $0xb0] sm:$0xf] }
 0x315   : > { %2956 = vmatpush.bf16.msra.mxu3 %v4456_v31  ;;  %2763 = vmatpush.bf16.msrb.mxu1 %v4428_v51 }
 0x316   : > { %v2155_v15 = vrot.slane %v6671_v11, 3  ;;  %v2075_v27 = vrot.slane %v6671_v11, 2  ;;  %v1996_v28 = vrot.slane %v6671_v11, 1 }
 0x317   : > { %v1689_v57 = vpop.f32.mrf.mxu3 }
 0x318   : > { %v1779_v34 = vadd.f32 %v6550_v7, %v1689_v57  ;;  %v4437_v7 = vld [vmem:[%s7886_s4 + $0x38] sm:$0xf0]  ;;  %v1997_v51 = vsel %vm506_vm0, %v1994_v60, %v1996_v28 }
 0x319   : > { %2957 = vmatpush.bf16.msra.mxu3 %v4448_v53  ;;  %v4440_v44 = vor.u32 %v4956_v38, %v4437_v7  ;;  %v4973_v53 = vld [vmem:[%s7886_s4 + $0xb4] sm:$0xf0]  ;;  %2764 = vmatpush.bf16.msrb.mxu1 %v4420_v43  ;;  %v4980_v38 = vld [vmem:[%s7886_s4 + $0xf4] sm:$0xf] }
 0x31a   : > { %v1839_v8 = vmax.f32 %v1513_v1, %v1779_v34  ;;  %v4421_v1 = vld [vmem:[%s7886_s4 + $0x18] sm:$0xf0]  ;;  %v6705_v34 = vpop.f32.mrf.mxu0  ;;  %v4500_v33 = vor.u32 %v4973_v53, %v4499_v49  ;;  %v4536_v36 = vor.u32 %v4980_v38, %v4533_v37  ;;  %v4974_v38 = vld [vmem:[%s7886_s4 + $0xc4] sm:$0xf]  ;;  %v4509_v37 = vld [vmem:[%s7886_s4 + $0xc8] sm:$0xf0] }
 0x31c   : > { %1872 = vst.msk [vmem:[#allocation2 + $0x68] sm:$0xff] %vm1858_vm7, %v1839_v8  ;;  %1731 = vmatmul.bf16.gmra.mxu3 %v6371_v54  ;;  %v4429_v54 = vld [vmem:[%s7886_s4 + $0x28] sm:$0xf0]  ;;  %v4424_v8 = vor.u32 %v4952_v13, %v4421_v1  ;;  %2811 = vmatpush.bf16.msrb.mxu2 %v4500_v33  ;;  %v4517_v1 = vld [vmem:[%s7886_s4 + $0xd8] sm:$0xf0] }
 0x31d   : > { %2958 = vmatpush.bf16.msra.mxu3 %v4440_v44  ;;  %v4432_v46 = vor.u32 %v4954_v63, %v4429_v54  ;;  %v2156_v63 = vsel %vm2145_vm8, %v2153_v0, %v2155_v15  ;;  %v4951_v54 = vld [vmem:[%s7886_s4 + $0x4] sm:$0xf0]  ;;  %v4413_v0 = vld [vmem:[%s7886_s4 + $0x8] sm:$0xf0]  ;;  %3003 = vmatpush.bf16.msra.mxu0 %v4536_v36  ;;  %v4512_v36 = vor.u32 %v4974_v38, %v4509_v37 }
 0x31e   : > { %v4412_v13 = vor.u32 %v4951_v54, %v4411_v14 }
 0x31f   : > { %v1692_v16 = vpop.f32.mrf.mxu3 }
 0x320   : > { %v1782_v26 = vadd.f32 %v6558_v39, %v1692_v16  ;;  %v2076_v16 = vsel %vm666_vm1, %v2073_v17, %v2075_v27  ;;  %2765 = vmatpush.bf16.msrb.mxu1 %v4412_v13 }
 0x321   : > { %2959 = vmatpush.bf16.msra.mxu3 %v4432_v46 }
 0x322   : > { %v1840_v31 = vmax.f32 %v1516_v41, %v1782_v26  ;;  %v4950_v41 = vld [vmem:[%s7886_s4 + $0x4] sm:$0xf]  ;;  %v6776_v53 = vpop.f32.mrf.mxu0 }
 0x323   : > { %v1904_v39 = vld [vmem:[#allocation2 + $0x60] ss:$2 sm:$0xff]  ;;  %v1936_v57 = vld [vmem:[#allocation2 + $0x61] ss:$2 sm:$0xff] }
 0x324   : > { %1873 = vst.msk [vmem:[#allocation2 + $0x70] sm:$0xff] %vm1858_vm7, %v1840_v31  ;;  %v6708_v5 = vmax.f32 %v1904_v39, %v1936_v57  ;;  %v4978_v31 = vld [vmem:[%s7886_s4 + $0xe4] sm:$0xf]  ;;  %v6764_v39 = vpop.f32.mrf.mxu2  ;;  %v4416_v57 = vor.u32 %v4950_v41, %v4413_v0  ;;  %v4491_v41 = vld [vmem:[%s7886_s4 + $0xa0] sm:$0xf] }
 0x325   : > { %2960 = vmatpush.bf16.msra.mxu3 %v4424_v8  ;;  %v4971_v0 = vld [vmem:[%s7886_s4 + $0xa4] sm:$0xf0] }
 0x326   : > { %v2157_v7 = vrot.slane %v6708_v5, 3  ;;  %v2077_v44 = vrot.slane %v6708_v5, 2  ;;  %v1998_v45 = vrot.slane %v6708_v5, 1 }
 0x327   : > { %v1694_v12 = vpop.f32.mrf.mxu3 }
 0x328   : > { %v1784_v17 = vadd.f32 %v6581_v42, %v1694_v12  ;;  %v2158_v60 = vsel %vm2145_vm8, %v2155_v15, %v2157_v7  ;;  %v2078_v26 = vsel %vm666_vm1, %v2075_v27, %v2077_v44  ;;  %v1999_v46 = vsel %vm506_vm0, %v1996_v28, %v1998_v45  ;;  %v4525_v42 = vld [vmem:[%s7886_s4 + $0xe8] sm:$0xf0]  ;;  %v4976_v28 = vld [vmem:[%s7886_s4 + $0xd4] sm:$0xf] }
 0x329   : > { %v5309_v25 = vpack.i.bf16 %v2158_v60, %v2156_v63  ;;  %v5304_v22 = vpack.i.bf16 %v2078_v26, %v2076_v16  ;;  %v5299_v15 = vpack.i.bf16 %v1999_v46, %v1997_v51  ;;  %v4528_v43 = vor.u32 %v4978_v31, %v4525_v42  ;;  %2961 = vmatpush.bf16.msra.mxu3 %v4416_v57  ;;  %v4483_v31 = vld [vmem:[%s7886_s4 + $0x90] sm:$0xf]  ;;  %v4969_v42 = vld [vmem:[%s7886_s4 + $0x94] sm:$0xf0] }
 0x32a   : > { %v1841_v27 = vmax.f32 %v1518_v32, %v1784_v17  ;;  %v4520_v49 = vor.u32 %v4976_v28, %v4517_v1  ;;  %v1521_v32 = vadd.f32 %v6382_v58, %v6615_v9  ;;  %v4972_v58 = vld [vmem:[%s7886_s4 + $0xb4] sm:$0xf]  ;;  %v4501_v9 = vld [vmem:[%s7886_s4 + $0xb8] sm:$0xf0]  ;;  %v1523_v16 = vadd.f32 %v6386_v62, %v6644_v18  ;;  %v6798_v51 = vpop.f32.mrf.mxu0  ;;  %v4970_v17 = vld [vmem:[%s7886_s4 + $0xa4] sm:$0xf] }
 0x32b   : > { %5310 = vrot.lane.b32.xlu1 %v5309_v25, %s7919_s16  ;;  %5305 = vrot.lane.b32.xlu0 %v5304_v22, %s7920_s27  ;;  %v4492_v60 = vor.u32 %v4971_v0, %v4491_v41  ;;  %v4493_v62 = vld [vmem:[%s7886_s4 + $0xa8] sm:$0xf0]  ;;  %v4484_v25 = vor.u32 %v4969_v42, %v4483_v31  ;;  %v4968_v22 = vld [vmem:[%s7886_s4 + $0x94] sm:$0xf]  ;;  %v1526_v28 = vadd.f32 %v6389_v47, %v6687_v23 }
 0x32c   : > { %1874 = vst.msk [vmem:[#allocation2 + $0x78] sm:$0xff] %vm1858_vm7, %v1841_v27  ;;  %5300 = vrot.lane.b32.xlu2 %v5299_v15, %s7905_s21  ;;  %3004 = vmatpush.bf16.msra.mxu0 %v4528_v43  ;;  %v6787_v12 = vpop.f32.mrf.mxu2  ;;  %v4485_v15 = vld [vmem:[%s7886_s4 + $0x98] sm:$0xf0]  ;;  %v4477_v47 = vld [vmem:[%s7886_s4 + $0x88] sm:$0xf0] }
 0x32d   : > { %2812 = vmatpush.bf16.msrb.mxu2 %v4492_v60  ;;  %v4488_v57 = vor.u32 %v4968_v22, %v4485_v15 }
 0x32f   : > { %v1697_v8 = vpop.f32.mrf.mxu3 }
 0x330   : > { %v1787_v33 = vadd.f32 %v6634_v4, %v1697_v8  ;;  %3005 = vmatpush.bf16.msra.mxu0 %v4520_v49  ;;  %v4504_v4 = vor.u32 %v4972_v58, %v4501_v9  ;;  %v4475_v49 = vld [vmem:[%s7886_s4 + $0x80] sm:$0xf]  ;;  %v4967_v8 = vld [vmem:[%s7886_s4 + $0x84] sm:$0xf0] }
 0x331   : > { %2813 = vmatpush.bf16.msrb.mxu2 %v4484_v25 }
 0x332   : > { %v1842_v14 = vmax.f32 %v1521_v32, %v1787_v33  ;;  %v4966_v32 = vld [vmem:[%s7886_s4 + $0x84] sm:$0xf]  ;;  %v4476_v33 = vor.u32 %v4967_v8, %v4475_v49  ;;  %v1798_v23 = vpop.f32.mrf.mxu0 }
 0x333   : > { %v1906_v26 = vld [vmem:[#allocation2 + $0x70] ss:$2 sm:$0xff]  ;;  %v1938_v46 = vld [vmem:[#allocation2 + $0x71] ss:$2 sm:$0xff]  ;;  %v4480_v37 = vor.u32 %v4966_v32, %v4477_v47 }
 0x334   : > { %1875 = vst.msk [vmem:[#allocation2 + $0x80] sm:$0xff] %vm1858_vm7, %v1842_v14  ;;  %3006 = vmatpush.bf16.msra.mxu0 %v4512_v36  ;;  %v6826_v13 = vpop.f32.mrf.mxu2  ;;  %v6828_v27 = vmax.f32 %v1906_v26, %v1938_v46 }
 0x335   : > { %2814 = vmatpush.bf16.msrb.mxu2 %v4476_v33  ;;  %v1533_v47 = vadd.f32 %v6400_v10, %v6826_v13 }
 0x336   : > { %v2159_v38 = vrot.slane %v6828_v27, 3  ;;  %v2079_v58 = vrot.slane %v6828_v27, 2  ;;  %v2000_v9 = vrot.slane %v6828_v27, 1 }
 0x337   : > { %v1699_v63 = vpop.f32.mrf.mxu3 }
 0x338   : > { %v1789_v54 = vadd.f32 %v6655_v24, %v1699_v63  ;;  %3007 = vmatpush.bf16.msra.mxu0 %v4504_v4  ;;  %v4496_v24 = vor.u32 %v4970_v17, %v4493_v62  ;;  %v1528_v63 = vadd.f32 %v6393_v52, %v6764_v39  ;;  %v2001_v52 = vsel %vm506_vm0, %v1998_v45, %v2000_v9 }
 0x33a   : > { %v1843_v18 = vmax.f32 %v1523_v16, %v1789_v54  ;;  %v2160_v54 = vsel %vm2145_vm8, %v2157_v7, %v2159_v38 }
 0x33c   : > { %1876 = vst.msk [vmem:[#allocation2 + $0x88] sm:$0xff] %vm1858_vm7, %v1843_v18  ;;  %3008 = vmatpush.bf16.msra.mxu0 %v4496_v24  ;;  %v2080_v24 = vsel %vm666_vm1, %v2077_v44, %v2079_v58  ;;  %v1446_v39 = vpop.f32.mrf.mxu2 }
 0x33d   : > { %v1536_v13 = vadd.f32 %v6403_v48, %v1446_v39 }
 0x33f   : > { %v1702_v43 = vpop.f32.mrf.mxu3 }
 0x340   : > { %v1792_v1 = vadd.f32 %v6705_v34, %v1702_v43  ;;  %3009 = vmatpush.bf16.msra.mxu0 %v4488_v57  ;;  %v1801_v57 = vpop.f32.mrf.mxu0 }
 0x342   : > { %v1844_v34 = vmax.f32 %v1526_v28, %v1792_v1  ;;  %v1531_v28 = vadd.f32 %v6396_v19, %v6787_v12 }
 0x343   : > { %v1908_v36 = vld [vmem:[#allocation2 + $0x80] ss:$2 sm:$0xff]  ;;  %v1940_v14 = vld [vmem:[#allocation2 + $0x81] ss:$2 sm:$0xff] }
 0x344   : > { %1877 = vst.msk [vmem:[#allocation2 + $0x90] sm:$0xff] %vm1858_vm7, %v1844_v34  ;;  %v6849_v4 = vmax.f32 %v1908_v36, %v1940_v14  ;;  %3010 = vmatpush.bf16.msra.mxu0 %v4480_v37  ;;  %v1448_v49 = vpop.f32.mrf.mxu2 }
 0x346   : > { %v5271_v16 = vpop.permute.xlu2 %5270  ;;  %v2161_v41 = vrot.slane %v6849_v4, 3  ;;  %v2081_v0 = vrot.slane %v6849_v4, 2  ;;  %v2002_v17 = vrot.slane %v6849_v4, 1 }
 0x347   : > { %v5273_v60 = vunpack.i.h.bf16 %v5271_v16  ;;  %v5272_v62 = vunpack.i.l.bf16 %v5271_v16  ;;  %v1704_v18 = vpop.f32.mrf.mxu3 }
 0x348   : > { %v1794_v7 = vadd.f32 %v6776_v53, %v1704_v18  ;;  %v2162_v26 = vsel %vm2145_vm8, %v2159_v38, %v2161_v41  ;;  %v2082_v46 = vsel %vm666_vm1, %v2079_v58, %v2081_v0  ;;  %v2003_v31 = vsel %vm506_vm0, %v2000_v9, %v2002_v17  ;;  %v1803_v32 = vpop.f32.mrf.mxu0 }
 0x349   : > { %v2305_v44 = vsel %vm1858_vm7, %v6492_v6, %v5273_v60  ;;  %v2304_v45 = vsel %vm1858_vm7, %v6495_v35, %v5272_v62  ;;  %v5324_v42 = vpack.i.bf16 %v2162_v26, %v2160_v54  ;;  %v5319_v53 = vpack.i.bf16 %v2082_v46, %v2080_v24 }
 0x34a   : > { %v2423_v25 = vpack.c.bf16 %v2305_v44, %v2304_v45  ;;  %v1845_v22 = vmax.f32 %v1528_v63, %v1794_v7  ;;  %v5314_v15 = vpack.i.bf16 %v2003_v31, %v2001_v52  ;;  %v1538_v45 = vadd.f32 %v6407_v50, %v1448_v49 }
 0x34b   : > { %5325 = vrot.lane.b32.xlu1 %v5324_v42, %s7919_s16  ;;  %5320 = vrot.lane.b32.xlu0 %v5319_v53, %s7920_s27 }
 0x34c   : > { %1878 = vst.msk [vmem:[#allocation2 + $0x98] sm:$0xff] %vm1858_vm7, %v1845_v22  ;;  %2766 = vmatmul.bf16.vlgmr.msrb.gmra.mxu1 %v2423_v25  ;;  %2962 = vmatmul.bf16.vlgmr.msra.gmra.mxu3 %v2423_v25  ;;  %v1451_v14 = vpop.f32.mrf.mxu2 }
 0x34d   : > { %5315 = vrot.lane.b32.xlu2 %v5314_v15, %s7921_s24 }
 0x34f   : > { %v1707_v43 = vpop.f32.mrf.mxu3 }
 0x350   : > { %v1797_v1 = vadd.f32 %v6798_v51, %v1707_v43 }
 0x352   : > { %v1846_v8 = vmax.f32 %v1531_v28, %v1797_v1 }
 0x353   : > { %v1910_v37 = vld [vmem:[#allocation2 + $0x90] ss:$2 sm:$0xff]  ;;  %v1942_v36 = vld [vmem:[#allocation2 + $0x91] ss:$2 sm:$0xff] }
 0x354   : > { %1879 = vst.msk [vmem:[#allocation2 + $0xa0] sm:$0xff] %vm1858_vm7, %v1846_v8  ;;  %v6892_v12 = vmax.f32 %v1910_v37, %v1942_v36  ;;  %v1453_v42 = vpop.f32.mrf.mxu2 }
 0x356   : > { %v2163_v31 = vrot.slane %v6892_v12, 3  ;;  %v2083_v39 = vrot.slane %v6892_v12, 2 }
 0x357   : > { %v1709_v33 = vpop.f32.mrf.mxu3 }
 0x358   : > { %v1799_v34 = vadd.f32 %v1798_v23, %v1709_v33  ;;  %v1806_v23 = vpop.f32.mrf.mxu0  ;;  %v2164_v25 = vsel %vm2145_vm8, %v2161_v41, %v2163_v31  ;;  %v2084_v8 = vsel %vm666_vm1, %v2081_v0, %v2083_v39 }
 0x35a   : > { %v1847_v38 = vmax.f32 %v1533_v47, %v1799_v34 }
 0x35c   : > { %1880 = vst.msk [vmem:[#allocation2 + $0xa8] sm:$0xff] %vm1858_vm7, %v1847_v38 }
 0x35d   : > { %v6890_v58 = vpop.permute.xlu1 %5280  ;;  %v5276_v19 = vpop.permute.xlu0 %5275 }
 0x35e   : > { %v5283_v51 = vunpack.i.h.bf16 %v6890_v58  ;;  %v5282_v9 = vunpack.i.l.bf16 %v6890_v58  ;;  %v5278_v63 = vunpack.i.h.bf16 %v5276_v19  ;;  %v5277_v16 = vunpack.i.l.bf16 %v5276_v19 }
 0x35f   : > { %v1712_v10 = vpop.f32.mrf.mxu3 }
 0x360   : > { %v2320_v54 = vsel %vm1329_vm6, %v5272_v62, %v5277_v16  ;;  %v2321_v18 = vsel %vm1329_vm6, %v5273_v60, %v5278_v63  ;;  %v1802_v24 = vadd.f32 %v1801_v57, %v1712_v10  ;;  %v2004_v62 = vrot.slane %v6892_v12, 1  ;;  %v1808_v38 = vpop.f32.mrf.mxu0  ;;  %v1456_v10 = vpop.f32.mrf.mxu2 }
 0x361   : > { %v2337_v52 = vsel %vm2336_vm9, %v2320_v54, %v5282_v9  ;;  %v2338_v7 = vsel %vm2336_vm9, %v2321_v18, %v5283_v51  ;;  %v1541_v16 = vadd.f32 %v6410_v3, %v1451_v14 }
 0x362   : > { %v1848_v26 = vmax.f32 %v1536_v13, %v1802_v24  ;;  %v2424_v46 = vpack.c.bf16 %v2338_v7, %v2337_v52  ;;  %v2005_v50 = vsel %vm506_vm0, %v2002_v17, %v2004_v62  ;;  %v1543_v52 = vadd.f32 %v6413_v29, %v1453_v42 }
 0x363   : > { %v1912_v44 = vld [vmem:[#allocation2 + $0xa0] ss:$2 sm:$0xff]  ;;  %v1944_v48 = vld [vmem:[#allocation2 + $0xa1] ss:$2 sm:$0xff]  ;;  %v1546_v42 = vadd.f32 %v6416_v20, %v1456_v10 }
 0x364   : > { %1881 = vst.msk [vmem:[#allocation2 + $0xb0] sm:$0xff] %vm1858_vm7, %v1848_v26  ;;  %2815 = vmatmul.bf16.vlgmr.msrb.gmra.mxu2 %v2424_v46  ;;  %3011 = vmatmul.bf16.vlgmr.msra.gmra.mxu0 %v2424_v46  ;;  %v6909_v60 = vmax.f32 %v1912_v44, %v1944_v48 }
 0x366   : > { %v5286_v53 = vpop.permute.xlu2 %5285  ;;  %v2165_v22 = vrot.slane %v6909_v60, 3  ;;  %v2085_v15 = vrot.slane %v6909_v60, 2  ;;  %v2006_v57 = vrot.slane %v6909_v60, 1 }
 0x367   : > { %v5288_v43 = vunpack.i.h.bf16 %v5286_v53  ;;  %v5287_v28 = vunpack.i.l.bf16 %v5286_v53  ;;  %v1714_v1 = vpop.f32.mrf.mxu3 }
 0x368   : > { %v1804_v49 = vadd.f32 %v1803_v32, %v1714_v1  ;;  %v2166_v41 = vsel %vm2145_vm8, %v2163_v31, %v2165_v22  ;;  %v2086_v33 = vsel %vm666_vm1, %v2083_v39, %v2085_v15  ;;  %v2007_v47 = vsel %vm506_vm0, %v2004_v62, %v2006_v57  ;;  %v1811_v18 = vpop.f32.mrf.mxu0  ;;  %v1458_v26 = vpop.f32.mrf.mxu2 }
 0x369   : > { %v2306_v0 = vsel %vm1858_vm7, %v6504_v2, %v5287_v28  ;;  %v2307_v34 = vsel %vm1858_vm7, %v6562_v40, %v5288_v43  ;;  %v5339_v17 = vpack.i.bf16 %v2166_v41, %v2164_v25  ;;  %v5334_v32 = vpack.i.bf16 %v2086_v33, %v2084_v8 }
 0x36a   : > { %v1849_v37 = vmax.f32 %v1538_v45, %v1804_v49  ;;  %v2427_v36 = vpack.c.bf16 %v2307_v34, %v2306_v0  ;;  %v5329_v19 = vpack.i.bf16 %v2007_v47, %v2005_v50 }
 0x36b   : > { %5340 = vrot.lane.b32.xlu1 %v5339_v17, %s7919_s16  ;;  %5335 = vrot.lane.b32.xlu0 %v5334_v32, %s7920_s27  ;;  %v1548_v32 = vadd.f32 %v6421_v61, %v1458_v26 }
 0x36c   : > { %1882 = vst.msk [vmem:[#allocation2 + $0xb8] sm:$0xff] %vm1858_vm7, %v1849_v37  ;;  %2771 = vmatmul.bf16.gmra.mxu1 %v2427_v36  ;;  %2967 = vmatmul.bf16.gmra.mxu3 %v2427_v36 }
 0x36d   : > { %5330 = vrot.lane.b32.xlu2 %v5329_v19, %s7921_s24 }
 0x36f   : > { %v1717_v63 = vpop.f32.mrf.mxu3 }
 0x370   : > { %v1807_v13 = vadd.f32 %v1806_v23, %v1717_v63  ;;  %v1813_v14 = vpop.f32.mrf.mxu0 }
 0x372   : > { %v1850_v54 = vmax.f32 %v1541_v16, %v1807_v13 }
 0x373   : > { %v1914_v31 = vld [vmem:[#allocation2 + $0xb0] ss:$2 sm:$0xff]  ;;  %v1946_v44 = vld [vmem:[#allocation2 + $0xb1] ss:$2 sm:$0xff] }
 0x374   : > { %1883 = vst.msk [vmem:[#allocation2 + $0xc0] sm:$0xff] %vm1858_vm7, %v1850_v54  ;;  %v6947_v3 = vmax.f32 %v1914_v31, %v1946_v44 }
 0x376   : > { %v2167_v47 = vrot.slane %v6947_v3, 3  ;;  %v2087_v20 = vrot.slane %v6947_v3, 2 }
 0x377   : > { %v1719_v24 = vpop.f32.mrf.mxu3 }
 0x378   : > { %v1809_v7 = vadd.f32 %v1808_v38, %v1719_v24  ;;  %v2168_v37 = vsel %vm2145_vm8, %v2165_v22, %v2167_v47  ;;  %v2088_v54 = vsel %vm666_vm1, %v2085_v15, %v2087_v20 }
 0x37a   : > { %v1851_v46 = vmax.f32 %v1543_v52, %v1809_v7 }
 0x37c   : > { %1884 = vst.msk [vmem:[#allocation2 + $0xc8] sm:$0xff] %vm1858_vm7, %v1851_v46 }
 0x37d   : > { %v6945_v48 = vpop.permute.xlu1 %5295  ;;  %v5291_v39 = vpop.permute.xlu0 %5290 }
 0x37e   : > { %v5298_v23 = vunpack.i.h.bf16 %v6945_v48  ;;  %v5297_v62 = vunpack.i.l.bf16 %v6945_v48  ;;  %v5293_v45 = vunpack.i.h.bf16 %v5291_v39  ;;  %v5292_v53 = vunpack.i.l.bf16 %v5291_v39 }
 0x37f   : > { %v1722_v29 = vpop.f32.mrf.mxu3 }
 0x380   : > { %v2322_v25 = vsel %vm1329_vm6, %v5287_v28, %v5292_v53  ;;  %v2323_v1 = vsel %vm1329_vm6, %v5288_v43, %v5293_v45  ;;  %v1812_v8 = vadd.f32 %v1811_v18, %v1722_v29  ;;  %v2008_v28 = vrot.slane %v6947_v3, 1  ;;  %v1461_v43 = vpop.f32.mrf.mxu2  ;;  %v1816_v18 = vpop.f32.mrf.mxu0 }
 0x381   : > { %v2339_v50 = vsel %vm2336_vm9, %v2322_v25, %v5297_v62  ;;  %v2340_v49 = vsel %vm2336_vm9, %v2323_v1, %v5298_v23  ;;  %v1551_v53 = vadd.f32 %v6424_v55, %v1461_v43 }
 0x382   : > { %v1852_v41 = vmax.f32 %v1546_v42, %v1812_v8  ;;  %v2428_v33 = vpack.c.bf16 %v2340_v49, %v2339_v50  ;;  %v2009_v61 = vsel %vm506_vm0, %v2006_v57, %v2008_v28 }
 0x383   : > { %v1916_v0 = vld [vmem:[#allocation2 + $0xc0] ss:$2 sm:$0xff]  ;;  %v1948_v34 = vld [vmem:[#allocation2 + $0xc1] ss:$2 sm:$0xff] }
 0x384   : > { %1885 = vst.msk [vmem:[#allocation2 + $0xd0] sm:$0xff] %vm1858_vm7, %v1852_v41  ;;  %2820 = vmatmul.bf16.gmra.mxu2 %v2428_v33  ;;  %3016 = vmatmul.bf16.gmra.mxu0 %v2428_v33  ;;  %v6964_v17 = vmax.f32 %v1916_v0, %v1948_v34 }
 0x386   : > { %v5301_v38 = vpop.permute.xlu2 %5300  ;;  %v2169_v36 = vrot.slane %v6964_v17, 3  ;;  %v2089_v19 = vrot.slane %v6964_v17, 2  ;;  %v2010_v63 = vrot.slane %v6964_v17, 1 }
 0x387   : > { %v5303_v16 = vunpack.i.h.bf16 %v5301_v38  ;;  %v5302_v10 = vunpack.i.l.bf16 %v5301_v38  ;;  %v1724_v13 = vpop.f32.mrf.mxu3 }
 0x388   : > { %v1814_v24 = vadd.f32 %v1813_v14, %v1724_v13  ;;  %v2170_v22 = vsel %vm2145_vm8, %v2167_v47, %v2169_v36  ;;  %v2090_v52 = vsel %vm666_vm1, %v2087_v20, %v2089_v19  ;;  %v2011_v7 = vsel %vm506_vm0, %v2008_v28, %v2010_v63  ;;  %v1463_v14 = vpop.f32.mrf.mxu2  ;;  %v1818_v42 = vpop.f32.mrf.mxu0 }
 0x389   : > { %v2308_v15 = vsel %vm1858_vm7, %v6573_v56, %v5302_v10  ;;  %v2309_v57 = vsel %vm1858_vm7, %v6671_v11, %v5303_v16  ;;  %v5354_v26 = vpack.i.bf16 %v2170_v22, %v2168_v37  ;;  %v5349_v46 = vpack.i.bf16 %v2090_v52, %v2088_v54 }
 0x38a   : > { %v1853_v31 = vmax.f32 %v1548_v32, %v1814_v24  ;;  %v2431_v44 = vpack.c.bf16 %v2309_v57, %v2308_v15  ;;  %v5344_v39 = vpack.i.bf16 %v2011_v7, %v2009_v61  ;;  %v1553_v8 = vadd.f32 %v6429_v59, %v1463_v14 }
 0x38b   : > { %5355 = vrot.lane.b32.xlu1 %v5354_v26, %s7919_s16  ;;  %5350 = vrot.lane.b32.xlu0 %v5349_v46, %s7920_s27  ;;  %v7024_v46 = vld [vmem:[%s7886_s4 + $0x1a0] sm:$0x33] }
 0x38c   : > { %1886 = vst.msk [vmem:[#allocation2 + $0xd8] sm:$0xff] %vm1858_vm7, %v1853_v31  ;;  %2776 = vmatmul.bf16.gmra.mxu1 %v2431_v44  ;;  %2972 = vmatmul.bf16.gmra.mxu3 %v2431_v44  ;;  %v2618_v44 = vunpack.c.l.b16 %v7024_v46 }
 0x38d   : > { %5345 = vrot.lane.b32.xlu2 %v5344_v39, %s7921_s24 }
 0x38f   : > { %v1727_v45 = vpop.f32.mrf.mxu3 }
 0x390   : > { %v1817_v29 = vadd.f32 %v1816_v18, %v1727_v45  ;;  %v1466_v50 = vpop.f32.mrf.mxu2  ;;  %v1821_v0 = vpop.f32.mrf.mxu0 }
 0x391   : > { %v1556_v37 = vadd.f32 %v6432_v21, %v1466_v50 }
 0x392   : > { %v1854_v25 = vmax.f32 %v1551_v53, %v1817_v29 }
 0x393   : > { %v1918_v33 = vld [vmem:[#allocation2 + $0xd0] ss:$2 sm:$0xff]  ;;  %v1950_v47 = vld [vmem:[#allocation2 + $0xd1] ss:$2 sm:$0xff] }
 0x394   : > { %1887 = vst.msk [vmem:[#allocation2 + $0xe0] sm:$0xff] %vm1858_vm7, %v1854_v25  ;;  %v7002_v55 = vmax.f32 %v1918_v33, %v1950_v47 }
 0x396   : > { %v2171_v15 = vrot.slane %v7002_v55, 3 }
 0x397   : > { %v1729_v1 = vpop.f32.mrf.mxu3 }
 0x398   : > { %v1819_v49 = vadd.f32 %v1818_v42, %v1729_v1  ;;  %v1468_v22 = vpop.f32.mrf.mxu2  ;;  %v1823_v39 = vpop.f32.mrf.mxu0  ;;  %v2172_v25 = vsel %vm2145_vm8, %v2169_v36, %v2171_v15 }
 0x399   : > { %v1558_v31 = vadd.f32 %v6440_v30, %v1468_v22 }
 0x39a   : > { %v1855_v41 = vmax.f32 %v1553_v8, %v1819_v49  ;;  %v2672_v8 = vpack.c.b16 %v2618_v44, %v2618_v44  ;;  %v4995_v44 = vld [vmem:[%s7886_s4 + $0x164] sm:$0xf0] }
 0x39c   : > { %1888 = vst.msk [vmem:[#allocation2 + $0xe8] sm:$0xff] %vm1858_vm7, %v1855_v41 }
 0x39d   : > { %v7000_v34 = vpop.permute.xlu1 %5310  ;;  %v5306_v20 = vpop.permute.xlu0 %5305 }
 0x39e   : > { %v5313_v28 = vunpack.i.h.bf16 %v7000_v34  ;;  %v5312_v43 = vunpack.i.l.bf16 %v7000_v34  ;;  %v5308_v32 = vunpack.i.h.bf16 %v5306_v20  ;;  %v5307_v38 = vunpack.i.l.bf16 %v5306_v20  ;;  %v5000_v34 = vld [vmem:[%s7886_s4 + $0x194] sm:$0xf] }
 0x39f   : > { %v1732_v59 = vpop.f32.mrf.mxu3  ;;  %v2753_v20 = vsel %vm2751_vm11, %v2672_v8, 0 }
 0x3a0   : > { %v2324_v13 = vsel %vm1329_vm6, %v5302_v10, %v5307_v38  ;;  %v2325_v54 = vsel %vm1329_vm6, %v5303_v16, %v5308_v32  ;;  %v1822_v61 = vadd.f32 %v1821_v0, %v1732_v59  ;;  %v2091_v10 = vrot.slane %v7002_v55, 2  ;;  %2910 = vmatpush.bf16.msra.mxu2 %v2753_v20  ;;  %v4595_v59 = vld [vmem:[%s7886_s4 + $0x170] sm:$0xf] }
 0x3a1   : > { %v2341_v18 = vsel %vm2336_vm9, %v2324_v13, %v5312_v43  ;;  %v2342_v24 = vsel %vm2336_vm9, %v2325_v54, %v5313_v28  ;;  %v2012_v16 = vrot.slane %v7002_v55, 1 }
 0x3a2   : > { %v1856_v52 = vmax.f32 %v1556_v37, %v1822_v61  ;;  %v2432_v7 = vpack.c.bf16 %v2342_v24, %v2341_v18  ;;  %v2092_v30 = vsel %vm666_vm1, %v2089_v19, %v2091_v10  ;;  %v4997_v37 = vld [vmem:[%s7886_s4 + $0x174] sm:$0xf0] }
 0x3a3   : > { %v1920_v57 = vld [vmem:[#allocation2 + $0xe0] ss:$2 sm:$0xff]  ;;  %v1952_v21 = vld [vmem:[#allocation2 + $0xe1] ss:$2 sm:$0xff]  ;;  %v2013_v1 = vsel %vm506_vm0, %v2010_v63, %v2012_v16  ;;  %v4596_v61 = vor.u32 %v4997_v37, %v4595_v59 }
 0x3a4   : > { %1889 = vst.msk [vmem:[#allocation2 + $0xf0] sm:$0xff] %vm1858_vm7, %v1856_v52  ;;  %2825 = vmatmul.bf16.gmra.mxu2 %v2432_v7  ;;  %3021 = vmatmul.bf16.gmra.mxu0 %v2432_v7  ;;  %v7019_v26 = vmax.f32 %v1920_v57, %v1952_v21 }
 0x3a5   : > { %2856 = vmatpush.bf16.msra.mxu1 %v4596_v61  ;;  %v2246_v61 = vrot.slane %v6947_v3, 4 }
 0x3a6   : > { %v2173_v14 = vrot.slane %v7019_v26, 3  ;;  %v2093_v45 = vrot.slane %v7019_v26, 2  ;;  %v2014_v53 = vrot.slane %v7019_v26, 1 }
 0x3a7   : > { %v7031_v29 = vpop.permute.xlu2 %5315  ;;  %v1734_v42 = vpop.f32.mrf.mxu3 }
 0x3a8   : > { %v5318_v50 = vunpack.i.h.bf16 %v7031_v29  ;;  %v5317_v49 = vunpack.i.l.bf16 %v7031_v29  ;;  %v1824_v41 = vadd.f32 %v1823_v39, %v1734_v42  ;;  %v2174_v33 = vsel %vm2145_vm8, %v2171_v15, %v2173_v14 }
 0x3a9   : > { %v5369_v47 = vpack.i.bf16 %v2174_v33, %v2172_v25  ;;  %v2094_v0 = vsel %vm666_vm1, %v2091_v10, %v2093_v45  ;;  %v2015_v36 = vsel %vm506_vm0, %v2012_v16, %v2014_v53  ;;  %v2232_v16 = vrot.slane %v6573_v56, 4 }
 0x3aa   : > { %v1857_v19 = vmax.f32 %v1558_v31, %v1824_v41  ;;  %v2310_v32 = vsel %vm1858_vm7, %v6708_v5, %v5317_v49  ;;  %v2311_v63 = vsel %vm1858_vm7, %v6828_v27, %v5318_v50  ;;  %v5364_v38 = vpack.i.bf16 %v2094_v0, %v2092_v30  ;;  %v4587_v31 = vld [vmem:[%s7886_s4 + $0x160] sm:$0xf] }
 0x3ab   : > { %v2435_v13 = vpack.c.bf16 %v2311_v63, %v2310_v32  ;;  %5370 = vrot.lane.b32.xlu1 %v5369_v47, %s7919_s16  ;;  %v5359_v54 = vpack.i.bf16 %v2015_v36, %v2013_v1  ;;  %v2236_v30 = vrot.slane %v6708_v5, 4  ;;  %v2234_v56 = vrot.slane %v6671_v11, 4 }
 0x3ac   : > { %1891 = vst.msk [vmem:[#allocation2 + $0xf8] sm:$0xf] %vm1890_vm10, %v1857_v19  ;;  %5365 = vrot.lane.b32.xlu0 %v5364_v38, %s7920_s27  ;;  %v2226_v1 = vrot.slane %v6492_v6, 4  ;;  %v2225_v47 = vrot.slane %v6495_v35, 4  ;;  %v2244_v29 = vrot.slane %v6909_v60, 4 }
 0x3ad   : > { %2781 = vmatmul.bf16.gmra.mxu1 %v2435_v13  ;;  %2977 = vmatmul.bf16.gmra.mxu3 %v2435_v13  ;;  %v2237_v5 = vsel %vm1378_vm5, %v2234_v56, %v2236_v30  ;;  %v2235_v32 = vsel %vm1378_vm5, %v2232_v16, %v2234_v56 }
 0x3ae   : > { %5360 = vrot.lane.b32.xlu2 %v5359_v54, %s7921_s24  ;;  %v2227_v6 = vsel %vm1378_vm5, %v2225_v47, %v2226_v1  ;;  %v5399_v63 = vpack.i.bf16 %v2237_v5, %v2235_v32  ;;  %v2240_v54 = vrot.slane %v6849_v4, 4  ;;  %v5001_v47 = vld [vmem:[%s7886_s4 + $0x194] sm:$0xf0] }
 0x3b3   : > { %v1922_v18 = vld [vmem:[#allocation2 + $0xf0] ss:$2 sm:$0xff]  ;;  %v1954_v24 = vld [vmem:[#allocation2 + $0xf1] ss:$2 sm:$0xff] }
 0x3b4   : > { %v7064_v22 = vmax.f32 %v1922_v18, %v1954_v24  ;;  %v2242_v18 = vrot.slane %v6892_v12, 4  ;;  %v2238_v24 = vrot.slane %v6828_v27, 4 }
 0x3b6   : > { %v2175_v52 = vrot.slane %v7064_v22, 3  ;;  %v2095_v7 = vrot.slane %v7064_v22, 2  ;;  %v2016_v15 = vrot.slane %v7064_v22, 1  ;;  %v2254_v56 = vrot.slane %v7064_v22, 4 }
 0x3b8   : > { %v2176_v57 = vsel %vm2145_vm8, %v2173_v14, %v2175_v52  ;;  %v2096_v21 = vsel %vm666_vm1, %v2093_v45, %v2095_v7  ;;  %v2017_v10 = vsel %vm506_vm0, %v2014_v53, %v2016_v15  ;;  %v4588_v14 = vor.u32 %v4995_v44, %v4587_v31 }
 0x3b9   : > { %v5384_v39 = vpack.i.bf16 %v2175_v52, %v2176_v57  ;;  %v5379_v42 = vpack.i.bf16 %v2095_v7, %v2096_v21  ;;  %v5374_v25 = vpack.i.bf16 %v2016_v15, %v2017_v10  ;;  %v2228_v45 = vrot.slane %v6504_v2, 4 }
 0x3ba   : > { %v2230_v53 = vrot.slane %v6562_v40, 4  ;;  %2857 = vmatpush.bf16.msra.mxu1 %v4588_v14  ;;  %v2245_v7 = vsel %vm1378_vm5, %v2242_v18, %v2244_v29  ;;  %v2241_v57 = vsel %vm1378_vm5, %v2238_v24, %v2240_v54  ;;  %v2243_v31 = vsel %vm1378_vm5, %v2240_v54, %v2242_v18 }
 0x3bb   : > { %5385 = vrot.lane.b32.xlu1 %v5384_v39, %s7919_s16  ;;  %5380 = vrot.lane.b32.xlu0 %v5379_v42, %s7920_s27  ;;  %v2229_v36 = vsel %vm1378_vm5, %v2226_v1, %v2228_v45  ;;  %s5501_s16 = smov 80   ;;  %v5409_v39 = vpack.i.bf16 %v2245_v7, %v2243_v31  ;;  %v2239_v42 = vsel %vm1378_vm5, %v2236_v30, %v2238_v24  ;;  %vm3893_vm0 = vcmask 130048   ;;  %s4915_s27 = sshll.u32 %s5594_s29, 3 }
 0x3bc   : > { %5375 = vrot.lane.b32.xlu2 %v5374_v25, %s7921_s24  ;;  %v2233_v33 = vsel %vm1378_vm5, %v2230_v53, %v2232_v16  ;;  %v2231_v35 = vsel %vm1378_vm5, %v2228_v45, %v2230_v53  ;;  %v5389_v13 = vpack.i.bf16 %v2229_v36, %v2227_v6  ;;  %v2247_v16 = vsel %vm1378_vm5, %v2244_v29, %v2246_v61  ;;  %v4579_v45 = vld [vmem:[%s7886_s4 + $0x150] sm:$0xf]  ;;  %v4993_v53 = vld [vmem:[%s7886_s4 + $0x154] sm:$0xf0]  ;;  %s4125_s21 = scalar_lea.hbm %s7895_s13, %s4915_s27 }
 0x3bd   : > { %v7087_v8 = vpop.permute.xlu1 %5325  ;;  %v5321_v41 = vpop.permute.xlu0 %5320  ;;  %v5394_v38 = vpack.i.bf16 %v2233_v33, %v2231_v35  ;;  %v5404_v14 = vpack.i.bf16 %v2241_v57, %v2239_v42  ;;  %v4580_v30 = vor.u32 %v4993_v53, %v4579_v45  ;;  %v4611_v33 = vld [vmem:[%s7886_s4 + $0x190] sm:$0xf]  ;;  %v4989_v42 = vld [vmem:[%s7886_s4 + $0x134] sm:$0xf0]  ;;  %v4999_v45 = vld [vmem:[%s7886_s4 + $0x184] sm:$0xf0] }
 0x3be   : > { %v5328_v11 = vunpack.i.h.bf16 %v7087_v8  ;;  %v5327_v2 = vunpack.i.l.bf16 %v7087_v8  ;;  %v5323_v0 = vunpack.i.h.bf16 %v5321_v41  ;;  %v5322_v40 = vunpack.i.l.bf16 %v5321_v41  ;;  %s4129_s0 = sshll.u32 %s4125_s21, 4  ;;  %s4130_s0 = int_to_ptr.hbm [resolvable:$true] %s4129_s0 }
 0x3bf   : > { %2858 = vmatpush.bf16.msra.mxu1 %v4580_v30  ;;  %v4612_v6 = vor.u32 %v5001_v47, %v4611_v33  ;;  %s5446_s29 = sshra.s32 %s4130_s0, 4  ;;  %s5447_s29 = int_to_ptr.hbm [resolvable:$true] %s5446_s29 }
 0x3c0   : > { %v2326_v20 = vsel %vm1329_vm6, %v5317_v49, %v5322_v40  ;;  %v2327_v19 = vsel %vm1329_vm6, %v5318_v50, %v5323_v0  ;;  %v2248_v50 = vrot.slane %v6964_v17, 4  ;;  %s5448_s2 = scalar_lea.hbm %s5447_s29, 8  ;;  %p5453_p0 = scmp.lt.s32.totalorder %s5447_s29, %s7895_s13 }
 0x3c1   : > { %v2343_v59 = vsel %vm2336_vm9, %v2326_v20, %v5327_v2  ;;  %v2344_v37 = vsel %vm2336_vm9, %v2327_v19, %v5328_v11  ;;  %2911 = vmatpush.bf16.msra.mxu2 %v4612_v6  ;;  %v4571_v20 = vld [vmem:[%s7886_s4 + $0x140] sm:$0xf]  ;;  %v4991_v19 = vld [vmem:[%s7886_s4 + $0x144] sm:$0xf0]  ;;  %p5449_p11 = scmp.ne.s32.totalorder %s5447_s29, %s5448_s2  ;;  %p5454_p1 = scmp.lt.s32.totalorder %s5452_s1, %s5448_s2 }
 0x3c2   : > { %v2436_v49 = vpack.c.bf16 %v2344_v37, %v2343_v59  ;;  %v2249_v52 = vsel %vm1378_vm5, %v2246_v61, %v2248_v50  ;;  %v4572_v32 = vor.u32 %v4991_v19, %v4571_v20 }
 0x3c3   : > { %5400 = vrot.lane.b32.xlu1 %v5399_v63, %s5501_s16  ;;  %5395 = vrot.lane.b32.xlu0 %v5394_v38, %s5501_s16  ;;  %v5414_v44 = vpack.i.bf16 %v2249_v52, %v2247_v16  ;;  %p5450_p12 = pnand %p5449_p11, %p5611_p5  ;;  %p5455_p2 = por %p5454_p1, %p5453_p0 }
 0x3c4   : > { %5390 = vrot.lane.b32.xlu2 %v5389_v13, %s5501_s16  ;;  %2830 = vmatmul.bf16.gmra.mxu2 %v2436_v49 }
 0x3c5   : > { %3026 = vmatmul.bf16.gmra.mxu0 %v2436_v49  ;;  %2859 = vmatpush.bf16.msra.mxu1 %v4572_v32  ;;  %v7163_v49 = vld [vmem:[%s7887_s5] sm:$0x3]  ;;  %v4547_v32 = vld [vmem:[%s7886_s4 + $0x110] sm:$0xf]  ;;  %p5451_p13 = pneg %p5450_p12 }
 0x3c6   : > { %v7174_v18 = vperm.slane %v7163_v49, 0 }
 0x3c7   : > { %v5331_v15 = vpop.permute.xlu2 %5330  ;;  %p5456_p3 = pnand %p5455_p2, %p5451_p13 }
 0x3c8   : > { %v5333_v21 = vunpack.i.h.bf16 %v5331_v15  ;;  %v5332_v10 = vunpack.i.l.bf16 %v5331_v15 }
 0x3c9   : > { %v2767_v52 = vpop.f32.mrf.mxu1 }
 0x3ca   : > { %v2312_v27 = vsel %vm1858_vm7, %v6849_v4, %v5332_v10  ;;  %v2313_v25 = vsel %vm1858_vm7, %v6892_v12, %v5333_v21  ;;  %v2252_v4 = vrot.slane %v7019_v26, 4  ;;  %v2250_v12 = vrot.slane %v7002_v55, 4 }
 0x3cb   : > { %v2439_v1 = vpack.c.bf16 %v2313_v25, %v2312_v27  ;;  %5415 = vrot.lane.b32.xlu1 %v5414_v44, %s5501_s16  ;;  %5410 = vrot.lane.b32.xlu0 %v5409_v39, %s5501_s16  ;;  %v2768_v7 = vadd.f32 %v2767_v52, %v7174_v18  ;;  %v4563_v39 = vld [vmem:[%s7886_s4 + $0x130] sm:$0xf]  ;;  %v4539_v52 = vld [vmem:[%s7886_s4 + $0x100] sm:$0xf] }
 0x3cc   : > { %5405 = vrot.lane.b32.xlu2 %v5404_v14, %s5501_s16  ;;  %v2255_v41 = vsel %vm1378_vm5, %v2252_v4, %v2254_v56  ;;  %v2253_v5 = vsel %vm1378_vm5, %v2250_v12, %v2252_v4  ;;  %v2251_v40 = vsel %vm1378_vm5, %v2248_v50, %v2250_v12  ;;  %v4564_v25 = vor.u32 %v4989_v42, %v4563_v39  ;;  %v4603_v14 = vld [vmem:[%s7886_s4 + $0x180] sm:$0xf] }
 0x3cd   : > { %2786 = vmatmul.bf16.gmra.mxu1 %v2439_v1  ;;  %2982 = vmatmul.bf16.gmra.mxu3 %v2439_v1  ;;  %v5424_v0 = vpack.i.bf16 %v2254_v56, %v2255_v41  ;;  %v5419_v36 = vpack.i.bf16 %v2253_v5, %v2251_v40  ;;  %v4604_v53 = vor.u32 %v4999_v45, %v4603_v14 }
 0x3ce   : > { %2860 = vmatpush.bf16.msra.mxu1 %v4564_v25 }
 0x3cf   : > { %2912 = vmatpush.bf16.msra.mxu2 %v4604_v53 }
 0x3d1   : > { %v7201_v1 = vpop.f32.mrf.mxu1 }
 0x3d3   : > { %5425 = vrot.lane.b32.xlu0 %v5424_v0, %s5501_s16 }
 0x3d4   : > { %5420 = vrot.lane.b32.xlu2 %v5419_v36, %s5501_s16 }
 0x3dd   : > { %v7156_v35 = vpop.permute.xlu1 %5340  ;;  %v5336_v63 = vpop.permute.xlu0 %5335 }
 0x3de   : > { %v5343_v38 = vunpack.i.h.bf16 %v7156_v35  ;;  %v5342_v59 = vunpack.i.l.bf16 %v7156_v35  ;;  %v5338_v37 = vunpack.i.h.bf16 %v5336_v63  ;;  %v5337_v13 = vunpack.i.l.bf16 %v5336_v63  ;;  %v4985_v63 = vld [vmem:[%s7886_s4 + $0x114] sm:$0xf0] }
 0x3e0   : > { %v2328_v29 = vsel %vm1329_vm6, %v5332_v10, %v5337_v13  ;;  %v2329_v50 = vsel %vm1329_vm6, %v5333_v21, %v5338_v37  ;;  %v4548_v13 = vor.u32 %v4985_v63, %v4547_v32  ;;  %v2619_v32 = vunpack.c.h.b16 %v7024_v46  ;;  %v4996_v46 = vld [vmem:[%s7886_s4 + $0x174] sm:$0xf] }
 0x3e1   : > { %v2345_v54 = vsel %vm2336_vm9, %v2328_v29, %v5342_v59  ;;  %v2346_v61 = vsel %vm2336_vm9, %v2329_v50, %v5343_v38 }
 0x3e2   : > { %v2440_v24 = vpack.c.bf16 %v2346_v61, %v2345_v54 }
 0x3e4   : > { %2835 = vmatmul.bf16.gmra.mxu2 %v2440_v24  ;;  %3031 = vmatmul.bf16.gmra.mxu0 %v2440_v24 }
 0x3e7   : > { %v5346_v15 = vpop.permute.xlu2 %5345  ;;  %v2816_v57 = vpop.f32.mrf.mxu2 }
 0x3e8   : > { %v5348_v21 = vunpack.i.h.bf16 %v5346_v15  ;;  %v5347_v10 = vunpack.i.l.bf16 %v5346_v15  ;;  %v7177_v16 = vadd.f32 %v2816_v57, %v2768_v7  ;;  %v4983_v7 = vld [vmem:[%s7886_s4 + $0x104] sm:$0xf0] }
 0x3e9   : > { %v2772_v19 = vpop.f32.mrf.mxu1  ;;  %v4540_v15 = vor.u32 %v4983_v7, %v4539_v52 }
 0x3ea   : > { %v2314_v31 = vsel %vm1858_vm7, %v6909_v60, %v5347_v10  ;;  %v2315_v44 = vsel %vm1858_vm7, %v6947_v3, %v5348_v21  ;;  %v4555_v60 = vld [vmem:[%s7886_s4 + $0x120] sm:$0xf]  ;;  %v4987_v3 = vld [vmem:[%s7886_s4 + $0x124] sm:$0xf0]  ;;  %v2773_v37 = vadd.f32 %v2772_v19, %v7174_v18 }
 0x3eb   : > { %v2443_v27 = vpack.c.bf16 %v2315_v44, %v2314_v31  ;;  %v4556_v56 = vor.u32 %v4987_v3, %v4555_v60 }
 0x3ed   : > { %2791 = vmatmul.bf16.gmra.mxu1 %v2443_v27  ;;  %2987 = vmatmul.bf16.gmra.mxu3 %v2443_v27 }
 0x3ee   : > { %2861 = vmatpush.bf16.msra.mxu1 %v4556_v56 }
 0x3ef   : > { %v7207_v47 = vpop.f32.mrf.mxu2 }
 0x3f1   : > { %v7240_v60 = vpop.f32.mrf.mxu1 }
 0x3f2   : > { %2862 = vmatpush.bf16.msra.mxu1 %v4548_v13  ;;  %v2673_v13 = vpack.c.b16 %v2619_v32, %v2619_v32 }
 0x3f6   : > { %2863 = vmatpush.bf16.msra.mxu1 %v4540_v15 }
 0x3fd   : > { %v7203_v4 = vpop.permute.xlu1 %5355  ;;  %v5351_v30 = vpop.permute.xlu0 %5350 }
 0x3fe   : > { %v5358_v12 = vunpack.i.h.bf16 %v7203_v4  ;;  %v5357_v41 = vunpack.i.l.bf16 %v7203_v4  ;;  %v5353_v5 = vunpack.i.h.bf16 %v5351_v30  ;;  %v5352_v33 = vunpack.i.l.bf16 %v5351_v30 }
 0x400   : > { %v2330_v0 = vsel %vm1329_vm6, %v5347_v10, %v5352_v33  ;;  %v2331_v40 = vsel %vm1329_vm6, %v5348_v21, %v5353_v5 }
 0x401   : > { %v2347_v6 = vsel %vm2336_vm9, %v2330_v0, %v5357_v41  ;;  %v2348_v36 = vsel %vm2336_vm9, %v2331_v40, %v5358_v12 }
 0x402   : > { %v2444_v20 = vpack.c.bf16 %v2348_v36, %v2347_v6 }
 0x404   : > { %2840 = vmatmul.bf16.gmra.mxu2 %v2444_v20  ;;  %3036 = vmatmul.bf16.gmra.mxu0 %v2444_v20 }
 0x407   : > { %v2821_v29 = vpop.f32.mrf.mxu2 }
 0x408   : > { %v5361_v50 = vpop.permute.xlu2 %5360  ;;  %v7224_v54 = vadd.f32 %v2821_v29, %v2773_v37 }
 0x409   : > { %v5363_v61 = vunpack.i.h.bf16 %v5361_v50  ;;  %v5362_v24 = vunpack.i.l.bf16 %v5361_v50  ;;  %v2777_v33 = vpop.f32.mrf.mxu1 }
 0x40a   : > { %v2778_v20 = vadd.f32 %v2777_v33, %v7174_v18 }
 0x40b   : > { %v2316_v57 = vsel %vm1858_vm7, %v6964_v17, %v5362_v24  ;;  %v2317_v21 = vsel %vm1858_vm7, %v7002_v55, %v5363_v61 }
 0x40c   : > { %v2447_v10 = vpack.c.bf16 %v2317_v21, %v2316_v57 }
 0x40e   : > { %2796 = vmatmul.bf16.gmra.mxu1 %v2447_v10  ;;  %2992 = vmatmul.bf16.gmra.mxu3 %v2447_v10 }
 0x40f   : > { %v7244_v56 = vpop.f32.mrf.mxu2 }
 0x416   : > { %v5376_v31 = vpop.permute.xlu2 %5375 }
 0x417   : > { %v5378_v44 = vunpack.i.h.bf16 %v5376_v31  ;;  %v5377_v39 = vunpack.i.l.bf16 %v5376_v31 }
 0x419   : > { %v2318_v42 = vsel %vm1858_vm7, %v7019_v26, %v5377_v39  ;;  %v2319_v27 = vsel %vm1858_vm7, %v7064_v22, %v5378_v44 }
 0x41a   : > { %v2451_v25 = vpack.c.bf16 %v2319_v27, %v2318_v42 }
 0x41d   : > { %v5371_v17 = vpop.permute.xlu1 %5370 }
 0x41e   : > { %2801 = vmatmul.bf16.gmra.mxu1 %v2451_v25  ;;  %2997 = vmatmul.bf16.gmra.mxu3 %v2451_v25  ;;  %v5372_v55 = vunpack.i.l.bf16 %v5371_v17  ;;  %v5366_v3 = vpop.permute.xlu0 %5365  ;;  %v7242_v14 = vpop.permute.xlu2 %5390  ;;  %v5373_v45 = vunpack.i.h.bf16 %v5371_v17 }
 0x41f   : > { %v5368_v53 = vunpack.i.h.bf16 %v5366_v3  ;;  %v5367_v30 = vunpack.i.l.bf16 %v5366_v3  ;;  %v5393_v6 = vunpack.i.h.bf16 %v7242_v14  ;;  %v5392_v36 = vunpack.i.l.bf16 %v7242_v14 }
 0x421   : > { %v2332_v26 = vsel %vm1329_vm6, %v5362_v24, %v5367_v30  ;;  %v2333_v5 = vsel %vm1329_vm6, %v5363_v61, %v5368_v53  ;;  %v2355_v29 = vsel %vm2353_vm12, %v5283_v51, %v5393_v6  ;;  %v2354_v50 = vsel %vm2353_vm12, %v5282_v9, %v5392_v36  ;;  %v4597_v24 = vld [vmem:[%s7886_s4 + $0x178] sm:$0xf0] }
 0x422   : > { %v2349_v22 = vsel %vm2336_vm9, %v2332_v26, %v5372_v55  ;;  %v2350_v0 = vsel %vm2336_vm9, %v2333_v5, %v5373_v45  ;;  %v2756_v61 = vsel %vm2751_vm11, %v2673_v13, 0  ;;  %v7273_v52 = vpack.c.bf16 %v2355_v29, %v2354_v50 }
 0x423   : > { %v2448_v40 = vpack.c.bf16 %v2350_v0, %v2349_v22  ;;  %3106 = vmatpush.bf16.msrb.mxu2 %v2756_v61  ;;  %v4600_v7 = vor.u32 %v4996_v46, %v4597_v24 }
 0x425   : > { %2845 = vmatmul.bf16.gmra.mxu2 %v2448_v40  ;;  %3041 = vmatmul.bf16.gmra.mxu0 %v2448_v40  ;;  %v4589_v40 = vld [vmem:[%s7886_s4 + $0x168] sm:$0xf0] }
 0x426   : > { %v7253_v19 = vpop.permute.xlu2 %5405  ;;  %3052 = vmatpush.bf16.msrb.mxu1 %v4600_v7  ;;  %v7333_v7 = vpack.c.bf16 %v5393_v6, %v5392_v36 }
 0x427   : > { %v2826_v63 = vpop.f32.mrf.mxu2 }
 0x428   : > { %v7256_v37 = vadd.f32 %v2826_v63, %v2778_v20  ;;  %v7308_v63 = vpop.f32.mrf.mxu1 }
 0x42d   : > { %v5386_v15 = vpop.permute.xlu1 %5385  ;;  %v5381_v51 = vpop.permute.xlu0 %5380 }
 0x42e   : > { %2864 = vmatmul.bf16.vlgmr.msra.gmra.mxu1 %v7273_v52  ;;  %v5388_v58 = vunpack.i.h.bf16 %v5386_v15  ;;  %v5387_v9 = vunpack.i.l.bf16 %v5386_v15  ;;  %v5383_v57 = vunpack.i.h.bf16 %v5381_v51  ;;  %v5382_v21 = vunpack.i.l.bf16 %v5381_v51  ;;  %v7276_v10 = vpop.permute.xlu2 %5420 }
 0x42f   : > { %v5423_v31 = vunpack.i.h.bf16 %v7276_v10  ;;  %v5422_v42 = vunpack.i.l.bf16 %v7276_v10  ;;  %v7317_v29 = vpop.f32.mrf.mxu2  ;;  %v5004_v10 = vld [vmem:[%s7888_s6 + $0x10] sm:$0xff] }
 0x430   : > { %v2334_v27 = vsel %vm1329_vm6, %v5377_v39, %v5382_v21  ;;  %v2335_v25 = vsel %vm1329_vm6, %v5378_v44, %v5383_v57  ;;  %v2782_v24 = vpop.f32.mrf.mxu1 }
 0x431   : > { %v2351_v17 = vsel %vm2336_vm9, %v2334_v27, %v5387_v9  ;;  %v2352_v3 = vsel %vm2336_vm9, %v2335_v25, %v5388_v58  ;;  %v2366_v30 = vsel %vm2353_vm12, %v5372_v55, %v5422_v42  ;;  %v2367_v26 = vsel %vm2353_vm12, %v5373_v45, %v5423_v31  ;;  %v4994_v45 = vld [vmem:[%s7886_s4 + $0x164] sm:$0xf] }
 0x432   : > { %v2452_v53 = vpack.c.bf16 %v2352_v3, %v2351_v17  ;;  %v7290_v5 = vpack.c.bf16 %v2367_v26, %v2366_v30  ;;  %v4592_v32 = vor.u32 %v4994_v45, %v4589_v40  ;;  %v4992_v3 = vld [vmem:[%s7886_s4 + $0x154] sm:$0xf]  ;;  %v5408_v26 = vunpack.i.h.bf16 %v7253_v19 }
 0x434   : > { %3053 = vmatpush.bf16.msrb.mxu1 %v4592_v32 }
 0x435   : > { %v7292_v22 = vpop.permute.xlu1 %5400  ;;  %v5396_v39 = vpop.permute.xlu0 %5395  ;;  %2850 = vmatmul.bf16.gmra.mxu2 %v2452_v53  ;;  %3046 = vmatmul.bf16.gmra.mxu0 %v2452_v53 }
 0x436   : > { %v5398_v44 = vunpack.i.h.bf16 %v5396_v39  ;;  %v5397_v33 = vunpack.i.l.bf16 %v5396_v39  ;;  %v5403_v15 = vunpack.i.h.bf16 %v7292_v22  ;;  %v5402_v51 = vunpack.i.l.bf16 %v7292_v22 }
 0x437   : > { %v5407_v22 = vunpack.i.l.bf16 %v7253_v19 }
 0x438   : > { %v2356_v0 = vsel %vm2353_vm12, %v5297_v62, %v5397_v33  ;;  %v2357_v55 = vsel %vm2353_vm12, %v5298_v23, %v5398_v44  ;;  %v2358_v36 = vsel %vm2353_vm12, %v5312_v43, %v5402_v51  ;;  %v2359_v25 = vsel %vm2353_vm12, %v5313_v28, %v5403_v15  ;;  %v4613_v28 = vld [vmem:[%s7886_s4 + $0x198] sm:$0xf0] }
 0x439   : > { %v7306_v20 = vpack.c.bf16 %v2357_v55, %v2356_v0  ;;  %v7366_v53 = vpack.c.bf16 %v2359_v25, %v2358_v36  ;;  %v4616_v43 = vor.u32 %v5000_v34, %v4613_v28  ;;  %v7375_v30 = vpack.c.bf16 %v5398_v44, %v5397_v33  ;;  %v4990_v44 = vld [vmem:[%s7886_s4 + $0x144] sm:$0xf]  ;;  %v4573_v33 = vld [vmem:[%s7886_s4 + $0x148] sm:$0xf0]  ;;  %v7393_v55 = vpop.f32.mrf.mxu1 }
 0x43a   : > { %v2360_v39 = vsel %vm2353_vm12, %v5327_v2, %v5407_v22  ;;  %v2361_v0 = vsel %vm2353_vm12, %v5328_v11, %v5408_v26  ;;  %v4576_v19 = vor.u32 %v4990_v44, %v4573_v33  ;;  %v7400_v11 = vpack.c.bf16 %v5403_v15, %v5402_v51  ;;  %v4557_v36 = vld [vmem:[%s7886_s4 + $0x128] sm:$0xf0]  ;;  %v4998_v25 = vld [vmem:[%s7886_s4 + $0x184] sm:$0xf] }
 0x43b   : > { %3107 = vmatpush.bf16.msrb.mxu2 %v4616_v43  ;;  %v7395_v45 = vpack.c.bf16 %v2361_v0, %v2360_v39 }
 0x43d   : > { %v7310_v13 = vpop.permute.xlu1 %5415  ;;  %v7312_v62 = vpop.permute.xlu0 %5410 }
 0x43e   : > { %2869 = vmatmul.bf16.gmra.mxu1 %v7306_v20  ;;  %v5418_v48 = vunpack.i.h.bf16 %v7310_v13  ;;  %v5417_v23 = vunpack.i.l.bf16 %v7310_v13  ;;  %v5413_v40 = vunpack.i.h.bf16 %v7312_v62  ;;  %v5412_v32 = vunpack.i.l.bf16 %v7312_v62  ;;  %v4988_v62 = vld [vmem:[%s7886_s4 + $0x134] sm:$0xf]  ;;  %v5007_v13 = vld [vmem:[%s7888_s6 + $0x28] sm:$0xff] }
 0x440   : > { %v2364_v50 = vsel %vm2353_vm12, %v5357_v41, %v5417_v23  ;;  %v2365_v61 = vsel %vm2353_vm12, %v5358_v12, %v5418_v48  ;;  %v2783_v41 = vadd.f32 %v2782_v24, %v7174_v18  ;;  %v2363_v15 = vsel %vm2353_vm12, %v5343_v38, %v5413_v40  ;;  %v4986_v38 = vld [vmem:[%s7886_s4 + $0x124] sm:$0xf] }
 0x441   : > { %v7329_v46 = vpack.c.bf16 %v2365_v61, %v2364_v50  ;;  %v7447_v43 = vpack.c.bf16 %v5413_v40, %v5412_v32 }
 0x445   : > { %v7337_v57 = vpop.permute.xlu0 %5425  ;;  %4617 = vmatmul.msk.bf16.vlgmr.msra.gmra.mxu2 %vm2726_vm13, %v7333_v7 }
 0x446   : > { %v5428_v4 = vunpack.i.h.bf16 %v7337_v57  ;;  %v5427_v12 = vunpack.i.l.bf16 %v7337_v57  ;;  %v5011_v57 = vld [vmem:[%s7888_s6 + $0x48] sm:$0xff] }
 0x447   : > { %v2831_v21 = vpop.f32.mrf.mxu2  ;;  %3325 = vmatpush.bf16.msrb.mxu0 %v5011_v57 }
 0x448   : > { %v7344_v27 = vadd.f32 %v2831_v21, %v2783_v41  ;;  %v2368_v14 = vsel %vm2353_vm12, %v5387_v9, %v5427_v12  ;;  %v2369_v6 = vsel %vm2353_vm12, %v5388_v58, %v5428_v4  ;;  %v4581_v9 = vld [vmem:[%s7886_s4 + $0x158] sm:$0xf0]  ;;  %v2362_v41 = vsel %vm2353_vm12, %v5342_v59, %v5412_v32 }
 0x449   : > { %v7358_v17 = vpack.c.bf16 %v2369_v6, %v2368_v14  ;;  %v4584_v58 = vor.u32 %v4992_v3, %v4581_v9  ;;  %v7415_v51 = vpack.c.bf16 %v2363_v15, %v2362_v41  ;;  %v4565_v21 = vld [vmem:[%s7886_s4 + $0x138] sm:$0xf0]  ;;  %v7426_v59 = vpack.c.bf16 %v5408_v26, %v5407_v22  ;;  %v4605_v9 = vld [vmem:[%s7886_s4 + $0x188] sm:$0xf0]  ;;  %v4984_v26 = vld [vmem:[%s7886_s4 + $0x114] sm:$0xf] }
 0x44a   : > { %v2787_v8 = vpop.f32.mrf.mxu1  ;;  %v4568_v14 = vor.u32 %v4988_v62, %v4565_v21  ;;  %v4560_v3 = vor.u32 %v4986_v38, %v4557_v36  ;;  %v4549_v22 = vld [vmem:[%s7886_s4 + $0x118] sm:$0xf0]  ;;  %v5008_v62 = vld [vmem:[%s7888_s6 + $0x30] sm:$0xff]  ;;  %v5006_v21 = vld [vmem:[%s7888_s6 + $0x20] sm:$0xff] }
 0x44b   : > { %3054 = vmatpush.bf16.msrb.mxu1 %v4584_v58  ;;  %v2788_v50 = vadd.f32 %v2787_v8, %v7174_v18  ;;  %v4608_v58 = vor.u32 %v4998_v25, %v4605_v9  ;;  %v4552_v0 = vor.u32 %v4984_v26, %v4549_v22  ;;  %v4541_v8 = vld [vmem:[%s7886_s4 + $0x108] sm:$0xf0]  ;;  %v5009_v41 = vld [vmem:[%s7888_s6 + $0x38] sm:$0xff]  ;;  %v5002_v22 = vld [vmem:[%s7888_s6] sm:$0xff] }
 0x44c   : > { %3270 = vmatpush.bf16.msrb.mxu3 %v5009_v41 }
 0x44d   : > { %3108 = vmatpush.bf16.msrb.mxu2 %v4608_v58 }
 0x44e   : > { %2874 = vmatmul.bf16.gmra.mxu1 %v7366_v53 }
 0x44f   : > { %3055 = vmatpush.bf16.msrb.mxu1 %v4576_v19  ;;  %v7398_v2 = vpop.f32.mrf.mxu2  ;;  %v4982_v19 = vld [vmem:[%s7886_s4 + $0x104] sm:$0xf] }
 0x450   : > { %v4544_v40 = vor.u32 %v4982_v19, %v4541_v8  ;;  %3271 = vmatpush.bf16.msrb.mxu3 %v5008_v62  ;;  %v2770_v62 = vadd.f32 %v7201_v1, %v7174_v18 }
 0x452   : > { %v7424_v6 = vpop.f32.mrf.mxu1 }
 0x453   : > { %3056 = vmatpush.bf16.msrb.mxu1 %v4568_v14  ;;  %v7494_v14 = vpack.c.bf16 %v5423_v31, %v5422_v42  ;;  %v5003_v31 = vld [vmem:[%s7888_s6 + $0x8] sm:$0xff] }
 0x454   : > { %3272 = vmatpush.bf16.msrb.mxu3 %v5007_v13  ;;  %v2819_v13 = vadd.f32 %v7207_v47, %v2770_v62  ;;  %v2775_v47 = vadd.f32 %v7240_v60, %v7174_v18 }
 0x455   : > { %4618 = vmatmul.msk.bf16.gmra.mxu2 %vm2726_vm13, %v7375_v30 }
 0x457   : > { %3057 = vmatpush.bf16.msrb.mxu1 %v4560_v3 }
 0x458   : > { %3273 = vmatpush.bf16.msrb.mxu3 %v5006_v21 }
 0x45b   : > { %3058 = vmatpush.bf16.msrb.mxu1 %v4552_v0 }
 0x45e   : > { %2879 = vmatmul.bf16.gmra.mxu1 %v7395_v45 }
 0x45f   : > { %3059 = vmatpush.bf16.msrb.mxu1 %v4544_v40 }
 0x465   : > { %4619 = vmatmul.msk.bf16.gmra.mxu2 %vm2726_vm13, %v7400_v11 }
 0x467   : > { %v2836_v61 = vpop.f32.mrf.mxu2 }
 0x468   : > { %v7407_v24 = vadd.f32 %v2836_v61, %v2788_v50  ;;  %v7471_v61 = vpack.c.bf16 %v5418_v48, %v5417_v23 }
 0x46a   : > { %v2792_v35 = vpop.f32.mrf.mxu1 }
 0x46b   : > { %v2793_v39 = vadd.f32 %v2792_v35, %v7174_v18  ;;  %v5005_v35 = vld [vmem:[%s7888_s6 + $0x18] sm:$0xff] }
 0x46c   : > { %3274 = vmatpush.bf16.msrb.mxu3 %v5005_v35 }
 0x46e   : > { %2884 = vmatmul.bf16.gmra.mxu1 %v7415_v51 }
 0x46f   : > { %v7443_v34 = vpop.f32.mrf.mxu2 }
 0x470   : > { %3275 = vmatpush.bf16.msrb.mxu3 %v5004_v10 }
 0x472   : > { %v7445_v28 = vpop.f32.mrf.mxu1 }
 0x474   : > { %3276 = vmatpush.bf16.msrb.mxu3 %v5003_v31 }
 0x475   : > { %4620 = vmatmul.msk.bf16.gmra.mxu2 %vm2726_vm13, %v7426_v59 }
 0x478   : > { %3277 = vmatpush.bf16.msrb.mxu3 %v5002_v22 }
 0x47e   : > { %2889 = vmatmul.bf16.gmra.mxu1 %v7329_v46 }
 0x485   : > { %4621 = vmatmul.msk.bf16.gmra.mxu2 %vm2726_vm13, %v7447_v43 }
 0x487   : > { %v2841_v44 = vpop.f32.mrf.mxu2 }
 0x488   : > { %v7458_v33 = vadd.f32 %v2841_v44, %v2793_v39  ;;  %v5021_v39 = vld [vmem:[%s7888_s6 + $0x98] sm:$0xff] }
 0x489   : > { %3504 = vmatpush.bf16.msra.mxu2 %v5021_v39 }
 0x48b   : > { %v2797_v32 = vpop.f32.mrf.mxu1 }
 0x48c   : > { %v2798_v38 = vadd.f32 %v2797_v32, %v7174_v18 }
 0x48e   : > { %2894 = vmatmul.bf16.gmra.mxu1 %v7290_v5 }
 0x48f   : > { %v7485_v48 = vpop.f32.mrf.mxu2 }
 0x493   : > { %v2799_v50 = vpop.f32.mrf.mxu1 }
 0x494   : > { %v2800_v42 = vadd.f32 %v2799_v50, %v7174_v18 }
 0x495   : > { %4622 = vmatmul.msk.bf16.gmra.mxu2 %vm2726_vm13, %v7471_v61 }
 0x49b   : > { %v2802_v15 = vpop.f32.mrf.mxu1 }
 0x49c   : > { %v2803_v0 = vadd.f32 %v2802_v15, %v7174_v18 }
 0x49e   : > { %2899 = vmatmul.bf16.gmra.mxu1 %v7358_v17 }
 0x4a3   : > { %v2804_v23 = vpop.f32.mrf.mxu1 }
 0x4a5   : > { %4623 = vmatmul.msk.bf16.gmra.mxu2 %vm2726_vm13, %v7494_v14 }
 0x4a8   : > { %v2846_v36 = vpop.f32.mrf.mxu2 }
 0x4a9   : > { %v7502_v25 = vadd.f32 %v2846_v36, %v2798_v38 }
 0x4ab   : > { %v2865_v3 = vpop.f32.mrf.mxu1 }
 0x4ae   : > { %3060 = vmatmul.bf16.vlgmr.msrb.gmra.mxu1 %v7273_v52  ;;  %v7521_v52 = vpack.c.bf16 %v5428_v4, %v5427_v12  ;;  %v5019_v4 = vld [vmem:[%s7888_s6 + $0x88] sm:$0xff]  ;;  %v2805_v12 = vadd.f32 %v2804_v23, %v7174_v18  ;;  %v2866_v23 = vadd.f32 %v2865_v3, %v7177_v16  ;;  %v5017_v16 = vld [vmem:[%s7888_s6 + $0x78] sm:$0xff] }
 0x4af   : > { %3449 = vmatpush.bf16.msra.mxu1 %v5019_v4 }
 0x4b0   : > { %v2848_v9 = vpop.f32.mrf.mxu2 }
 0x4b1   : > { %v7512_v58 = vadd.f32 %v2848_v9, %v2800_v42 }
 0x4b3   : > { %v2867_v26 = vpop.f32.mrf.mxu1 }
 0x4b4   : > { %v2868_v21 = vadd.f32 %v2867_v26, %v2819_v13 }
 0x4b5   : > { %4624 = vmatmul.msk.bf16.gmra.mxu2 %vm2726_vm13, %v7521_v52 }
 0x4b8   : > { %v2851_v44 = vpop.f32.mrf.mxu2 }
 0x4b9   : > { %v7529_v19 = vadd.f32 %v2851_v44, %v2803_v0 }
 0x4bb   : > { %v2870_v8 = vpop.f32.mrf.mxu1 }
 0x4bc   : > { %v2871_v3 = vadd.f32 %v2870_v8, %v7224_v54  ;;  %v5016_v54 = vld [vmem:[%s7888_s6 + $0x70] sm:$0xff] }
 0x4be   : > { %3065 = vmatmul.bf16.gmra.mxu1 %v7306_v20  ;;  %v5018_v20 = vld [vmem:[%s7888_s6 + $0x80] sm:$0xff] }
 0x4bf   : > { %3450 = vmatpush.bf16.msra.mxu1 %v5018_v20 }
 0x4c0   : > { %v2853_v40 = vpop.f32.mrf.mxu2 }
 0x4c1   : > { %v7539_v32 = vadd.f32 %v2853_v40, %v2805_v12 }
 0x4c3   : > { %v2872_v50 = vpop.f32.mrf.mxu1  ;;  %3451 = vmatpush.bf16.msra.mxu1 %v5017_v16 }
 0x4c5   : > { %4625 = vmatmul.msk.bf16.vlgmr.msrb.gmra.mxu2 %vm2726_vm13, %v7333_v7 }
 0x4c7   : > { %3452 = vmatpush.bf16.msra.mxu1 %v5016_v54 }
 0x4c8   : > { %v2914_v41 = vpop.f32.mrf.mxu2 }
 0x4c9   : > { %v2915_v38 = vadd.f32 %v2914_v41, %v2866_v23  ;;  %v5014_v23 = vld [vmem:[%s7888_s6 + $0x60] sm:$0xff] }
 0x4cb   : > { %v2875_v15 = vpop.f32.mrf.mxu1 }
 0x4cc   : > { %v2876_v44 = vadd.f32 %v2875_v15, %v7256_v37  ;;  %v2785_v37 = vadd.f32 %v7393_v55, %v7174_v18 }
 0x4ce   : > { %3070 = vmatmul.bf16.gmra.mxu1 %v7366_v53  ;;  %v2824_v53 = vadd.f32 %v7244_v56, %v2775_v47  ;;  %v2780_v56 = vadd.f32 %v7308_v63, %v7174_v18  ;;  %v5020_v63 = vld [vmem:[%s7888_s6 + $0x90] sm:$0xff]  ;;  %v2834_v41 = vadd.f32 %v7398_v2, %v2785_v37 }
 0x4cf   : > { %3505 = vmatpush.bf16.msra.mxu2 %v5020_v63  ;;  %v5012_v2 = vld [vmem:[%s7888_s6 + $0x50] sm:$0xff] }
 0x4d0   : > { %v2916_v35 = vpop.f32.mrf.mxu2  ;;  %v2873_v42 = vadd.f32 %v2872_v50, %v2824_v53  ;;  %v5010_v50 = vld [vmem:[%s7888_s6 + $0x40] sm:$0xff] }
 0x4d1   : > { %v2917_v7 = vadd.f32 %v2916_v35, %v2868_v21  ;;  %3326 = vmatpush.bf16.msrb.mxu0 %v5010_v50 }
 0x4d3   : > { %v2877_v36 = vpop.f32.mrf.mxu1  ;;  %v7551_v10 = vpack.c.bf16 %v2917_v7, %v2915_v38  ;;  %v7601_v38 = vpop.f32.mrf.mxu3 }
 0x4d5   : > { %4626 = vmatmul.msk.bf16.gmra.mxu2 %vm2726_vm13, %v7375_v30  ;;  %3278 = vmatmul.bf16.vlgmr.msrb.gmra.mxu3 %v7551_v10 }
 0x4d8   : > { %v2919_v1 = vpop.f32.mrf.mxu2 }
 0x4d9   : > { %v2920_v9 = vadd.f32 %v2919_v1, %v2871_v3 }
 0x4db   : > { %v2880_v31 = vpop.f32.mrf.mxu1 }
 0x4dc   : > { %v2881_v15 = vadd.f32 %v2880_v31, %v7344_v27 }
 0x4de   : > { %3075 = vmatmul.bf16.gmra.mxu1 %v7395_v45  ;;  %v2829_v45 = vadd.f32 %v7317_v29, %v2780_v56 }
 0x4e0   : > { %v2921_v30 = vpop.f32.mrf.mxu2  ;;  %v2878_v8 = vadd.f32 %v2877_v36, %v2829_v45  ;;  %v2790_v36 = vadd.f32 %v7424_v6, %v7174_v18 }
 0x4e1   : > { %v2922_v26 = vadd.f32 %v2921_v30, %v2873_v42 }
 0x4e2   : > { %v2839_v1 = vadd.f32 %v7443_v34, %v2790_v36 }
 0x4e3   : > { %v2882_v22 = vpop.f32.mrf.mxu1  ;;  %v7564_v39 = vpack.c.bf16 %v2922_v26, %v2920_v9 }
 0x4e4   : > { %v2883_v62 = vadd.f32 %v2882_v22, %v2834_v41 }
 0x4e5   : > { %4627 = vmatmul.msk.bf16.gmra.mxu2 %vm2726_vm13, %v7400_v11  ;;  %3283 = vmatmul.bf16.gmra.mxu3 %v7564_v39 }
 0x4e8   : > { %v2924_v60 = vpop.f32.mrf.mxu2 }
 0x4e9   : > { %v2925_v57 = vadd.f32 %v2924_v60, %v2876_v44 }
 0x4eb   : > { %v2885_v0 = vpop.f32.mrf.mxu1 }
 0x4ec   : > { %v2886_v31 = vadd.f32 %v2885_v0, %v7407_v24 }
 0x4ee   : > { %3080 = vmatmul.bf16.gmra.mxu1 %v7415_v51 }
 0x4f0   : > { %v2926_v11 = vpop.f32.mrf.mxu2 }
 0x4f1   : > { %v2927_v4 = vadd.f32 %v2926_v11, %v2878_v8 }
 0x4f3   : > { %v2887_v12 = vpop.f32.mrf.mxu1  ;;  %v7577_v40 = vpack.c.bf16 %v2927_v4, %v2925_v57 }
 0x4f4   : > { %v2888_v47 = vadd.f32 %v2887_v12, %v2839_v1 }
 0x4f5   : > { %4628 = vmatmul.msk.bf16.gmra.mxu2 %vm2726_vm13, %v7426_v59  ;;  %3288 = vmatmul.bf16.gmra.mxu3 %v7577_v40  ;;  %v5015_v59 = vld [vmem:[%s7888_s6 + $0x68] sm:$0xff] }
 0x4f6   : > { %3453 = vmatpush.bf16.msra.mxu1 %v5015_v59 }
 0x4f8   : > { %v2929_v29 = vpop.f32.mrf.mxu2 }
 0x4f9   : > { %v2930_v13 = vadd.f32 %v2929_v29, %v2881_v15 }
 0x4fa   : > { %3454 = vmatpush.bf16.msra.mxu1 %v5014_v23 }
 0x4fb   : > { %v2890_v51 = vpop.f32.mrf.mxu1 }
 0x4fc   : > { %v2891_v26 = vadd.f32 %v2890_v51, %v7458_v33 }
 0x4fe   : > { %3085 = vmatmul.bf16.gmra.mxu1 %v7329_v46  ;;  %v5013_v46 = vld [vmem:[%s7888_s6 + $0x58] sm:$0xff] }
 0x4ff   : > { %3455 = vmatpush.bf16.msra.mxu1 %v5013_v46 }
 0x500   : > { %v2931_v20 = vpop.f32.mrf.mxu2 }
 0x501   : > { %v2932_v55 = vadd.f32 %v2931_v20, %v2883_v62  ;;  %v7653_v20 = vperm.slane %v7163_v49, 1 }
 0x503   : > { %v2892_v21 = vpop.f32.mrf.mxu1  ;;  %v7599_v35 = vpack.c.bf16 %v2932_v55, %v2930_v13  ;;  %3456 = vmatpush.bf16.msra.mxu1 %v5012_v2 }
 0x505   : > { %4629 = vmatmul.msk.bf16.gmra.mxu2 %vm2726_vm13, %v7447_v43  ;;  %3293 = vmatmul.bf16.gmra.mxu3 %v7599_v35  ;;  %v2965_v43 = vpop.f32.mrf.mxu3 }
 0x508   : > { %v2934_v27 = vpop.f32.mrf.mxu2 }
 0x509   : > { %v2935_v53 = vadd.f32 %v2934_v27, %v2886_v31 }
 0x50b   : > { %v2895_v7 = vpop.f32.mrf.mxu1 }
 0x50c   : > { %v2896_v33 = vadd.f32 %v2895_v7, %v7502_v25 }
 0x50d   : > { %v7622_v6 = vpop.f32.mrf.mxu3 }
 0x50e   : > { %3090 = vmatmul.bf16.gmra.mxu1 %v7290_v5  ;;  %v2795_v5 = vadd.f32 %v7445_v28, %v7174_v18 }
 0x510   : > { %v2936_v16 = vpop.f32.mrf.mxu2  ;;  %v2844_v24 = vadd.f32 %v7485_v48, %v2795_v5 }
 0x511   : > { %v2937_v3 = vadd.f32 %v2936_v16, %v2888_v47 }
 0x512   : > { %v2893_v22 = vadd.f32 %v2892_v21, %v2844_v24 }
 0x513   : > { %v2897_v42 = vpop.f32.mrf.mxu1  ;;  %v7617_v30 = vpack.c.bf16 %v2937_v3, %v2935_v53 }
 0x514   : > { %v2898_v44 = vadd.f32 %v2897_v42, %v7512_v58 }
 0x515   : > { %4630 = vmatmul.msk.bf16.gmra.mxu2 %vm2726_vm13, %v7471_v61  ;;  %3298 = vmatmul.bf16.gmra.mxu3 %v7617_v30  ;;  %v2970_v0 = vpop.f32.mrf.mxu3 }
 0x516   : > { %v2971_v16 = vadd.f32 %v2970_v0, %v7653_v20 }
 0x518   : > { %v2939_v34 = vpop.f32.mrf.mxu2 }
 0x519   : > { %v2940_v56 = vadd.f32 %v2939_v34, %v2891_v26 }
 0x51b   : > { %v2900_v9 = vpop.f32.mrf.mxu1 }
 0x51c   : > { %v2901_v25 = vadd.f32 %v2900_v9, %v7529_v19  ;;  %v2964_v19 = vadd.f32 %v7601_v38, %v7653_v20 }
 0x51d   : > { %v7634_v28 = vpop.f32.mrf.mxu3 }
 0x51e   : > { %3095 = vmatmul.bf16.gmra.mxu1 %v7358_v17  ;;  %v3012_v17 = vpop.f32.mrf.mxu0  ;;  %v2974_v0 = vadd.f32 %v7634_v28, %v7653_v20 }
 0x51f   : > { %v3013_v23 = vadd.f32 %v3012_v17, %v2964_v19 }
 0x520   : > { %v2941_v60 = vpop.f32.mrf.mxu2 }
 0x521   : > { %v2942_v61 = vadd.f32 %v2941_v60, %v2893_v22 }
 0x523   : > { %v2902_v54 = vpop.f32.mrf.mxu1  ;;  %v7629_v45 = vpack.c.bf16 %v2942_v61, %v2940_v56 }
 0x524   : > { %v2903_v58 = vadd.f32 %v2902_v54, %v7539_v32  ;;  %v2966_v32 = vadd.f32 %v2965_v43, %v7653_v20  ;;  %v2969_v43 = vadd.f32 %v7622_v6, %v7653_v20 }
 0x525   : > { %4631 = vmatmul.msk.bf16.gmra.mxu2 %vm2726_vm13, %v7494_v14  ;;  %3303 = vmatmul.bf16.gmra.mxu3 %v7629_v45  ;;  %v2975_v12 = vpop.f32.mrf.mxu3 }
 0x526   : > { %v3014_v29 = vpop.f32.mrf.mxu0  ;;  %v2976_v61 = vadd.f32 %v2975_v12, %v7653_v20 }
 0x527   : > { %v3015_v21 = vadd.f32 %v3014_v29, %v2966_v32 }
 0x528   : > { %v2944_v18 = vpop.f32.mrf.mxu2 }
 0x529   : > { %v2945_v11 = vadd.f32 %v2944_v18, %v2896_v33 }
 0x52b   : > { %v3061_v48 = vpop.f32.mrf.mxu1 }
 0x52c   : > { %v3062_v46 = vadd.f32 %v3061_v48, %v3013_v23 }
 0x52d   : > { %v7644_v51 = vpop.f32.mrf.mxu3 }
 0x52e   : > { %3457 = vmatmul.bf16.vlgmr.msra.gmra.mxu1 %v7551_v10  ;;  %v3017_v50 = vpop.f32.mrf.mxu0  ;;  %v2979_v29 = vadd.f32 %v7644_v51, %v7653_v20 }
 0x530   : > { %v2946_v8 = vpop.f32.mrf.mxu2 }
 0x531   : > { %v2947_v57 = vadd.f32 %v2946_v8, %v2898_v44 }
 0x533   : > { %v3063_v4 = vpop.f32.mrf.mxu1  ;;  %v7639_v63 = vpack.c.bf16 %v2947_v57, %v2945_v11 }
 0x534   : > { %v3064_v27 = vadd.f32 %v3063_v4, %v3015_v21 }
 0x535   : > { %4632 = vmatmul.msk.bf16.gmra.mxu2 %vm2726_vm13, %v7521_v52  ;;  %3308 = vmatmul.bf16.gmra.mxu3 %v7639_v63  ;;  %v2980_v52 = vpop.f32.mrf.mxu3 }
 0x538   : > { %v2949_v14 = vpop.f32.mrf.mxu2 }
 0x539   : > { %v2950_v59 = vadd.f32 %v2949_v14, %v2901_v25 }
 0x53b   : > { %v3066_v10 = vpop.f32.mrf.mxu1 }
 0x53d   : > { %v2983_v48 = vpop.f32.mrf.mxu3 }
 0x53e   : > { %3462 = vmatmul.bf16.gmra.mxu1 %v7564_v39  ;;  %v3019_v39 = vpop.f32.mrf.mxu0 }
 0x53f   : > { %v3020_v53 = vadd.f32 %v3019_v39, %v2971_v16  ;;  %v2984_v39 = vadd.f32 %v2983_v48, %v7653_v20 }
 0x540   : > { %v2951_v37 = vpop.f32.mrf.mxu2 }
 0x541   : > { %v2952_v41 = vadd.f32 %v2951_v37, %v2903_v58 }
 0x543   : > { %v3068_v15 = vpop.f32.mrf.mxu1  ;;  %v7649_v62 = vpack.c.bf16 %v2952_v41, %v2950_v59 }
 0x544   : > { %v3069_v34 = vadd.f32 %v3068_v15, %v3020_v53 }
 0x545   : > { %3313 = vmatmul.bf16.gmra.mxu3 %v7649_v62  ;;  %v2985_v12 = vpop.f32.mrf.mxu3 }
 0x546   : > { %v3022_v49 = vpop.f32.mrf.mxu0 }
 0x548   : > { %v3110_v13 = vpop.f32.mrf.mxu2 }
 0x549   : > { %v3111_v7 = vadd.f32 %v3110_v13, %v3062_v46 }
 0x54b   : > { %v3071_v55 = vpop.f32.mrf.mxu1 }
 0x54d   : > { %v2988_v15 = vpop.f32.mrf.mxu3 }
 0x54e   : > { %3467 = vmatmul.bf16.gmra.mxu1 %v7577_v40  ;;  %v3018_v40 = vadd.f32 %v3017_v50, %v2969_v43  ;;  %v3024_v3 = vpop.f32.mrf.mxu0  ;;  %v2989_v16 = vadd.f32 %v2988_v15, %v7653_v20 }
 0x54f   : > { %v3025_v54 = vadd.f32 %v3024_v3, %v2976_v61 }
 0x550   : > { %v3112_v2 = vpop.f32.mrf.mxu2  ;;  %v3067_v42 = vadd.f32 %v3066_v10, %v3018_v40 }
 0x551   : > { %v3113_v36 = vadd.f32 %v3112_v2, %v3064_v27 }
 0x553   : > { %v3073_v1 = vpop.f32.mrf.mxu1  ;;  %v3171_v31 = vpack.c.bf16 %v3113_v36, %v3111_v7 }
 0x554   : > { %v3074_v33 = vadd.f32 %v3073_v1, %v3025_v54 }
 0x555   : > { %4673 = vmatmul.msk.bf16.vlgmr.msrb.gmra.mxu0 %vm826_vm2, %v3171_v31  ;;  %4741 = vmatmul.msk.bf16.vlgmr.msra.gmra.mxu2 %vm826_vm2, %v3171_v31  ;;  %v2990_v23 = vpop.f32.mrf.mxu3 }
 0x556   : > { %v3027_v60 = vpop.f32.mrf.mxu0  ;;  %v2991_v40 = vadd.f32 %v2990_v23, %v7653_v20 }
 0x557   : > { %v3028_v10 = vadd.f32 %v3027_v60, %v2979_v29 }
 0x558   : > { %v3115_v38 = vpop.f32.mrf.mxu2 }
 0x559   : > { %v3116_v5 = vadd.f32 %v3115_v38, %v3067_v42 }
 0x55b   : > { %v3076_v47 = vpop.f32.mrf.mxu1 }
 0x55c   : > { %v3077_v37 = vadd.f32 %v3076_v47, %v3028_v10 }
 0x55d   : > { %v2993_v38 = vpop.f32.mrf.mxu3 }
 0x55e   : > { %3472 = vmatmul.bf16.gmra.mxu1 %v7599_v35  ;;  %v3023_v35 = vadd.f32 %v3022_v49, %v2974_v0  ;;  %v3029_v18 = vpop.f32.mrf.mxu0 }
 0x560   : > { %v3117_v9 = vpop.f32.mrf.mxu2  ;;  %v3072_v17 = vadd.f32 %v3071_v55, %v3023_v35  ;;  %v2994_v35 = vadd.f32 %v2993_v38, %v7653_v20 }
 0x561   : > { %v3118_v24 = vadd.f32 %v3117_v9, %v3069_v34 }
 0x563   : > { %v3078_v26 = vpop.f32.mrf.mxu1  ;;  %v3173_v22 = vpack.c.bf16 %v3118_v24, %v3116_v5 }
 0x565   : > { %4674 = vmatmul.msk.bf16.gmra.mxu0 %vm826_vm2, %v3173_v22  ;;  %4742 = vmatmul.msk.bf16.gmra.mxu2 %vm826_vm2, %v3173_v22  ;;  %v2995_v34 = vpop.f32.mrf.mxu3 }
 0x566   : > { %v3032_v28 = vpop.f32.mrf.mxu0  ;;  %v2996_v54 = vadd.f32 %v2995_v34, %v7653_v20 }
 0x567   : > { %v3033_v21 = vadd.f32 %v3032_v28, %v2984_v39 }
 0x568   : > { %v3120_v6 = vpop.f32.mrf.mxu2 }
 0x569   : > { %v3121_v8 = vadd.f32 %v3120_v6, %v3072_v17 }
 0x56b   : > { %v3081_v56 = vpop.f32.mrf.mxu1 }
 0x56c   : > { %v3082_v27 = vadd.f32 %v3081_v56, %v3033_v21 }
 0x56d   : > { %v2998_v0 = vpop.f32.mrf.mxu3 }
 0x56e   : > { %3477 = vmatmul.bf16.gmra.mxu1 %v7617_v30  ;;  %v2981_v30 = vadd.f32 %v2980_v52, %v7653_v20  ;;  %v3034_v41 = vpop.f32.mrf.mxu0  ;;  %v2999_v10 = vadd.f32 %v2998_v0, %v7653_v20 }
 0x570   : > { %v3122_v44 = vpop.f32.mrf.mxu2  ;;  %v3030_v25 = vadd.f32 %v3029_v18, %v2981_v30 }
 0x571   : > { %v3123_v11 = vadd.f32 %v3122_v44, %v3074_v33 }
 0x572   : > { %v3079_v50 = vadd.f32 %v3078_v26, %v3030_v25 }
 0x573   : > { %v3175_v57 = vpack.c.bf16 %v3123_v11, %v3121_v8  ;;  %v3083_v4 = vpop.f32.mrf.mxu1 }
 0x575   : > { %4675 = vmatmul.msk.bf16.gmra.mxu0 %vm826_vm2, %v3175_v57  ;;  %4743 = vmatmul.msk.bf16.gmra.mxu2 %vm826_vm2, %v3175_v57  ;;  %v3000_v11 = vpop.f32.mrf.mxu3 }
 0x576   : > { %v3037_v52 = vpop.f32.mrf.mxu0  ;;  %v3001_v25 = vadd.f32 %v3000_v11, %v7653_v20 }
 0x577   : > { %v3038_v3 = vadd.f32 %v3037_v52, %v2989_v16 }
 0x578   : > { %v3125_v14 = vpop.f32.mrf.mxu2 }
 0x579   : > { %v3126_v13 = vadd.f32 %v3125_v14, %v3077_v37 }
 0x57b   : > { %v3086_v58 = vpop.f32.mrf.mxu1 }
 0x57c   : > { %v3087_v9 = vadd.f32 %v3086_v58, %v3038_v3 }
 0x57e   : > { %3482 = vmatmul.bf16.gmra.mxu1 %v7629_v45  ;;  %v2986_v45 = vadd.f32 %v2985_v12, %v7653_v20  ;;  %v3039_v31 = vpop.f32.mrf.mxu0  ;;  %v3279_v12 = vpop.f32.mrf.mxu3 }
 0x57f   : > { %v3040_v42 = vadd.f32 %v3039_v31, %v2991_v40 }
 0x580   : > { %v3127_v59 = vpop.f32.mrf.mxu2  ;;  %v3035_v46 = vadd.f32 %v3034_v41, %v2986_v45 }
 0x581   : > { %v3128_v55 = vadd.f32 %v3127_v59, %v3079_v50 }
 0x582   : > { %v3084_v2 = vadd.f32 %v3083_v4, %v3035_v46 }
 0x583   : > { %v3177_v19 = vpack.c.bf16 %v3128_v55, %v3126_v13  ;;  %v3088_v51 = vpop.f32.mrf.mxu1 }
 0x584   : > { %v3089_v5 = vadd.f32 %v3088_v51, %v3040_v42 }
 0x585   : > { %4676 = vmatmul.msk.bf16.gmra.mxu0 %vm826_vm2, %v3177_v19  ;;  %4744 = vmatmul.msk.bf16.gmra.mxu2 %vm826_vm2, %v3177_v19 }
 0x586   : > { %v3042_v53 = vpop.f32.mrf.mxu0  ;;  %v3281_v55 = vpop.f32.mrf.mxu3 }
 0x587   : > { %v3043_v18 = vadd.f32 %v3042_v53, %v2994_v35 }
 0x588   : > { %v3130_v32 = vpop.f32.mrf.mxu2 }
 0x589   : > { %v3131_v36 = vadd.f32 %v3130_v32, %v3082_v27 }
 0x58b   : > { %v3091_v49 = vpop.f32.mrf.mxu1 }
 0x58c   : > { %v3092_v17 = vadd.f32 %v3091_v49, %v3043_v18 }
 0x58e   : > { %3487 = vmatmul.bf16.gmra.mxu1 %v7639_v63  ;;  %v3044_v6 = vpop.f32.mrf.mxu0  ;;  %v3284_v32 = vpop.f32.mrf.mxu3 }
 0x590   : > { %v3132_v7 = vpop.f32.mrf.mxu2 }
 0x591   : > { %v3133_v1 = vadd.f32 %v3132_v7, %v3084_v2 }
 0x593   : > { %v3179_v47 = vpack.c.bf16 %v3133_v1, %v3131_v36  ;;  %v3093_v63 = vpop.f32.mrf.mxu1 }
 0x595   : > { %4677 = vmatmul.msk.bf16.gmra.mxu0 %vm826_vm2, %v3179_v47  ;;  %4745 = vmatmul.msk.bf16.gmra.mxu2 %vm826_vm2, %v3179_v47 }
 0x596   : > { %v3047_v48 = vpop.f32.mrf.mxu0  ;;  %v3286_v45 = vpop.f32.mrf.mxu3 }
 0x597   : > { %v3048_v58 = vadd.f32 %v3047_v48, %v2999_v10 }
 0x598   : > { %v3135_v43 = vpop.f32.mrf.mxu2 }
 0x599   : > { %v3136_v26 = vadd.f32 %v3135_v43, %v3087_v9 }
 0x59b   : > { %v3096_v56 = vpop.f32.mrf.mxu1 }
 0x59c   : > { %v3097_v50 = vadd.f32 %v3096_v56, %v3048_v58 }
 0x59e   : > { %3492 = vmatmul.bf16.gmra.mxu1 %v7649_v62  ;;  %v3045_v62 = vadd.f32 %v3044_v6, %v2996_v54  ;;  %v3049_v29 = vpop.f32.mrf.mxu0  ;;  %v3289_v36 = vpop.f32.mrf.mxu3 }
 0x59f   : > { %v3050_v37 = vadd.f32 %v3049_v29, %v3001_v25 }
 0x5a0   : > { %v3137_v24 = vpop.f32.mrf.mxu2  ;;  %v3094_v33 = vadd.f32 %v3093_v63, %v3045_v62 }
 0x5a1   : > { %v3138_v22 = vadd.f32 %v3137_v24, %v3089_v5 }
 0x5a3   : > { %v3181_v60 = vpack.c.bf16 %v3138_v22, %v3136_v26  ;;  %v3098_v44 = vpop.f32.mrf.mxu1 }
 0x5a4   : > { %v3099_v59 = vadd.f32 %v3098_v44, %v3050_v37 }
 0x5a5   : > { %4678 = vmatmul.msk.bf16.gmra.mxu0 %vm826_vm2, %v3181_v60  ;;  %4746 = vmatmul.msk.bf16.gmra.mxu2 %vm826_vm2, %v3181_v60 }
 0x5a6   : > { %v3291_v63 = vpop.f32.mrf.mxu3 }
 0x5a8   : > { %v3140_v61 = vpop.f32.mrf.mxu2 }
 0x5a9   : > { %v3141_v57 = vadd.f32 %v3140_v61, %v3092_v17 }
 0x5ab   : > { %v3458_v30 = vpop.f32.mrf.mxu1 }
 0x5ae   : > { %v3294_v22 = vpop.f32.mrf.mxu3 }
 0x5b0   : > { %v3142_v8 = vpop.f32.mrf.mxu2 }
 0x5b1   : > { %v3143_v4 = vadd.f32 %v3142_v8, %v3094_v33 }
 0x5b3   : > { %v3183_v28 = vpack.c.bf16 %v3143_v4, %v3141_v57  ;;  %v3460_v51 = vpop.f32.mrf.mxu1 }
 0x5b5   : > { %4679 = vmatmul.msk.bf16.gmra.mxu0 %vm826_vm2, %v3183_v28  ;;  %4747 = vmatmul.msk.bf16.gmra.mxu2 %vm826_vm2, %v3183_v28 }
 0x5b6   : > { %v3296_v54 = vpop.f32.mrf.mxu3 }
 0x5b8   : > { %v3145_v14 = vpop.f32.mrf.mxu2 }
 0x5b9   : > { %v3146_v15 = vadd.f32 %v3145_v14, %v3097_v50 }
 0x5bb   : > { %v3463_v52 = vpop.f32.mrf.mxu1 }
 0x5be   : > { %v3299_v11 = vpop.f32.mrf.mxu3 }
 0x5c0   : > { %v3147_v41 = vpop.f32.mrf.mxu2 }
 0x5c1   : > { %v3148_v13 = vadd.f32 %v3147_v41, %v3099_v59 }
 0x5c3   : > { %v3185_v19 = vpack.c.bf16 %v3148_v13, %v3146_v15  ;;  %v3465_v23 = vpop.f32.mrf.mxu1 }
 0x5c5   : > { %4680 = vmatmul.msk.bf16.gmra.mxu0 %vm826_vm2, %v3185_v19  ;;  %4748 = vmatmul.msk.bf16.gmra.mxu2 %vm826_vm2, %v3185_v19 }
 0x5c6   : > { %v3301_v58 = vpop.f32.mrf.mxu3 }
 0x5cb   : > { %v3468_v31 = vpop.f32.mrf.mxu1 }
 0x5ce   : > { %v3304_v19 = vpop.f32.mrf.mxu3 }
 0x5d2   : > { %v3328_v39 = vpop.f32.mrf.mxu0 }
 0x5d3   : > { %v3329_v21 = vadd.f32 %v3328_v39, %v3279_v12  ;;  %v3470_v42 = vpop.f32.mrf.mxu1 }
 0x5d8   : > { %v3507_v20 = vpop.f32.mrf.mxu2 }
 0x5d9   : > { %v3508_v46 = vadd.f32 %v3507_v20, %v3458_v30  ;;  %v3306_v20 = vpop.f32.mrf.mxu3 }
 0x5da   : > { %v3330_v27 = vpop.f32.mrf.mxu0 }
 0x5db   : > { %v3547_v2 = vmax.f32 %v3329_v21, %v3508_v46  ;;  %v3331_v1 = vadd.f32 %v3330_v27, %v3281_v55  ;;  %v3473_v60 = vpop.f32.mrf.mxu1 }
 0x5dd   : > { %3563 = vst.msk [vmem:[#allocation3] sm:$0xff] %vm2353_vm12, %v3547_v2 }
 0x5e0   : > { %v3509_v7 = vpop.f32.mrf.mxu2 }
 0x5e1   : > { %v3510_v49 = vadd.f32 %v3509_v7, %v3460_v51 }
 0x5e2   : > { %v3333_v38 = vpop.f32.mrf.mxu0 }
 0x5e3   : > { %v3548_v47 = vmax.f32 %v3331_v1, %v3510_v49  ;;  %v3334_v16 = vadd.f32 %v3333_v38, %v3284_v32  ;;  %v3475_v18 = vpop.f32.mrf.mxu1  ;;  %v5029_v1 = vld [vmem:[%s7889_s7 + $0x38] sm:$0xff] }
 0x5e4   : > { %3897 = vmatpush.bf16.msra.mxu3 %v5029_v1 }
 0x5e5   : > { %3564 = vst.msk [vmem:[#allocation3 + $0x8] sm:$0xff] %vm2353_vm12, %v3548_v47 }
 0x5e8   : > { %v3512_v43 = vpop.f32.mrf.mxu2 }
 0x5e9   : > { %v3513_v40 = vadd.f32 %v3512_v43, %v3463_v52 }
 0x5ea   : > { %v3335_v53 = vpop.f32.mrf.mxu0 }
 0x5eb   : > { %v3549_v3 = vmax.f32 %v3334_v16, %v3513_v40  ;;  %v3336_v9 = vadd.f32 %v3335_v53, %v3286_v45  ;;  %v3478_v28 = vpop.f32.mrf.mxu1 }
 0x5ed   : > { %3565 = vst.msk [vmem:[#allocation3 + $0x10] sm:$0xff] %vm2353_vm12, %v3549_v3 }
 0x5f0   : > { %v3514_v34 = vpop.f32.mrf.mxu2 }
 0x5f1   : > { %v3515_v5 = vadd.f32 %v3514_v34, %v3465_v23 }
 0x5f2   : > { %v3338_v24 = vpop.f32.mrf.mxu0 }
 0x5f3   : > { %v3550_v26 = vmax.f32 %v3336_v9, %v3515_v5  ;;  %v3339_v56 = vadd.f32 %v3338_v24, %v3289_v36  ;;  %v3480_v50 = vpop.f32.mrf.mxu1  ;;  %v5028_v5 = vld [vmem:[%s7889_s7 + $0x30] sm:$0xff]  ;;  %v5037_v24 = vld [vmem:[%s7889_s7 + $0x78] sm:$0xff] }
 0x5f4   : > { %3898 = vmatpush.bf16.msra.mxu3 %v5028_v5  ;;  %3910 = vmatpush.bf16.msra.mxu0 %v5037_v24  ;;  %v3631_v5 = vld [vmem:[#allocation3 + $0x6] ss:$16 sm:$0x3]  ;;  %v3639_v24 = vld [vmem:[#allocation3 + $0x7] ss:$16 sm:$0x3] }
 0x5f5   : > { %3566 = vst.msk [vmem:[#allocation3 + $0x18] sm:$0xff] %vm2353_vm12, %v3550_v26 }
 0x5f8   : > { %v3517_v6 = vpop.f32.mrf.mxu2 }
 0x5f9   : > { %v3518_v0 = vadd.f32 %v3517_v6, %v3468_v31  ;;  %v3309_v31 = vpop.f32.mrf.mxu3 }
 0x5fa   : > { %v3340_v61 = vpop.f32.mrf.mxu0 }
 0x5fb   : > { %v3551_v35 = vmax.f32 %v3339_v56, %v3518_v0  ;;  %v3341_v48 = vadd.f32 %v3340_v61, %v3291_v63  ;;  %v3483_v51 = vpop.f32.mrf.mxu1  ;;  %v5045_v0 = vld [vmem:[%s7889_s7 + $0xb8] sm:$0xff]  ;;  %v5027_v61 = vld [vmem:[%s7889_s7 + $0x28] sm:$0xff] }
 0x5fc   : > { %3923 = vmatpush.bf16.msrb.mxu1 %v5045_v0  ;;  %3899 = vmatpush.bf16.msra.mxu3 %v5027_v61 }
 0x5fd   : > { %3567 = vst.msk [vmem:[#allocation3 + $0x20] sm:$0xff] %vm2353_vm12, %v3551_v35  ;;  %v5036_v35 = vld [vmem:[%s7889_s7 + $0x70] sm:$0xff] }
 0x5fe   : > { %3911 = vmatpush.bf16.msra.mxu0 %v5036_v35 }
 0x600   : > { %v3519_v62 = vpop.f32.mrf.mxu2 }
 0x601   : > { %v3520_v17 = vadd.f32 %v3519_v62, %v3470_v42  ;;  %v3311_v34 = vpop.f32.mrf.mxu3  ;;  %v5044_v62 = vld [vmem:[%s7889_s7 + $0xb0] sm:$0xff] }
 0x602   : > { %v3343_v33 = vpop.f32.mrf.mxu0  ;;  %3924 = vmatpush.bf16.msrb.mxu1 %v5044_v62 }
 0x603   : > { %v3552_v44 = vmax.f32 %v3341_v48, %v3520_v17  ;;  %v3344_v57 = vadd.f32 %v3343_v33, %v3294_v22  ;;  %v3485_v21 = vpop.f32.mrf.mxu1  ;;  %v5026_v48 = vld [vmem:[%s7889_s7 + $0x20] sm:$0xff]  ;;  %v5035_v33 = vld [vmem:[%s7889_s7 + $0x68] sm:$0xff] }
 0x604   : > { %3900 = vmatpush.bf16.msra.mxu3 %v5026_v48  ;;  %3912 = vmatpush.bf16.msra.mxu0 %v5035_v33 }
 0x605   : > { %3568 = vst.msk [vmem:[#allocation3 + $0x28] sm:$0xff] %vm2353_vm12, %v3552_v44 }
 0x608   : > { %v3522_v8 = vpop.f32.mrf.mxu2 }
 0x609   : > { %v3523_v4 = vadd.f32 %v3522_v8, %v3473_v60 }
 0x60a   : > { %v3345_v14 = vpop.f32.mrf.mxu0 }
 0x60b   : > { %v3553_v12 = vmax.f32 %v3344_v57, %v3523_v4  ;;  %v3346_v30 = vadd.f32 %v3345_v14, %v3296_v54  ;;  %v3488_v43 = vpop.f32.mrf.mxu1  ;;  %v5043_v57 = vld [vmem:[%s7889_s7 + $0xa8] sm:$0xff]  ;;  %v5025_v4 = vld [vmem:[%s7889_s7 + $0x18] sm:$0xff] }
 0x60c   : > { %3925 = vmatpush.bf16.msrb.mxu1 %v5043_v57  ;;  %3901 = vmatpush.bf16.msra.mxu3 %v5025_v4 }
 0x60d   : > { %3569 = vst.msk [vmem:[#allocation3 + $0x30] sm:$0xff] %vm2353_vm12, %v3553_v12  ;;  %v3614_v12 = vld [vmem:[#allocation3 + $0x4] ss:$16 sm:$0x3] }
 0x610   : > { %v3524_v29 = vpop.f32.mrf.mxu2 }
 0x611   : > { %v3525_v10 = vadd.f32 %v3524_v29, %v3475_v18  ;;  %v3314_v18 = vpop.f32.mrf.mxu3 }
 0x612   : > { %v3348_v25 = vpop.f32.mrf.mxu0 }
 0x613   : > { %v3554_v37 = vmax.f32 %v3346_v30, %v3525_v10  ;;  %v3349_v41 = vadd.f32 %v3348_v25, %v3299_v11  ;;  %v3490_v26 = vpop.f32.mrf.mxu1  ;;  %v5042_v30 = vld [vmem:[%s7889_s7 + $0xa0] sm:$0xff]  ;;  %v5024_v10 = vld [vmem:[%s7889_s7 + $0x10] sm:$0xff] }
 0x614   : > { %v3615_v29 = vld [vmem:[#allocation3 + $0x4] ss:$16 sm:$0xc]  ;;  %3926 = vmatpush.bf16.msrb.mxu1 %v5042_v30  ;;  %3902 = vmatpush.bf16.msra.mxu3 %v5024_v10 }
 0x615   : > { %3570 = vst.msk [vmem:[#allocation3 + $0x38] sm:$0xff] %vm2353_vm12, %v3554_v37  ;;  %v3623_v37 = vld [vmem:[#allocation3 + $0x5] ss:$16 sm:$0xc] }
 0x618   : > { %v3527_v59 = vpop.f32.mrf.mxu2 }
 0x619   : > { %v3528_v15 = vadd.f32 %v3527_v59, %v3478_v28  ;;  %v5034_v28 = vld [vmem:[%s7889_s7 + $0x60] sm:$0xff]  ;;  %v3316_v59 = vpop.f32.mrf.mxu3 }
 0x61a   : > { %v3350_v13 = vpop.f32.mrf.mxu0  ;;  %3913 = vmatpush.bf16.msra.mxu0 %v5034_v28 }
 0x61b   : > { %v3555_v55 = vmax.f32 %v3349_v41, %v3528_v15  ;;  %v3351_v52 = vadd.f32 %v3350_v13, %v3301_v58  ;;  %v3493_v17 = vpop.f32.mrf.mxu1  ;;  %v3622_v58 = vld [vmem:[#allocation3 + $0x5] ss:$16 sm:$0x3]  ;;  %v3597_v41 = vld [vmem:[#allocation3 + $0x2] ss:$16 sm:$0x3] }
 0x61c   : > { %v3598_v15 = vld [vmem:[#allocation3 + $0x2] ss:$16 sm:$0xc]  ;;  %v3606_v13 = vld [vmem:[#allocation3 + $0x3] ss:$16 sm:$0xc] }
 0x61d   : > { %3571 = vst.msk [vmem:[#allocation3 + $0x40] sm:$0xff] %vm2353_vm12, %v3555_v55  ;;  %v3657_v0 = vld [vmem:[#allocation3 + $0x9] ss:$16 sm:$0xc] }
 0x620   : > { %v3529_v32 = vpop.f32.mrf.mxu2 }
 0x621   : > { %v3530_v39 = vadd.f32 %v3529_v32, %v3480_v50  ;;  %v5033_v50 = vld [vmem:[%s7889_s7 + $0x58] sm:$0xff] }
 0x622   : > { %v3353_v45 = vpop.f32.mrf.mxu0  ;;  %3914 = vmatpush.bf16.msra.mxu0 %v5033_v50 }
 0x623   : > { %v3556_v23 = vmax.f32 %v3351_v52, %v3530_v39  ;;  %v3354_v27 = vadd.f32 %v3353_v45, %v3304_v19  ;;  %v3495_v55 = vpop.f32.mrf.mxu1  ;;  %v3605_v39 = vld [vmem:[#allocation3 + $0x3] ss:$16 sm:$0x3] }
 0x625   : > { %3572 = vst.msk [vmem:[#allocation3 + $0x48] sm:$0xff] %vm2353_vm12, %v3556_v23 }
 0x628   : > { %v3532_v46 = vpop.f32.mrf.mxu2 }
 0x629   : > { %v3533_v2 = vadd.f32 %v3532_v46, %v3483_v51  ;;  %v3616_v51 = vor.u32 %v3615_v29, %v3614_v12  ;;  %v5041_v46 = vld [vmem:[%s7889_s7 + $0x98] sm:$0xff] }
 0x62a   : > { %v3355_v7 = vpop.f32.mrf.mxu0  ;;  %3927 = vmatpush.bf16.msrb.mxu1 %v5041_v46 }
 0x62b   : > { %v3557_v36 = vmax.f32 %v3354_v27, %v3533_v2  ;;  %v3356_v38 = vadd.f32 %v3355_v7, %v3306_v20  ;;  %v3624_v20 = vor.u32 %v3623_v37, %v3622_v58  ;;  %v5023_v27 = vld [vmem:[%s7889_s7 + $0x8] sm:$0xff]  ;;  %v3599_v2 = vor.u32 %v3598_v15, %v3597_v41  ;;  %v5022_v15 = vld [vmem:[%s7889_s7] sm:$0xff] }
 0x62c   : > { %3903 = vmatpush.bf16.msra.mxu3 %v5023_v27  ;;  %v5053_v27 = vld [vmem:[%s7891_s9 + $0x30] sm:$0xff] }
 0x62d   : > { %3573 = vst.msk [vmem:[#allocation3 + $0x50] sm:$0xff] %vm2353_vm12, %v3557_v36  ;;  %v5032_v36 = vld [vmem:[%s7889_s7 + $0x50] sm:$0xff] }
 0x62e   : > { %3915 = vmatpush.bf16.msra.mxu0 %v5032_v36 }
 0x630   : > { %v3534_v49 = vpop.f32.mrf.mxu2  ;;  %3904 = vmatpush.bf16.msra.mxu3 %v5022_v15 }
 0x631   : > { %v3535_v47 = vadd.f32 %v3534_v49, %v3485_v21 }
 0x632   : > { %v3358_v16 = vpop.f32.mrf.mxu0 }
 0x633   : > { %v3558_v40 = vmax.f32 %v3356_v38, %v3535_v47  ;;  %v3359_v63 = vadd.f32 %v3358_v16, %v3309_v31  ;;  %v3607_v38 = vor.u32 %v3606_v13, %v3605_v39  ;;  %v3632_v47 = vld [vmem:[#allocation3 + $0x6] ss:$16 sm:$0xc]  ;;  %v5031_v13 = vld [vmem:[%s7889_s7 + $0x48] sm:$0xff] }
 0x634   : > { %v3617_v32 = vld [vmem:[#allocation3 + $0x4] ss:$16 sm:$0x30]  ;;  %v3625_v52 = vld [vmem:[#allocation3 + $0x5] ss:$16 sm:$0x30]  ;;  %v3633_v62 = vor.u32 %v3632_v47, %v3631_v5  ;;  %3916 = vmatpush.bf16.msra.mxu0 %v5031_v13 }
 0x635   : > { %3574 = vst.msk [vmem:[#allocation3 + $0x58] sm:$0xff] %vm2353_vm12, %v3558_v40  ;;  %v3600_v21 = vld [vmem:[#allocation3 + $0x2] ss:$16 sm:$0x30]  ;;  %v3618_v49 = vor.u32 %v3617_v32, %v3616_v51  ;;  %v3626_v31 = vor.u32 %v3625_v52, %v3624_v20 }
 0x636   : > { %v3608_v7 = vld [vmem:[#allocation3 + $0x3] ss:$16 sm:$0x30]  ;;  %v3581_v52 = vld [vmem:[#allocation3] ss:$16 sm:$0xc] }
 0x637   : > { %v5030_v51 = vld [vmem:[%s7889_s7 + $0x40] sm:$0xff] }
 0x638   : > { %v3537_v53 = vpop.f32.mrf.mxu2  ;;  %v5038_v32 = vld [vmem:[%s7889_s7 + $0x80] sm:$0xff]  ;;  %3917 = vmatpush.bf16.msra.mxu0 %v5030_v51 }
 0x639   : > { %v3538_v3 = vadd.f32 %v3537_v53, %v3488_v43  ;;  %v3640_v43 = vld [vmem:[#allocation3 + $0x7] ss:$16 sm:$0xc]  ;;  %v3601_v53 = vor.u32 %v3600_v21, %v3599_v2  ;;  %v3580_v39 = vld [vmem:[#allocation3] ss:$16 sm:$0x3] }
 0x63a   : > { %v3360_v42 = vpop.f32.mrf.mxu0  ;;  %v3641_v48 = vor.u32 %v3640_v43, %v3639_v24  ;;  %v3583_v20 = vld [vmem:[#allocation3] ss:$16 sm:$0x30]  ;;  %v3588_v21 = vld [vmem:[#allocation3 + $0x1] ss:$16 sm:$0x3]  ;;  %v3582_v2 = vor.u32 %v3581_v52, %v3580_v39 }
 0x63b   : > { %v3559_v9 = vmax.f32 %v3359_v63, %v3538_v3  ;;  %v3361_v60 = vadd.f32 %v3360_v42, %v3311_v34  ;;  %v3649_v63 = vld [vmem:[#allocation3 + $0x8] ss:$16 sm:$0xc]  ;;  %v3591_v46 = vld [vmem:[#allocation3 + $0x1] ss:$16 sm:$0x30] }
 0x63c   : > { %v3659_v33 = vld [vmem:[#allocation3 + $0x9] ss:$16 sm:$0x30]  ;;  %v5431_v51 = vld [vmem:[%s7894_s12] ss:$0 sm:$0xff] }
 0x63d   : > { %3575 = vst.msk [vmem:[#allocation3 + $0x60] sm:$0xff] %vm2353_vm12, %v3559_v9  ;;  %v3609_v9 = vor.u32 %v3608_v7, %v3607_v38  ;;  %v5052_v38 = vld [vmem:[%s7891_s9 + $0x28] sm:$0xff] }
 0x640   : > { %v3539_v22 = vpop.f32.mrf.mxu2 }
 0x641   : > { %v3540_v6 = vadd.f32 %v3539_v22, %v3490_v26  ;;  %v5040_v26 = vld [vmem:[%s7889_s7 + $0x90] sm:$0xff] }
 0x642   : > { %v3363_v54 = vpop.f32.mrf.mxu0  ;;  %3928 = vmatpush.bf16.msrb.mxu1 %v5040_v26 }
 0x643   : > { %v3560_v56 = vmax.f32 %v3361_v60, %v3540_v6  ;;  %v3364_v8 = vadd.f32 %v3363_v54, %v3314_v18  ;;  %v3648_v6 = vld [vmem:[#allocation3 + $0x8] ss:$16 sm:$0x3]  ;;  %v3634_v54 = vld [vmem:[#allocation3 + $0x6] ss:$16 sm:$0x30] }
 0x644   : > { %v3642_v18 = vld [vmem:[#allocation3 + $0x7] ss:$16 sm:$0x30]  ;;  %v3635_v28 = vor.u32 %v3634_v54, %v3633_v62  ;;  %v5062_v54 = vld [vmem:[%s7893_s11 + $0x38] sm:$0xff]  ;;  %v5060_v62 = vld [vmem:[%s7893_s11 + $0x28] sm:$0xff] }
 0x645   : > { %3576 = vst.msk [vmem:[#allocation3 + $0x68] sm:$0xff] %vm2353_vm12, %v3560_v56  ;;  %v3656_v56 = vld [vmem:[#allocation3 + $0x9] ss:$16 sm:$0x3]  ;;  %4100 = vmatpush.bf16.msrb.mxu0 %v5062_v54 }
 0x648   : > { %v3542_v44 = vpop.f32.mrf.mxu2 }
 0x649   : > { %v3543_v11 = vadd.f32 %v3542_v44, %v3493_v17  ;;  %v3651_v17 = vld [vmem:[#allocation3 + $0x8] ss:$16 sm:$0x30] }
 0x64a   : > { %v3365_v25 = vpop.f32.mrf.mxu0 }
 0x64b   : > { %v3561_v14 = vmax.f32 %v3364_v8, %v3543_v11  ;;  %v3366_v45 = vadd.f32 %v3365_v25, %v3316_v59  ;;  %v3650_v8 = vor.u32 %v3649_v63, %v3648_v6  ;;  %v3658_v11 = vor.u32 %v3657_v0, %v3656_v56  ;;  %v5048_v0 = vld [vmem:[%s7891_s9 + $0x8] sm:$0xff] }
 0x64d   : > { %3577 = vst.msk [vmem:[#allocation3 + $0x70] sm:$0xff] %vm2353_vm12, %v3561_v14  ;;  %v3643_v14 = vor.u32 %v3642_v18, %v3641_v48  ;;  %v3652_v12 = vor.u32 %v3651_v17, %v3650_v8  ;;  %v3660_v29 = vor.u32 %v3659_v33, %v3658_v11  ;;  %v5061_v18 = vld [vmem:[%s7893_s11 + $0x30] sm:$0xff]  ;;  %v5429_v8 = vld [vmem:[%s7890_s8] ss:$0 sm:$0xff]  ;;  %v5058_v11 = vld [vmem:[%s7893_s11 + $0x18] sm:$0xff] }
 0x64e   : > { %4101 = vmatpush.bf16.msrb.mxu0 %v5061_v18 }
 0x650   : > { %v3544_v19 = vpop.f32.mrf.mxu2 }
 0x651   : > { %v3545_v23 = vadd.f32 %v3544_v19, %v3495_v55  ;;  %v5039_v55 = vld [vmem:[%s7889_s7 + $0x88] sm:$0xff]  ;;  %v5046_v19 = vld [vmem:[%s7889_s7 + $0xc0] sm:$0xff] }
 0x652   : > { %3929 = vmatpush.bf16.msrb.mxu1 %v5039_v55  ;;  %3943 = vmatpush.bf16.msrb.mxu3 %v5046_v19 }
 0x653   : > { %v3562_v1 = vmax.f32 %v3366_v45, %v3545_v23  ;;  %v3589_v45 = vld [vmem:[#allocation3 + $0x1] ss:$16 sm:$0xc]  ;;  %v5054_v23 = vld [vmem:[%s7891_s9 + $0x38] sm:$0xff]  ;;  %4102 = vmatpush.bf16.msrb.mxu0 %v5060_v62 }
 0x654   : > { %v3619_v16 = vld [vmem:[#allocation3 + $0x4] ss:$16 sm:$0xc0]  ;;  %v3627_v40 = vld [vmem:[#allocation3 + $0x5] ss:$16 sm:$0xc0]  ;;  %4018 = vmatpush.bf16.msrb.mxu2 %v5054_v23  ;;  %v3590_v7 = vor.u32 %v3589_v45, %v3588_v21 }
 0x655   : > { %3579 = vst.msk [vmem:[#allocation3 + $0x78] sm:$0x3] %vm3578_vm14, %v3562_v1  ;;  %v3620_v3 = vor.u32 %v3619_v16, %v3618_v49  ;;  %v3628_v42 = vor.u32 %v3627_v40, %v3626_v31  ;;  %v3602_v34 = vld [vmem:[#allocation3 + $0x2] ss:$16 sm:$0xc0]  ;;  %v3584_v49 = vor.u32 %v3583_v20, %v3582_v2 }
 0x656   : > { %v3603_v22 = vor.u32 %v3602_v34, %v3601_v53  ;;  %v3610_v60 = vld [vmem:[#allocation3 + $0x3] ss:$16 sm:$0xc0]  ;;  %v3636_v57 = vld [vmem:[#allocation3 + $0x6] ss:$16 sm:$0xc0]  ;;  %3930 = vmatpush.bf16.msrb.mxu1 %v5038_v32  ;;  %v3592_v31 = vor.u32 %v3591_v46, %v3590_v7 }
 0x657   : > { %v3629_v61 = vmax.f32 %v3620_v3, %v3628_v42  ;;  %v3611_v35 = vor.u32 %v3610_v60, %v3609_v9  ;;  %v3644_v4 = vld [vmem:[#allocation3 + $0x7] ss:$16 sm:$0xc0]  ;;  %v3637_v25 = vor.u32 %v3636_v57, %v3635_v28  ;;  %v3585_v36 = vld [vmem:[#allocation3] ss:$16 sm:$0xc0] }
 0x658   : > { %v3645_v58 = vor.u32 %v3644_v4, %v3643_v14  ;;  %v3593_v1 = vld [vmem:[#allocation3 + $0x1] ss:$16 sm:$0xc0]  ;;  %4019 = vmatpush.bf16.msrb.mxu2 %v5053_v27  ;;  %v3586_v47 = vor.u32 %v3585_v36, %v3584_v49  ;;  %v5050_v42 = vld [vmem:[%s7891_s9 + $0x18] sm:$0xff] }
 0x659   : > { %3669 = vrot.lane.b32.xlu2 %v3629_v61, %s7916_s20  ;;  %v3612_v44 = vmax.f32 %v3603_v22, %v3611_v35  ;;  %s5502_s20 = smov 112   ;;  %v3594_v43 = vor.u32 %v3593_v1, %v3592_v31  ;;  %v5051_v16 = vld [vmem:[%s7891_s9 + $0x20] sm:$0xff]  ;;  %v5049_v9 = vld [vmem:[%s7891_s9 + $0x10] sm:$0xff] }
 0x65a   : > { %v3646_v41 = vmax.f32 %v3637_v25, %v3645_v58  ;;  %v5047_v35 = vld [vmem:[%s7891_s9] sm:$0xff] }
 0x65b   : > { %3665 = vrot.lane.b32.xlu1 %v3612_v44, %s5501_s16  ;;  %v3595_v40 = vmax.f32 %v3586_v47, %v3594_v43  ;;  %v5059_v44 = vld [vmem:[%s7893_s11 + $0x20] sm:$0xff]  ;;  %s4193_s16 = sshll.u32 %s432_s17, 3 }
 0x65c   : > { %v3653_v30 = vld [vmem:[#allocation3 + $0x8] ss:$16 sm:$0xc0]  ;;  %v3661_v10 = vld [vmem:[#allocation3 + $0x9] ss:$16 sm:$0xc0]  ;;  %4020 = vmatpush.bf16.msrb.mxu2 %v5052_v38  ;;  %4103 = vmatpush.bf16.msrb.mxu0 %v5059_v44 }
 0x65d   : > { %v3654_v37 = vor.u32 %v3653_v30, %v3652_v12  ;;  %v3662_v50 = vor.u32 %v3661_v10, %v3660_v29  ;;  %v5057_v12 = vld [vmem:[%s7893_s11 + $0x10] sm:$0xff]  ;;  %v5056_v30 = vld [vmem:[%s7893_s11 + $0x8] sm:$0xff] }
 0x65f   : > { %v3663_v59 = vmax.f32 %v3654_v37, %v3662_v50 }
 0x660   : > { %4021 = vmatpush.bf16.msrb.mxu2 %v5051_v16  ;;  %4104 = vmatpush.bf16.msrb.mxu0 %v5058_v11 }
 0x661   : > { %3677 = vrot.lane.b32.xlu0 %v3663_v59, %s7917_s30  ;;  %v5055_v59 = vld [vmem:[%s7893_s11] sm:$0xff]  ;;  %s434_s30 = scalar_lea.vmem [#allocation4], %s4193_s16 }
 0x662   : > { %s4127_s15 = sshll.u32 %s434_s30, 4  ;;  %s4128_s15 = int_to_ptr.vmem [resolvable:$true] %s4127_s15 }
 0x663   : > { %3673 = vrot.lane.b32.xlu1 %v3646_v41, %s5502_s20  ;;  %v5430_v41 = vld [vmem:[%s7892_s10] ss:$0 sm:$0xff]  ;;  %s4115_s20 = scalar_lea.sflag [#allocation5], %s432_s17 }
 0x664   : > { %4022 = vmatpush.bf16.msrb.mxu2 %v5050_v42  ;;  %4105 = vmatpush.bf16.msrb.mxu0 %v5057_v12 }
 0x668   : > { %4023 = vmatpush.bf16.msrb.mxu2 %v5049_v9  ;;  %4106 = vmatpush.bf16.msrb.mxu0 %v5056_v30 }
 0x66c   : > { %4024 = vmatpush.bf16.msrb.mxu2 %v5048_v0  ;;  %4107 = vmatpush.bf16.msrb.mxu0 %v5055_v59 }
 0x670   : > { %4025 = vmatpush.bf16.msrb.mxu2 %v5047_v35 }
 0x6b3   : > { %v3670_v5 = vpop.permute.xlu2 %3669 }
 0x6cd   : > { %v3666_v53 = vpop.permute.xlu1 %3665 }
 0x6ce   : > { %v3680_v63 = vsel %vm2353_vm12, %v3595_v40, %v3666_v53  ;;  %v3681_v24 = vsel %vm826_vm2, %v3666_v53, %v3670_v5 }
 0x6cf   : > { %v3735_v3 = vpack.c.bf16 %v3680_v63, %v3680_v63 }
 0x6d1   : > { %3905 = vmatmul.bf16.vlgmr.msra.gmra.mxu3 %v3735_v3 }
 0x6d3   : > { %v3678_v34 = vpop.permute.xlu0 %3677 }
 0x6d4   : > { %v3738_v61 = vpack.c.bf16 %v3678_v34, %v3678_v34 }
 0x6d5   : > { %v3674_v26 = vpop.permute.xlu1 %3673 }
 0x6d6   : > { %v3683_v22 = vsel %vm3682_vm15, %v3681_v24, %v3674_v26  ;;  %v3684_v60 = vsel %vm859_vm3, %v3674_v26, %v3678_v34 }
 0x6d7   : > { %v3736_v6 = vpack.c.bf16 %v3683_v22, %v3683_v22  ;;  %v3737_v56 = vpack.c.bf16 %v3684_v60, %v3684_v60 }
 0x6d9   : > { %3918 = vmatmul.bf16.vlgmr.msra.gmra.mxu0 %v3736_v6  ;;  %3931 = vmatmul.bf16.vlgmr.msrb.gmra.mxu1 %v3737_v56 }
 0x6e1   : > { %4849 = vmatmul.msk.bf16.vlgmr.msrb.gmra.mxu3 %vm3893_vm0, %v3738_v61 }
 0x754   : > { %v3906_v48 = vpop.f32.mrf.mxu3 }
 0x755   : > { %v3907_v57 = vadd.f32 %v5429_v8, %v3906_v48 }
 0x756   : > { %v3919_v17 = vpop.f32.mrf.mxu0  ;;  %v3932_v33 = vpop.f32.mrf.mxu1 }
 0x757   : > { %v3920_v29 = vadd.f32 %v3919_v17, %v3907_v57 }
 0x759   : > { %v3933_v10 = vadd.f32 %v3932_v33, %v3920_v29 }
 0x75c   : > { %v3908_v4 = vpop.f32.mrf.mxu3 }
 0x75e   : > { %v3921_v28 = vpop.f32.mrf.mxu0  ;;  %v3934_v14 = vpop.f32.mrf.mxu1 }
 0x764   : > { %v3945_v25 = vpop.f32.mrf.mxu3 }
 0x765   : > { %v3946_v58 = vadd.f32 %v3945_v25, %v3933_v10 }
 0x767   : > { %v3965_v37 = vpack.c.bf16 %v3946_v58, %v3946_v58 }
 0x769   : > { %4026 = vmatmul.bf16.vlgmr.msrb.gmra.mxu2 %v3965_v37 }
 0x76c   : > { %v3947_v50 = vpop.f32.mrf.mxu3 }
 0x7ec   : > { %v4027_v15 = vpop.f32.mrf.mxu2 }
 0x7ed   : > { %v4028_v13 = vadd.f32 %v5430_v41, %v4027_v15 }
 0x7ef   : > { %v4047_v55 = vpack.c.bf16 %v4028_v13, %v4028_v13 }
 0x7f1   : > { %4108 = vmatmul.bf16.vlgmr.msrb.gmra.mxu0 %v4047_v55 }
 0x7f4   : > { %v4029_v19 = vpop.f32.mrf.mxu2 }
 0x86e   : > { %v4109_v32 = vpop.f32.mrf.mxu0 }
 0x86f   : > { %v4110_v52 = vadd.f32 %v5431_v51, %v4109_v32 }
 0x871   : > { %4113 = vst [vmem:[%s434_s30] sm:$0xff] %v4110_v52 }
 0x872   : > { %5459 = shalt.err (!%p5456_p3)
}
 0x873   : > { %5063 = dma.vmem_to_hbm [thread:$0]  (%p5611_p5), %s4128_s15, 128, %s4130_s0, %s4115_s20  }
 0x876   : > { %v4111_v39 = vpop.f32.mrf.mxu0 }
 0x877 PF: > { %p5069_p4 = scmp.ge.s32.totalorder %s5494_s28, 2  ;;  %s4141_s17 = sand.u32 1, %s5482_s25  }
 0x878   : > { %s4142_s21 = scalar_lea.sflag [#allocation5], %s4141_s17 }
 0x879   : > { %p5066_p7 = pnand %p5069_p4, %p5615_p6 }
 0x87b   : > { %p5067_p8 = pneg %p5066_p7 }
 0x87d   : > { %5477 = dma.done.wait (%p5067_p8), %s4142_s21, 128  }
 0x87e   : > { %5479 = vsyncadd (%p5067_p8), %s4142_s21, 4294967168  ;;  %s7922_s2 = sld [smem:[#allocation7_spill]]  ;;  %p23_p9 = scmp.ge.s32.totalorder %s5598_s14, 4  }
 0x87f   : > { %s7923_s27 = sld [smem:[#allocation8_spill]]  ;;  %s7924_s25 = smov %s5486_s26 }
 0x880   : > { %s7926_s28 = smov %s5598_s14  ;;  %25 = sbr.rel (!%p23_p9) target bundleno = 7 (0x7), region = 149 }
 0x884   : > { %s7925_s26 = smov %s7922_s2 }
 0x885   :  { %4148 = vsyncpa [#allocation5], 1 }
 0x886   :  { %4150 = vsyncpa [#allocation5 + $0x1], 1 }

</bundles_post_ra>
